<compile_context>
chip_gen: v5e
topology: v5e:2x2
jax: 0.10.0
libtpu: 0.0.40
codegen_flags: <defaults>
</compile_context>

<pallas_src>
import numpy as np
import jax
import jax.numpy as jnp
from jax.experimental import pallas as pl
from jax.experimental.pallas import tpu as pltpu

# ---- hyperparameters (CONFIG: hidden_size=(128,128), num_layers=1, bias=False,
# ----                  batch_first=True, dropout=0.0, bidirectional=True) ----
HIDDEN = (128, 128)
NUM_DIRS = 2                      # bidirectional
INPUT_SIZE = 128                  # small TPU-friendly stand-in for embedding_dim[0]
OUTPUT_SIZE = 128                 # embedding_dim[1] (y-side embedding width)
B, S = 2, 8


# ---------------------------------------------------------------------------
# Single fused kernel: bidirectional LSTM (bias-free) + g / dy ELU heads
# ---------------------------------------------------------------------------
def _lstm_al_kernel(x_ref, y_ref, wih_ref, whh_ref, wg_ref, wdy_ref,
                    s_ref, hn_ref, cn_ref, t_ref, tp_ref, xg_ref):
    Bb, Ss, H2 = s_ref.shape
    H = H2 // 2
    H4 = 4 * H

    # --- one big bf16 MXU matmul: input projections, both directions, all timesteps ---
    # x is time-major (S*B, IN) bf16; result parked in a VMEM scratch so per-step gate
    # reads are contiguous-row vld's and the 16-vreg result does not stay live.
    xg_ref[...] = jnp.dot(x_ref[...], wih_ref[...],
                          preferred_element_type=jnp.float32)        # (S*B, 8H) f32

    whh = whh_ref[...]                                                # (2H, 4H) bf16 [whh_f; whh_b]

    # block-diagonal mask, built once: ones at [0:B, 0:H] and [B:2B, H:2H]
    row = jax.lax.broadcasted_iota(jnp.int32, (2 * Bb, 2 * H), 0)
    lane = jax.lax.broadcasted_iota(jnp.int32, (2 * Bb, 2 * H), 1)
    diag = (row < Bb) == (lane < H)

    h = jnp.zeros((2 * Bb, H), jnp.float32)        # rows 0:B = h_fwd, rows B:2B = h_bwd
    c = jnp.zeros((2 * Bb, H), jnp.float32)

    # Interleaved forward/backward recurrence: fwd step t and bwd step S-1-t share one
    # block-diagonal hidden matmul per iteration (the two independent chains hide each
    # other's MXU/EUP latency).
    for t in range(Ss):
        tb = Ss - 1 - t
        xgf = xg_ref[t * Bb:(t + 1) * Bb, 0:H4]            # fwd input gates, time t
        xgb = xg_ref[tb * Bb:(tb + 1) * Bb, H4:2 * H4]     # bwd input gates, time S-1-t
        xg2 = jnp.concatenate([xgf, xgb], axis=0)          # (2B, 4H)

        # LHS = [[hf, 0], [0, hb]]  ->  one matmul computes both directions' gates.
        h2 = jnp.where(diag, jnp.concatenate([h, h], axis=-1), 0.0)
        g = xg2 + jnp.dot(h2.astype(jnp.bfloat16), whh,
                          preferred_element_type=jnp.float32)        # (2B, 4H) f32

        i = jax.nn.sigmoid(g[:, 0:H])                      # PyTorch gate order: i, f, g, o
        f = jax.nn.sigmoid(g[:, H:2 * H])
        gg = jnp.tanh(g[:, 2 * H:3 * H])
        o = jax.nn.sigmoid(g[:, 3 * H:4 * H])
        c = f * c + i * gg
        h = o * jnp.tanh(c)

        # per-step lane-aligned stores (H = 128): no stack/concat epilogue, h retires now
        s_ref[:, t, 0:H] = h[0:Bb].astype(s_ref.dtype)
        s_ref[:, tb, H:2 * H] = h[Bb:2 * Bb].astype(s_ref.dtype)

    hn_ref[0] = h[0:Bb].astype(hn_ref.dtype)       # h_n[0] = last forward hidden (t = S-1)
    hn_ref[1] = h[Bb:2 * Bb].astype(hn_ref.dtype)  # h_n[1] = last backward hidden (t = 0)
    cn_ref[0] = c[0:Bb].astype(cn_ref.dtype)
    cn_ref[1] = c[Bb:2 * Bb].astype(cn_ref.dtype)

    # --- g / dy heads: bias-free Linear + ELU, fused in the same kernel ---
    def elu(z):
        # TODO(synk): expm1 would be marginally more accurate near 0; exp(min(z,0))-1 used
        # because expm1 lowering support in Mosaic is not guaranteed (error ~1e-7 in f32).
        return jnp.where(z > 0.0, z, jnp.exp(jnp.minimum(z, 0.0)) - 1.0)

    t_val = elu(jnp.dot(y_ref[...], wg_ref[...], preferred_element_type=jnp.float32))
    t_ref[...] = t_val.astype(t_ref.dtype)                            # self._t
    tp_val = elu(jnp.dot(t_val.astype(jnp.bfloat16), wdy_ref[...],
                         preferred_element_type=jnp.float32))
    tp_ref[...] = tp_val.astype(tp_ref.dtype)                         # self._t_prime


def _full_spec(shape):
    nd = len(shape)
    return pl.BlockSpec(shape, lambda i, _nd=nd: (0,) * _nd)


def lstm_al_forward(x, y, params):
    """Training-branch forward of LSTMAL. Returns ((s, (h_nx, c_n), t), t_prime)."""
    Bx, Sx, IN = x.shape
    H = HIDDEN[0]
    out_dtype = x.dtype

    # time-major bf16 MXU operands (tiny; folds into the surrounding jit)
    x_tm = jnp.transpose(x, (1, 0, 2)).reshape(Sx * Bx, IN).astype(jnp.bfloat16)
    y_b = y.astype(jnp.bfloat16)

    args = (x_tm, y_b, params['wih_all_bf16'], params['whh_stacked_bf16'],
            params['wg_bf16'], params['wdy_bf16'])
    out_shapes = (
        jax.ShapeDtypeStruct((Bx, Sx, NUM_DIRS * H), out_dtype),      # _s
        jax.ShapeDtypeStruct((NUM_DIRS, Bx, H), out_dtype),           # h_n
        jax.ShapeDtypeStruct((NUM_DIRS, Bx, H), out_dtype),           # c_n
        jax.ShapeDtypeStruct((Bx, HIDDEN[1]), out_dtype),             # _t
        jax.ShapeDtypeStruct((Bx, OUTPUT_SIZE), out_dtype),           # _t_prime
    )

    # advisory cost model so XLA schedules this microsecond-scale call sensibly
    flops = int(2 * (Sx * Bx * IN * 8 * H                   # fused input projection
                     + Sx * (2 * Bx) * (2 * H) * (4 * H)    # block-diag recurrence matmuls
                     + Bx * OUTPUT_SIZE * HIDDEN[1]         # g head
                     + Bx * HIDDEN[1] * OUTPUT_SIZE))       # dy head
    transcendentals = int(Sx * (2 * Bx) * (4 * H) + 2 * Bx * max(OUTPUT_SIZE, HIDDEN[1]))
    bytes_accessed = int(sum(int(np.prod(a.shape)) * a.dtype.itemsize for a in args)
                         + sum(int(np.prod(o.shape)) * np.dtype(o.dtype).itemsize
                               for o in out_shapes))

    s, h_n, c_n, t, t_prime = pl.pallas_call(
        _lstm_al_kernel,
        out_shape=out_shapes,
        grid=(1,),                       # whole problem in one invocation (tiny shapes)
        in_specs=[_full_spec(a.shape) for a in args],
        out_specs=tuple(_full_spec(o.shape) for o in out_shapes),
        scratch_shapes=[pltpu.VMEM((Sx * Bx, 8 * H), jnp.float32)],   # time-major input gates
        compiler_params=pltpu.CompilerParams(dimension_semantics=("arbitrary",)),
        cost_estimate=pl.CostEstimate(flops=flops, transcendentals=transcendentals,
                                      bytes_accessed=bytes_accessed),
    )(*args)

    # Replicates PyTorch `h_n.view(h_n.size(1), -1)`: raw row-major reinterpretation.
    # NOTE: this intentionally mixes direction and batch (row 0 = forward finals of all
    # batch rows, row 1 = backward finals) — exactly what the module does.
    h_nx = h_n.reshape(h_n.shape[1], -1)
    return (s, (h_nx, c_n), t), t_prime


# ---------------------------------------------------------------------------
# Deterministic parameter initialization (shapes from LSTMAL.__init__, bias=False)
# f32 masters for the reference; bf16 fused/stacked operands for the kernel.
# All weights stored pre-transposed as (in_features, out_features).
# ---------------------------------------------------------------------------
def init_params(key):
    H = HIDDEN[0]
    ks = jax.random.split(key, 6)

    def w(k, shape, fan):
        bound = 1.0 / np.sqrt(fan)
        return jax.random.uniform(k, shape, jnp.float32, -bound, bound)

    wih_f_t = w(ks[0], (INPUT_SIZE, 4 * H), H)          # LSTM weight_ih_l0          (transposed)
    wih_b_t = w(ks[1], (INPUT_SIZE, 4 * H), H)          # LSTM weight_ih_l0_reverse  (transposed)
    whh_f_t = w(ks[2], (H, 4 * H), H)                   # LSTM weight_hh_l0          (transposed)
    whh_b_t = w(ks[3], (H, 4 * H), H)                   # LSTM weight_hh_l0_reverse  (transposed)
    wg_t = w(ks[4], (OUTPUT_SIZE, HIDDEN[1]), OUTPUT_SIZE)   # g : Linear(out, hid[1], bias=False)
    wdy_t = w(ks[5], (HIDDEN[1], OUTPUT_SIZE), HIDDEN[1])    # dy: Linear(hid[1], out, bias=False)

    return dict(
        # f32 masters (reference semantics)
        wih_f_t=wih_f_t, wih_b_t=wih_b_t, whh_f_t=whh_f_t, whh_b_t=whh_b_t,
        wg_t=wg_t, wdy_t=wdy_t,
        # bf16 kernel operands (halve weight DMA; bf16-native MXU on v5e/v6e/v7x)
        wih_all_bf16=jnp.concatenate([wih_f_t, wih_b_t], axis=1).astype(jnp.bfloat16),   # (IN, 8H)
        whh_stacked_bf16=jnp.concatenate([whh_f_t, whh_b_t], axis=0).astype(jnp.bfloat16),  # (2H, 4H)
        wg_bf16=wg_t.astype(jnp.bfloat16),
        wdy_bf16=wdy_t.astype(jnp.bfloat16),
    )


# ---------------------------------------------------------------------------
# Pure-JAX f32 reference (PyTorch semantics) for validation of ALL outputs
# ---------------------------------------------------------------------------
def _reference(x, y, p):
    Bx, Sx, _ = x.shape
    H = HIDDEN[0]

    def cell(x_t, h, c, wih, whh):
        g = x_t @ wih + h @ whh
        i = jax.nn.sigmoid(g[:, 0:H])
        f = jax.nn.sigmoid(g[:, H:2 * H])
        gg = jnp.tanh(g[:, 2 * H:3 * H])
        o = jax.nn.sigmoid(g[:, 3 * H:4 * H])
        c = f * c + i * gg
        return o * jnp.tanh(c), c

    zero = jnp.zeros((Bx, H), jnp.float32)
    hf, cf = zero, zero
    outs_f = []
    for t in range(Sx):
        hf, cf = cell(x[:, t, :], hf, cf, p['wih_f_t'], p['whh_f_t'])
        outs_f.append(hf)
    hb, cb = zero, zero
    outs_b = [None] * Sx
    for t in range(Sx - 1, -1, -1):
        hb, cb = cell(x[:, t, :], hb, cb, p['wih_b_t'], p['whh_b_t'])
        outs_b[t] = hb

    s = jnp.concatenate([jnp.stack(outs_f, 1), jnp.stack(outs_b, 1)], axis=-1)
    h_n = jnp.stack([hf, hb], 0)
    c_n = jnp.stack([cf, cb], 0)
    h_nx = h_n.reshape(h_n.shape[1], -1)                # mirrors .view(size(1), -1)

    elu = lambda z: jnp.where(z > 0.0, z, jnp.expm1(z))
    t_ = elu(y @ p['wg_t'])
    tp = elu(t_ @ p['wdy_t'])
    return s, h_nx, c_n, t_, tp


if __name__ == "__main__":
    key = jax.random.PRNGKey(0)
    kx, ky, kp = jax.random.split(key, 3)
    x = jax.random.normal(kx, (B, S, INPUT_SIZE), jnp.float32)     # (N, L, Hin), batch_first
    y = jax.random.normal(ky, (B, OUTPUT_SIZE), jnp.float32)       # label-side embedding
    params = init_params(kp)

    fwd = jax.jit(lstm_al_forward)
    (s, (h_nx, c_n), t), t_prime = fwd(x, y, params)
    jax.block_until_ready((s, h_nx, c_n, t, t_prime))

    s_r, h_nx_r, c_n_r, t_r, tp_r = _reference(x, y, params)
    # Tolerance 2e-2: kernel uses bf16 MXU operands (weights, x/y, carried hidden state)
    # with f32 accumulation, compared against a pure-f32 reference.
    for got, ref in ((s, s_r), (h_nx, h_nx_r), (c_n, c_n_r), (t, t_r), (t_prime, tp_r)):
        np.testing.assert_allclose(np.asarray(got), np.asarray(ref), rtol=2e-2, atol=2e-2)

    print("KERNEL_OK")
</pallas_src>

<mosaic_0001>
module attributes {stable_mosaic.version = 11 : i64} {
  func.func @_lstm_al_kernel(%arg0: i32, %arg1: memref<16x128xbf16, #tpu.memory_space<vmem>>, %arg2: memref<2x128xbf16, #tpu.memory_space<vmem>>, %arg3: memref<128x1024xbf16, #tpu.memory_space<vmem>>, %arg4: memref<256x512xbf16, #tpu.memory_space<vmem>>, %arg5: memref<128x128xbf16, #tpu.memory_space<vmem>>, %arg6: memref<128x128xbf16, #tpu.memory_space<vmem>>, %arg7: memref<2x8x256xf32, #tpu.memory_space<vmem>>, %arg8: memref<2x2x128xf32, #tpu.memory_space<vmem>>, %arg9: memref<2x2x128xf32, #tpu.memory_space<vmem>>, %arg10: memref<2x128xf32, #tpu.memory_space<vmem>>, %arg11: memref<2x128xf32, #tpu.memory_space<vmem>>, %arg12: memref<16x1024xf32, #tpu.memory_space<vmem>>) attributes {dimension_semantics = [#tpu.dimension_semantics<arbitrary>], iteration_bounds = array<i64: 1>, scalar_prefetch = 0 : i64, scratch_operands = 1 : i64, tpu.core_type = #tpu.core_type<tc>, window_params = [{pipeline_mode = #tpu.pipeline_mode<synchronous>, transform_indices = @transform_0, window_bounds = array<i64: 16, 128>}, {pipeline_mode = #tpu.pipeline_mode<synchronous>, transform_indices = @transform_1, window_bounds = array<i64: 2, 128>}, {pipeline_mode = #tpu.pipeline_mode<synchronous>, transform_indices = @transform_2, window_bounds = array<i64: 128, 1024>}, {pipeline_mode = #tpu.pipeline_mode<synchronous>, transform_indices = @transform_3, window_bounds = array<i64: 256, 512>}, {pipeline_mode = #tpu.pipeline_mode<synchronous>, transform_indices = @transform_4, window_bounds = array<i64: 128, 128>}, {pipeline_mode = #tpu.pipeline_mode<synchronous>, transform_indices = @transform_5, window_bounds = array<i64: 128, 128>}, {pipeline_mode = #tpu.pipeline_mode<synchronous>, transform_indices = @transform_6, window_bounds = array<i64: 2, 8, 256>}, {pipeline_mode = #tpu.pipeline_mode<synchronous>, transform_indices = @transform_7, window_bounds = array<i64: 2, 2, 128>}, {pipeline_mode = #tpu.pipeline_mode<synchronous>, transform_indices = @transform_8, window_bounds = array<i64: 2, 2, 128>}, {pipeline_mode = #tpu.pipeline_mode<synchronous>, transform_indices = @transform_9, window_bounds = array<i64: 2, 128>}, {pipeline_mode = #tpu.pipeline_mode<synchronous>, transform_indices = @transform_10, window_bounds = array<i64: 2, 128>}]} {
    %c0 = arith.constant 0 : index
    %c0_0 = arith.constant 0 : index
    %0 = vector.load %arg1[%c0, %c0_0] : memref<16x128xbf16, #tpu.memory_space<vmem>>, vector<16x128xbf16>
    %c0_1 = arith.constant 0 : index
    %c0_2 = arith.constant 0 : index
    %1 = vector.load %arg3[%c0_1, %c0_2] : memref<128x1024xbf16, #tpu.memory_space<vmem>>, vector<128x1024xbf16>
    %cst = arith.constant dense<0.000000e+00> : vector<16x1024xf32>
    %2 = tpu.matmul %0, %1, %cst {dimension_numbers = #tpu.dot_dimension_numbers<[1], [0], [0], [1], [0, 0, 1, 1], [], []>} : vector<16x128xbf16>, vector<128x1024xbf16>, vector<16x1024xf32> -> vector<16x1024xf32>
    %c0_3 = arith.constant 0 : index
    %c0_4 = arith.constant 0 : index
    %3 = vector.load %arg12[%c0_3, %c0_4] : memref<16x1024xf32, #tpu.memory_space<vmem>>, vector<16x1024xf32>
    tpu.vector_store %arg12[%c0_3, %c0_4], %2 {strides = array<i32>} : memref<16x1024xf32, #tpu.memory_space<vmem>>, vector<16x1024xf32>,
    %c0_5 = arith.constant 0 : index
    %c0_6 = arith.constant 0 : index
    %4 = vector.load %arg4[%c0_5, %c0_6] : memref<256x512xbf16, #tpu.memory_space<vmem>>, vector<256x512xbf16>
    %5 = tpu.iota {dimensions = array<i32: 0>} : vector<4x256xi32>
    %6 = tpu.iota {dimensions = array<i32: 1>} : vector<4x256xi32>
    %c2_i32 = arith.constant 2 : i32
    %7 = vector.broadcast %c2_i32 : i32 to vector<4x256xi32>
    %8 = arith.cmpi slt, %5, %7 : vector<4x256xi32>
    %c128_i32 = arith.constant 128 : i32
    %9 = vector.broadcast %c128_i32 : i32 to vector<4x256xi32>
    %10 = arith.cmpi slt, %6, %9 : vector<4x256xi32>
    %11 = arith.xori %8, %10 : vector<4x256xi1>
    %cst_7 = arith.constant dense<true> : vector<4x256xi1>
    %12 = arith.xori %11, %cst_7 : vector<4x256xi1>
    %cst_8 = arith.constant 0.000000e+00 : f32
    %13 = vector.broadcast %cst_8 : f32 to vector<4x128xf32>
    %cst_9 = arith.constant 0.000000e+00 : f32
    %14 = vector.broadcast %cst_9 : f32 to vector<4x128xf32>
    %c0_10 = arith.constant 0 : index
    %c0_11 = arith.constant 0 : index
    %15 = vector.load %arg12[%c0_10, %c0_11] : memref<16x1024xf32, #tpu.memory_space<vmem>>, vector<2x512xf32>
    %c14 = arith.constant 14 : index
    %c512 = arith.constant 512 : index
    %16 = vector.load %arg12[%c14, %c512] : memref<16x1024xf32, #tpu.memory_space<vmem>>, vector<2x512xf32>
    %17 = tpu.concatenate %15, %16 in 0 : vector<2x512xf32>, vector<2x512xf32> -> vector<4x512xf32>
    %18 = tpu.concatenate %13, %13 in 1 : vector<4x128xf32>, vector<4x128xf32> -> vector<4x256xf32>
    %cst_12 = arith.constant 0.000000e+00 : f32
    %19 = vector.broadcast %cst_12 : f32 to vector<4x256xf32>
    %20 = arith.select %12, %18, %19 : vector<4x256xi1>, vector<4x256xf32>
    %21 = arith.truncf %20 : vector<4x256xf32> to vector<4x256xbf16>
    %cst_13 = arith.constant dense<0.000000e+00> : vector<4x512xf32>
    %22 = tpu.matmul %21, %4, %cst_13 {dimension_numbers = #tpu.dot_dimension_numbers<[1], [0], [0], [1], [0, 0, 1, 1], [], []>} : vector<4x256xbf16>, vector<256x512xbf16>, vector<4x512xf32> -> vector<4x512xf32>
    %23 = arith.addf %17, %22 : vector<4x512xf32>
    %24 = vector.extract_strided_slice %23 {offsets = [0, 0], sizes = [4, 128], strides = [1, 1]} : vector<4x512xf32> to vector<4x128xf32>
    %25 = arith.negf %24 : vector<4x128xf32>
    %26 = math.exp %25 : vector<4x128xf32>
    %cst_14 = arith.constant 1.000000e+00 : f32
    %27 = vector.broadcast %cst_14 : f32 to vector<4x128xf32>
    %28 = arith.addf %27, %26 : vector<4x128xf32>
    %29 = arith.divf %27, %28 : vector<4x128xf32>
    %30 = vector.extract_strided_slice %23 {offsets = [0, 128], sizes = [4, 128], strides = [1, 1]} : vector<4x512xf32> to vector<4x128xf32>
    %31 = arith.negf %30 : vector<4x128xf32>
    %32 = math.exp %31 : vector<4x128xf32>
    %cst_15 = arith.constant 1.000000e+00 : f32
    %33 = vector.broadcast %cst_15 : f32 to vector<4x128xf32>
    %34 = arith.addf %33, %32 : vector<4x128xf32>
    %35 = arith.divf %33, %34 : vector<4x128xf32>
    %36 = vector.extract_strided_slice %23 {offsets = [0, 256], sizes = [4, 128], strides = [1, 1]} : vector<4x512xf32> to vector<4x128xf32>
    %37 = math.tanh %36 : vector<4x128xf32>
    %38 = vector.extract_strided_slice %23 {offsets = [0, 384], sizes = [4, 128], strides = [1, 1]} : vector<4x512xf32> to vector<4x128xf32>
    %39 = arith.negf %38 : vector<4x128xf32>
    %40 = math.exp %39 : vector<4x128xf32>
    %cst_16 = arith.constant 1.000000e+00 : f32
    %41 = vector.broadcast %cst_16 : f32 to vector<4x128xf32>
    %42 = arith.addf %41, %40 : vector<4x128xf32>
    %43 = arith.divf %41, %42 : vector<4x128xf32>
    %44 = arith.mulf %35, %14 : vector<4x128xf32>
    %45 = arith.mulf %29, %37 : vector<4x128xf32>
    %46 = arith.addf %44, %45 : vector<4x128xf32>
    %47 = math.tanh %46 : vector<4x128xf32>
    %48 = arith.mulf %43, %47 : vector<4x128xf32>
    %49 = vector.extract_strided_slice %48 {offsets = [0, 0], sizes = [2, 128], strides = [1, 1]} : vector<4x128xf32> to vector<2x128xf32>
    %c0_17 = arith.constant 0 : index
    %c0_18 = arith.constant 0 : index
    %c0_19 = arith.constant 0 : index
    %50 = vector.load %arg7[%c0_17, %c0_18, %c0_19] : memref<2x8x256xf32, #tpu.memory_space<vmem>>, vector<2x1x128xf32>
    %51 = vector.shape_cast %50 : vector<2x1x128xf32> to vector<2x128xf32>
    %52 = vector.shape_cast %49 : vector<2x128xf32> to vector<2x1x128xf32>
    tpu.vector_store %arg7[%c0_17, %c0_18, %c0_19], %52 {strides = array<i32>} : memref<2x8x256xf32, #tpu.memory_space<vmem>>, vector<2x1x128xf32>,
    %53 = vector.extract_strided_slice %48 {offsets = [2, 0], sizes = [2, 128], strides = [1, 1]} : vector<4x128xf32> to vector<2x128xf32>
    %c0_20 = arith.constant 0 : index
    %c7 = arith.constant 7 : index
    %c128 = arith.constant 128 : index
    %54 = vector.load %arg7[%c0_20, %c7, %c128] : memref<2x8x256xf32, #tpu.memory_space<vmem>>, vector<2x1x128xf32>
    %55 = vector.shape_cast %54 : vector<2x1x128xf32> to vector<2x128xf32>
    %56 = vector.shape_cast %53 : vector<2x128xf32> to vector<2x1x128xf32>
    tpu.vector_store %arg7[%c0_20, %c7, %c128], %56 {strides = array<i32>} : memref<2x8x256xf32, #tpu.memory_space<vmem>>, vector<2x1x128xf32>,
    %c2 = arith.constant 2 : index
    %c0_21 = arith.constant 0 : index
    %57 = vector.load %arg12[%c2, %c0_21] : memref<16x1024xf32, #tpu.memory_space<vmem>>, vector<2x512xf32>
    %c12 = arith.constant 12 : index
    %c512_22 = arith.constant 512 : index
    %58 = vector.load %arg12[%c12, %c512_22] : memref<16x1024xf32, #tpu.memory_space<vmem>>, vector<2x512xf32>
    %59 = tpu.concatenate %57, %58 in 0 : vector<2x512xf32>, vector<2x512xf32> -> vector<4x512xf32>
    %60 = tpu.concatenate %48, %48 in 1 : vector<4x128xf32>, vector<4x128xf32> -> vector<4x256xf32>
    %cst_23 = arith.constant 0.000000e+00 : f32
    %61 = vector.broadcast %cst_23 : f32 to vector<4x256xf32>
    %62 = arith.select %12, %60, %61 : vector<4x256xi1>, vector<4x256xf32>
    %63 = arith.truncf %62 : vector<4x256xf32> to vector<4x256xbf16>
    %cst_24 = arith.constant dense<0.000000e+00> : vector<4x512xf32>
    %64 = tpu.matmul %63, %4, %cst_24 {dimension_numbers = #tpu.dot_dimension_numbers<[1], [0], [0], [1], [0, 0, 1, 1], [], []>} : vector<4x256xbf16>, vector<256x512xbf16>, vector<4x512xf32> -> vector<4x512xf32>
    %65 = arith.addf %59, %64 : vector<4x512xf32>
    %66 = vector.extract_strided_slice %65 {offsets = [0, 0], sizes = [4, 128], strides = [1, 1]} : vector<4x512xf32> to vector<4x128xf32>
    %67 = arith.negf %66 : vector<4x128xf32>
    %68 = math.exp %67 : vector<4x128xf32>
    %cst_25 = arith.constant 1.000000e+00 : f32
    %69 = vector.broadcast %cst_25 : f32 to vector<4x128xf32>
    %70 = arith.addf %69, %68 : vector<4x128xf32>
    %71 = arith.divf %69, %70 : vector<4x128xf32>
    %72 = vector.extract_strided_slice %65 {offsets = [0, 128], sizes = [4, 128], strides = [1, 1]} : vector<4x512xf32> to vector<4x128xf32>
    %73 = arith.negf %72 : vector<4x128xf32>
    %74 = math.exp %73 : vector<4x128xf32>
    %cst_26 = arith.constant 1.000000e+00 : f32
    %75 = vector.broadcast %cst_26 : f32 to vector<4x128xf32>
    %76 = arith.addf %75, %74 : vector<4x128xf32>
    %77 = arith.divf %75, %76 : vector<4x128xf32>
    %78 = vector.extract_strided_slice %65 {offsets = [0, 256], sizes = [4, 128], strides = [1, 1]} : vector<4x512xf32> to vector<4x128xf32>
    %79 = math.tanh %78 : vector<4x128xf32>
    %80 = vector.extract_strided_slice %65 {offsets = [0, 384], sizes = [4, 128], strides = [1, 1]} : vector<4x512xf32> to vector<4x128xf32>
    %81 = arith.negf %80 : vector<4x128xf32>
    %82 = math.exp %81 : vector<4x128xf32>
    %cst_27 = arith.constant 1.000000e+00 : f32
    %83 = vector.broadcast %cst_27 : f32 to vector<4x128xf32>
    %84 = arith.addf %83, %82 : vector<4x128xf32>
    %85 = arith.divf %83, %84 : vector<4x128xf32>
    %86 = arith.mulf %77, %46 : vector<4x128xf32>
    %87 = arith.mulf %71, %79 : vector<4x128xf32>
    %88 = arith.addf %86, %87 : vector<4x128xf32>
    %89 = math.tanh %88 : vector<4x128xf32>
    %90 = arith.mulf %85, %89 : vector<4x128xf32>
    %91 = vector.extract_strided_slice %90 {offsets = [0, 0], sizes = [2, 128], strides = [1, 1]} : vector<4x128xf32> to vector<2x128xf32>
    %c0_28 = arith.constant 0 : index
    %c1 = arith.constant 1 : index
    %c0_29 = arith.constant 0 : index
    %92 = vector.load %arg7[%c0_28, %c1, %c0_29] : memref<2x8x256xf32, #tpu.memory_space<vmem>>, vector<2x1x128xf32>
    %93 = vector.shape_cast %92 : vector<2x1x128xf32> to vector<2x128xf32>
    %94 = vector.shape_cast %91 : vector<2x128xf32> to vector<2x1x128xf32>
    tpu.vector_store %arg7[%c0_28, %c1, %c0_29], %94 {strides = array<i32>} : memref<2x8x256xf32, #tpu.memory_space<vmem>>, vector<2x1x128xf32>,
    %95 = vector.extract_strided_slice %90 {offsets = [2, 0], sizes = [2, 128], strides = [1, 1]} : vector<4x128xf32> to vector<2x128xf32>
    %c0_30 = arith.constant 0 : index
    %c6 = arith.constant 6 : index
    %c128_31 = arith.constant 128 : index
    %96 = vector.load %arg7[%c0_30, %c6, %c128_31] : memref<2x8x256xf32, #tpu.memory_space<vmem>>, vector<2x1x128xf32>
    %97 = vector.shape_cast %96 : vector<2x1x128xf32> to vector<2x128xf32>
    %98 = vector.shape_cast %95 : vector<2x128xf32> to vector<2x1x128xf32>
    tpu.vector_store %arg7[%c0_30, %c6, %c128_31], %98 {strides = array<i32>} : memref<2x8x256xf32, #tpu.memory_space<vmem>>, vector<2x1x128xf32>,
    %c4 = arith.constant 4 : index
    %c0_32 = arith.constant 0 : index
    %99 = vector.load %arg12[%c4, %c0_32] : memref<16x1024xf32, #tpu.memory_space<vmem>>, vector<2x512xf32>
    %c10 = arith.constant 10 : index
    %c512_33 = arith.constant 512 : index
    %100 = vector.load %arg12[%c10, %c512_33] : memref<16x1024xf32, #tpu.memory_space<vmem>>, vector<2x512xf32>
    %101 = tpu.concatenate %99, %100 in 0 : vector<2x512xf32>, vector<2x512xf32> -> vector<4x512xf32>
    %102 = tpu.concatenate %90, %90 in 1 : vector<4x128xf32>, vector<4x128xf32> -> vector<4x256xf32>
    %cst_34 = arith.constant 0.000000e+00 : f32
    %103 = vector.broadcast %cst_34 : f32 to vector<4x256xf32>
    %104 = arith.select %12, %102, %103 : vector<4x256xi1>, vector<4x256xf32>
    %105 = arith.truncf %104 : vector<4x256xf32> to vector<4x256xbf16>
    %cst_35 = arith.constant dense<0.000000e+00> : vector<4x512xf32>
    %106 = tpu.matmul %105, %4, %cst_35 {dimension_numbers = #tpu.dot_dimension_numbers<[1], [0], [0], [1], [0, 0, 1, 1], [], []>} : vector<4x256xbf16>, vector<256x512xbf16>, vector<4x512xf32> -> vector<4x512xf32>
    %107 = arith.addf %101, %106 : vector<4x512xf32>
    %108 = vector.extract_strided_slice %107 {offsets = [0, 0], sizes = [4, 128], strides = [1, 1]} : vector<4x512xf32> to vector<4x128xf32>
    %109 = arith.negf %108 : vector<4x128xf32>
    %110 = math.exp %109 : vector<4x128xf32>
    %cst_36 = arith.constant 1.000000e+00 : f32
    %111 = vector.broadcast %cst_36 : f32 to vector<4x128xf32>
    %112 = arith.addf %111, %110 : vector<4x128xf32>
    %113 = arith.divf %111, %112 : vector<4x128xf32>
    %114 = vector.extract_strided_slice %107 {offsets = [0, 128], sizes = [4, 128], strides = [1, 1]} : vector<4x512xf32> to vector<4x128xf32>
    %115 = arith.negf %114 : vector<4x128xf32>
    %116 = math.exp %115 : vector<4x128xf32>
    %cst_37 = arith.constant 1.000000e+00 : f32
    %117 = vector.broadcast %cst_37 : f32 to vector<4x128xf32>
    %118 = arith.addf %117, %116 : vector<4x128xf32>
    %119 = arith.divf %117, %118 : vector<4x128xf32>
    %120 = vector.extract_strided_slice %107 {offsets = [0, 256], sizes = [4, 128], strides = [1, 1]} : vector<4x512xf32> to vector<4x128xf32>
    %121 = math.tanh %120 : vector<4x128xf32>
    %122 = vector.extract_strided_slice %107 {offsets = [0, 384], sizes = [4, 128], strides = [1, 1]} : vector<4x512xf32> to vector<4x128xf32>
    %123 = arith.negf %122 : vector<4x128xf32>
    %124 = math.exp %123 : vector<4x128xf32>
    %cst_38 = arith.constant 1.000000e+00 : f32
    %125 = vector.broadcast %cst_38 : f32 to vector<4x128xf32>
    %126 = arith.addf %125, %124 : vector<4x128xf32>
    %127 = arith.divf %125, %126 : vector<4x128xf32>
    %128 = arith.mulf %119, %88 : vector<4x128xf32>
    %129 = arith.mulf %113, %121 : vector<4x128xf32>
    %130 = arith.addf %128, %129 : vector<4x128xf32>
    %131 = math.tanh %130 : vector<4x128xf32>
    %132 = arith.mulf %127, %131 : vector<4x128xf32>
    %133 = vector.extract_strided_slice %132 {offsets = [0, 0], sizes = [2, 128], strides = [1, 1]} : vector<4x128xf32> to vector<2x128xf32>
    %c0_39 = arith.constant 0 : index
    %c2_40 = arith.constant 2 : index
    %c0_41 = arith.constant 0 : index
    %134 = vector.load %arg7[%c0_39, %c2_40, %c0_41] : memref<2x8x256xf32, #tpu.memory_space<vmem>>, vector<2x1x128xf32>
    %135 = vector.shape_cast %134 : vector<2x1x128xf32> to vector<2x128xf32>
    %136 = vector.shape_cast %133 : vector<2x128xf32> to vector<2x1x128xf32>
    tpu.vector_store %arg7[%c0_39, %c2_40, %c0_41], %136 {strides = array<i32>} : memref<2x8x256xf32, #tpu.memory_space<vmem>>, vector<2x1x128xf32>,
    %137 = vector.extract_strided_slice %132 {offsets = [2, 0], sizes = [2, 128], strides = [1, 1]} : vector<4x128xf32> to vector<2x128xf32>
    %c0_42 = arith.constant 0 : index
    %c5 = arith.constant 5 : index
    %c128_43 = arith.constant 128 : index
    %138 = vector.load %arg7[%c0_42, %c5, %c128_43] : memref<2x8x256xf32, #tpu.memory_space<vmem>>, vector<2x1x128xf32>
    %139 = vector.shape_cast %138 : vector<2x1x128xf32> to vector<2x128xf32>
    %140 = vector.shape_cast %137 : vector<2x128xf32> to vector<2x1x128xf32>
    tpu.vector_store %arg7[%c0_42, %c5, %c128_43], %140 {strides = array<i32>} : memref<2x8x256xf32, #tpu.memory_space<vmem>>, vector<2x1x128xf32>,
    %c6_44 = arith.constant 6 : index
    %c0_45 = arith.constant 0 : index
    %141 = vector.load %arg12[%c6_44, %c0_45] : memref<16x1024xf32, #tpu.memory_space<vmem>>, vector<2x512xf32>
    %c8 = arith.constant 8 : index
    %c512_46 = arith.constant 512 : index
    %142 = vector.load %arg12[%c8, %c512_46] : memref<16x1024xf32, #tpu.memory_space<vmem>>, vector<2x512xf32>
    %143 = tpu.concatenate %141, %142 in 0 : vector<2x512xf32>, vector<2x512xf32> -> vector<4x512xf32>
    %144 = tpu.concatenate %132, %132 in 1 : vector<4x128xf32>, vector<4x128xf32> -> vector<4x256xf32>
    %cst_47 = arith.constant 0.000000e+00 : f32
    %145 = vector.broadcast %cst_47 : f32 to vector<4x256xf32>
    %146 = arith.select %12, %144, %145 : vector<4x256xi1>, vector<4x256xf32>
    %147 = arith.truncf %146 : vector<4x256xf32> to vector<4x256xbf16>
    %cst_48 = arith.constant dense<0.000000e+00> : vector<4x512xf32>
    %148 = tpu.matmul %147, %4, %cst_48 {dimension_numbers = #tpu.dot_dimension_numbers<[1], [0], [0], [1], [0, 0, 1, 1], [], []>} : vector<4x256xbf16>, vector<256x512xbf16>, vector<4x512xf32> -> vector<4x512xf32>
    %149 = arith.addf %143, %148 : vector<4x512xf32>
    %150 = vector.extract_strided_slice %149 {offsets = [0, 0], sizes = [4, 128], strides = [1, 1]} : vector<4x512xf32> to vector<4x128xf32>
    %151 = arith.negf %150 : vector<4x128xf32>
    %152 = math.exp %151 : vector<4x128xf32>
    %cst_49 = arith.constant 1.000000e+00 : f32
    %153 = vector.broadcast %cst_49 : f32 to vector<4x128xf32>
    %154 = arith.addf %153, %152 : vector<4x128xf32>
    %155 = arith.divf %153, %154 : vector<4x128xf32>
    %156 = vector.extract_strided_slice %149 {offsets = [0, 128], sizes = [4, 128], strides = [1, 1]} : vector<4x512xf32> to vector<4x128xf32>
    %157 = arith.negf %156 : vector<4x128xf32>
    %158 = math.exp %157 : vector<4x128xf32>
    %cst_50 = arith.constant 1.000000e+00 : f32
    %159 = vector.broadcast %cst_50 : f32 to vector<4x128xf32>
    %160 = arith.addf %159, %158 : vector<4x128xf32>
    %161 = arith.divf %159, %160 : vector<4x128xf32>
    %162 = vector.extract_strided_slice %149 {offsets = [0, 256], sizes = [4, 128], strides = [1, 1]} : vector<4x512xf32> to vector<4x128xf32>
    %163 = math.tanh %162 : vector<4x128xf32>
    %164 = vector.extract_strided_slice %149 {offsets = [0, 384], sizes = [4, 128], strides = [1, 1]} : vector<4x512xf32> to vector<4x128xf32>
    %165 = arith.negf %164 : vector<4x128xf32>
    %166 = math.exp %165 : vector<4x128xf32>
    %cst_51 = arith.constant 1.000000e+00 : f32
    %167 = vector.broadcast %cst_51 : f32 to vector<4x128xf32>
    %168 = arith.addf %167, %166 : vector<4x128xf32>
    %169 = arith.divf %167, %168 : vector<4x128xf32>
    %170 = arith.mulf %161, %130 : vector<4x128xf32>
    %171 = arith.mulf %155, %163 : vector<4x128xf32>
    %172 = arith.addf %170, %171 : vector<4x128xf32>
    %173 = math.tanh %172 : vector<4x128xf32>
    %174 = arith.mulf %169, %173 : vector<4x128xf32>
    %175 = vector.extract_strided_slice %174 {offsets = [0, 0], sizes = [2, 128], strides = [1, 1]} : vector<4x128xf32> to vector<2x128xf32>
    %c0_52 = arith.constant 0 : index
    %c3 = arith.constant 3 : index
    %c0_53 = arith.constant 0 : index
    %176 = vector.load %arg7[%c0_52, %c3, %c0_53] : memref<2x8x256xf32, #tpu.memory_space<vmem>>, vector<2x1x128xf32>
    %177 = vector.shape_cast %176 : vector<2x1x128xf32> to vector<2x128xf32>
    %178 = vector.shape_cast %175 : vector<2x128xf32> to vector<2x1x128xf32>
    tpu.vector_store %arg7[%c0_52, %c3, %c0_53], %178 {strides = array<i32>} : memref<2x8x256xf32, #tpu.memory_space<vmem>>, vector<2x1x128xf32>,
    %179 = vector.extract_strided_slice %174 {offsets = [2, 0], sizes = [2, 128], strides = [1, 1]} : vector<4x128xf32> to vector<2x128xf32>
    %c0_54 = arith.constant 0 : index
    %c4_55 = arith.constant 4 : index
    %c128_56 = arith.constant 128 : index
    %180 = vector.load %arg7[%c0_54, %c4_55, %c128_56] : memref<2x8x256xf32, #tpu.memory_space<vmem>>, vector<2x1x128xf32>
    %181 = vector.shape_cast %180 : vector<2x1x128xf32> to vector<2x128xf32>
    %182 = vector.shape_cast %179 : vector<2x128xf32> to vector<2x1x128xf32>
    tpu.vector_store %arg7[%c0_54, %c4_55, %c128_56], %182 {strides = array<i32>} : memref<2x8x256xf32, #tpu.memory_space<vmem>>, vector<2x1x128xf32>,
    %c8_57 = arith.constant 8 : index
    %c0_58 = arith.constant 0 : index
    %183 = vector.load %arg12[%c8_57, %c0_58] : memref<16x1024xf32, #tpu.memory_space<vmem>>, vector<2x512xf32>
    %c6_59 = arith.constant 6 : index
    %c512_60 = arith.constant 512 : index
    %184 = vector.load %arg12[%c6_59, %c512_60] : memref<16x1024xf32, #tpu.memory_space<vmem>>, vector<2x512xf32>
    %185 = tpu.concatenate %183, %184 in 0 : vector<2x512xf32>, vector<2x512xf32> -> vector<4x512xf32>
    %186 = tpu.concatenate %174, %174 in 1 : vector<4x128xf32>, vector<4x128xf32> -> vector<4x256xf32>
    %cst_61 = arith.constant 0.000000e+00 : f32
    %187 = vector.broadcast %cst_61 : f32 to vector<4x256xf32>
    %188 = arith.select %12, %186, %187 : vector<4x256xi1>, vector<4x256xf32>
    %189 = arith.truncf %188 : vector<4x256xf32> to vector<4x256xbf16>
    %cst_62 = arith.constant dense<0.000000e+00> : vector<4x512xf32>
    %190 = tpu.matmul %189, %4, %cst_62 {dimension_numbers = #tpu.dot_dimension_numbers<[1], [0], [0], [1], [0, 0, 1, 1], [], []>} : vector<4x256xbf16>, vector<256x512xbf16>, vector<4x512xf32> -> vector<4x512xf32>
    %191 = arith.addf %185, %190 : vector<4x512xf32>
    %192 = vector.extract_strided_slice %191 {offsets = [0, 0], sizes = [4, 128], strides = [1, 1]} : vector<4x512xf32> to vector<4x128xf32>
    %193 = arith.negf %192 : vector<4x128xf32>
    %194 = math.exp %193 : vector<4x128xf32>
    %cst_63 = arith.constant 1.000000e+00 : f32
    %195 = vector.broadcast %cst_63 : f32 to vector<4x128xf32>
    %196 = arith.addf %195, %194 : vector<4x128xf32>
    %197 = arith.divf %195, %196 : vector<4x128xf32>
    %198 = vector.extract_strided_slice %191 {offsets = [0, 128], sizes = [4, 128], strides = [1, 1]} : vector<4x512xf32> to vector<4x128xf32>
    %199 = arith.negf %198 : vector<4x128xf32>
    %200 = math.exp %199 : vector<4x128xf32>
    %cst_64 = arith.constant 1.000000e+00 : f32
    %201 = vector.broadcast %cst_64 : f32 to vector<4x128xf32>
    %202 = arith.addf %201, %200 : vector<4x128xf32>
    %203 = arith.divf %201, %202 : vector<4x128xf32>
    %204 = vector.extract_strided_slice %191 {offsets = [0, 256], sizes = [4, 128], strides = [1, 1]} : vector<4x512xf32> to vector<4x128xf32>
    %205 = math.tanh %204 : vector<4x128xf32>
    %206 = vector.extract_strided_slice %191 {offsets = [0, 384], sizes = [4, 128], strides = [1, 1]} : vector<4x512xf32> to vector<4x128xf32>
    %207 = arith.negf %206 : vector<4x128xf32>
    %208 = math.exp %207 : vector<4x128xf32>
    %cst_65 = arith.constant 1.000000e+00 : f32
    %209 = vector.broadcast %cst_65 : f32 to vector<4x128xf32>
    %210 = arith.addf %209, %208 : vector<4x128xf32>
    %211 = arith.divf %209, %210 : vector<4x128xf32>
    %212 = arith.mulf %203, %172 : vector<4x128xf32>
    %213 = arith.mulf %197, %205 : vector<4x128xf32>
    %214 = arith.addf %212, %213 : vector<4x128xf32>
    %215 = math.tanh %214 : vector<4x128xf32>
    %216 = arith.mulf %211, %215 : vector<4x128xf32>
    %217 = vector.extract_strided_slice %216 {offsets = [0, 0], sizes = [2, 128], strides = [1, 1]} : vector<4x128xf32> to vector<2x128xf32>
    %c0_66 = arith.constant 0 : index
    %c4_67 = arith.constant 4 : index
    %c0_68 = arith.constant 0 : index
    %218 = vector.load %arg7[%c0_66, %c4_67, %c0_68] : memref<2x8x256xf32, #tpu.memory_space<vmem>>, vector<2x1x128xf32>
    %219 = vector.shape_cast %218 : vector<2x1x128xf32> to vector<2x128xf32>
    %220 = vector.shape_cast %217 : vector<2x128xf32> to vector<2x1x128xf32>
    tpu.vector_store %arg7[%c0_66, %c4_67, %c0_68], %220 {strides = array<i32>} : memref<2x8x256xf32, #tpu.memory_space<vmem>>, vector<2x1x128xf32>,
    %221 = vector.extract_strided_slice %216 {offsets = [2, 0], sizes = [2, 128], strides = [1, 1]} : vector<4x128xf32> to vector<2x128xf32>
    %c0_69 = arith.constant 0 : index
    %c3_70 = arith.constant 3 : index
    %c128_71 = arith.constant 128 : index
    %222 = vector.load %arg7[%c0_69, %c3_70, %c128_71] : memref<2x8x256xf32, #tpu.memory_space<vmem>>, vector<2x1x128xf32>
    %223 = vector.shape_cast %222 : vector<2x1x128xf32> to vector<2x128xf32>
    %224 = vector.shape_cast %221 : vector<2x128xf32> to vector<2x1x128xf32>
    tpu.vector_store %arg7[%c0_69, %c3_70, %c128_71], %224 {strides = array<i32>} : memref<2x8x256xf32, #tpu.memory_space<vmem>>, vector<2x1x128xf32>,
    %c10_72 = arith.constant 10 : index
    %c0_73 = arith.constant 0 : index
    %225 = vector.load %arg12[%c10_72, %c0_73] : memref<16x1024xf32, #tpu.memory_space<vmem>>, vector<2x512xf32>
    %c4_74 = arith.constant 4 : index
    %c512_75 = arith.constant 512 : index
    %226 = vector.load %arg12[%c4_74, %c512_75] : memref<16x1024xf32, #tpu.memory_space<vmem>>, vector<2x512xf32>
    %227 = tpu.concatenate %225, %226 in 0 : vector<2x512xf32>, vector<2x512xf32> -> vector<4x512xf32>
    %228 = tpu.concatenate %216, %216 in 1 : vector<4x128xf32>, vector<4x128xf32> -> vector<4x256xf32>
    %cst_76 = arith.constant 0.000000e+00 : f32
    %229 = vector.broadcast %cst_76 : f32 to vector<4x256xf32>
    %230 = arith.select %12, %228, %229 : vector<4x256xi1>, vector<4x256xf32>
    %231 = arith.truncf %230 : vector<4x256xf32> to vector<4x256xbf16>
    %cst_77 = arith.constant dense<0.000000e+00> : vector<4x512xf32>
    %232 = tpu.matmul %231, %4, %cst_77 {dimension_numbers = #tpu.dot_dimension_numbers<[1], [0], [0], [1], [0, 0, 1, 1], [], []>} : vector<4x256xbf16>, vector<256x512xbf16>, vector<4x512xf32> -> vector<4x512xf32>
    %233 = arith.addf %227, %232 : vector<4x512xf32>
    %234 = vector.extract_strided_slice %233 {offsets = [0, 0], sizes = [4, 128], strides = [1, 1]} : vector<4x512xf32> to vector<4x128xf32>
    %235 = arith.negf %234 : vector<4x128xf32>
    %236 = math.exp %235 : vector<4x128xf32>
    %cst_78 = arith.constant 1.000000e+00 : f32
    %237 = vector.broadcast %cst_78 : f32 to vector<4x128xf32>
    %238 = arith.addf %237, %236 : vector<4x128xf32>
    %239 = arith.divf %237, %238 : vector<4x128xf32>
    %240 = vector.extract_strided_slice %233 {offsets = [0, 128], sizes = [4, 128], strides = [1, 1]} : vector<4x512xf32> to vector<4x128xf32>
    %241 = arith.negf %240 : vector<4x128xf32>
    %242 = math.exp %241 : vector<4x128xf32>
    %cst_79 = arith.constant 1.000000e+00 : f32
    %243 = vector.broadcast %cst_79 : f32 to vector<4x128xf32>
    %244 = arith.addf %243, %242 : vector<4x128xf32>
    %245 = arith.divf %243, %244 : vector<4x128xf32>
    %246 = vector.extract_strided_slice %233 {offsets = [0, 256], sizes = [4, 128], strides = [1, 1]} : vector<4x512xf32> to vector<4x128xf32>
    %247 = math.tanh %246 : vector<4x128xf32>
    %248 = vector.extract_strided_slice %233 {offsets = [0, 384], sizes = [4, 128], strides = [1, 1]} : vector<4x512xf32> to vector<4x128xf32>
    %249 = arith.negf %248 : vector<4x128xf32>
    %250 = math.exp %249 : vector<4x128xf32>
    %cst_80 = arith.constant 1.000000e+00 : f32
    %251 = vector.broadcast %cst_80 : f32 to vector<4x128xf32>
    %252 = arith.addf %251, %250 : vector<4x128xf32>
    %253 = arith.divf %251, %252 : vector<4x128xf32>
    %254 = arith.mulf %245, %214 : vector<4x128xf32>
    %255 = arith.mulf %239, %247 : vector<4x128xf32>
    %256 = arith.addf %254, %255 : vector<4x128xf32>
    %257 = math.tanh %256 : vector<4x128xf32>
    %258 = arith.mulf %253, %257 : vector<4x128xf32>
    %259 = vector.extract_strided_slice %258 {offsets = [0, 0], sizes = [2, 128], strides = [1, 1]} : vector<4x128xf32> to vector<2x128xf32>
    %c0_81 = arith.constant 0 : index
    %c5_82 = arith.constant 5 : index
    %c0_83 = arith.constant 0 : index
    %260 = vector.load %arg7[%c0_81, %c5_82, %c0_83] : memref<2x8x256xf32, #tpu.memory_space<vmem>>, vector<2x1x128xf32>
    %261 = vector.shape_cast %260 : vector<2x1x128xf32> to vector<2x128xf32>
    %262 = vector.shape_cast %259 : vector<2x128xf32> to vector<2x1x128xf32>
    tpu.vector_store %arg7[%c0_81, %c5_82, %c0_83], %262 {strides = array<i32>} : memref<2x8x256xf32, #tpu.memory_space<vmem>>, vector<2x1x128xf32>,
    %263 = vector.extract_strided_slice %258 {offsets = [2, 0], sizes = [2, 128], strides = [1, 1]} : vector<4x128xf32> to vector<2x128xf32>
    %c0_84 = arith.constant 0 : index
    %c2_85 = arith.constant 2 : index
    %c128_86 = arith.constant 128 : index
    %264 = vector.load %arg7[%c0_84, %c2_85, %c128_86] : memref<2x8x256xf32, #tpu.memory_space<vmem>>, vector<2x1x128xf32>
    %265 = vector.shape_cast %264 : vector<2x1x128xf32> to vector<2x128xf32>
    %266 = vector.shape_cast %263 : vector<2x128xf32> to vector<2x1x128xf32>
    tpu.vector_store %arg7[%c0_84, %c2_85, %c128_86], %266 {strides = array<i32>} : memref<2x8x256xf32, #tpu.memory_space<vmem>>, vector<2x1x128xf32>,
    %c12_87 = arith.constant 12 : index
    %c0_88 = arith.constant 0 : index
    %267 = vector.load %arg12[%c12_87, %c0_88] : memref<16x1024xf32, #tpu.memory_space<vmem>>, vector<2x512xf32>
    %c2_89 = arith.constant 2 : index
    %c512_90 = arith.constant 512 : index
    %268 = vector.load %arg12[%c2_89, %c512_90] : memref<16x1024xf32, #tpu.memory_space<vmem>>, vector<2x512xf32>
    %269 = tpu.concatenate %267, %268 in 0 : vector<2x512xf32>, vector<2x512xf32> -> vector<4x512xf32>
    %270 = tpu.concatenate %258, %258 in 1 : vector<4x128xf32>, vector<4x128xf32> -> vector<4x256xf32>
    %cst_91 = arith.constant 0.000000e+00 : f32
    %271 = vector.broadcast %cst_91 : f32 to vector<4x256xf32>
    %272 = arith.select %12, %270, %271 : vector<4x256xi1>, vector<4x256xf32>
    %273 = arith.truncf %272 : vector<4x256xf32> to vector<4x256xbf16>
    %cst_92 = arith.constant dense<0.000000e+00> : vector<4x512xf32>
    %274 = tpu.matmul %273, %4, %cst_92 {dimension_numbers = #tpu.dot_dimension_numbers<[1], [0], [0], [1], [0, 0, 1, 1], [], []>} : vector<4x256xbf16>, vector<256x512xbf16>, vector<4x512xf32> -> vector<4x512xf32>
    %275 = arith.addf %269, %274 : vector<4x512xf32>
    %276 = vector.extract_strided_slice %275 {offsets = [0, 0], sizes = [4, 128], strides = [1, 1]} : vector<4x512xf32> to vector<4x128xf32>
    %277 = arith.negf %276 : vector<4x128xf32>
    %278 = math.exp %277 : vector<4x128xf32>
    %cst_93 = arith.constant 1.000000e+00 : f32
    %279 = vector.broadcast %cst_93 : f32 to vector<4x128xf32>
    %280 = arith.addf %279, %278 : vector<4x128xf32>
    %281 = arith.divf %279, %280 : vector<4x128xf32>
    %282 = vector.extract_strided_slice %275 {offsets = [0, 128], sizes = [4, 128], strides = [1, 1]} : vector<4x512xf32> to vector<4x128xf32>
    %283 = arith.negf %282 : vector<4x128xf32>
    %284 = math.exp %283 : vector<4x128xf32>
    %cst_94 = arith.constant 1.000000e+00 : f32
    %285 = vector.broadcast %cst_94 : f32 to vector<4x128xf32>
    %286 = arith.addf %285, %284 : vector<4x128xf32>
    %287 = arith.divf %285, %286 : vector<4x128xf32>
    %288 = vector.extract_strided_slice %275 {offsets = [0, 256], sizes = [4, 128], strides = [1, 1]} : vector<4x512xf32> to vector<4x128xf32>
    %289 = math.tanh %288 : vector<4x128xf32>
    %290 = vector.extract_strided_slice %275 {offsets = [0, 384], sizes = [4, 128], strides = [1, 1]} : vector<4x512xf32> to vector<4x128xf32>
    %291 = arith.negf %290 : vector<4x128xf32>
    %292 = math.exp %291 : vector<4x128xf32>
    %cst_95 = arith.constant 1.000000e+00 : f32
    %293 = vector.broadcast %cst_95 : f32 to vector<4x128xf32>
    %294 = arith.addf %293, %292 : vector<4x128xf32>
    %295 = arith.divf %293, %294 : vector<4x128xf32>
    %296 = arith.mulf %287, %256 : vector<4x128xf32>
    %297 = arith.mulf %281, %289 : vector<4x128xf32>
    %298 = arith.addf %296, %297 : vector<4x128xf32>
    %299 = math.tanh %298 : vector<4x128xf32>
    %300 = arith.mulf %295, %299 : vector<4x128xf32>
    %301 = vector.extract_strided_slice %300 {offsets = [0, 0], sizes = [2, 128], strides = [1, 1]} : vector<4x128xf32> to vector<2x128xf32>
    %c0_96 = arith.constant 0 : index
    %c6_97 = arith.constant 6 : index
    %c0_98 = arith.constant 0 : index
    %302 = vector.load %arg7[%c0_96, %c6_97, %c0_98] : memref<2x8x256xf32, #tpu.memory_space<vmem>>, vector<2x1x128xf32>
    %303 = vector.shape_cast %302 : vector<2x1x128xf32> to vector<2x128xf32>
    %304 = vector.shape_cast %301 : vector<2x128xf32> to vector<2x1x128xf32>
    tpu.vector_store %arg7[%c0_96, %c6_97, %c0_98], %304 {strides = array<i32>} : memref<2x8x256xf32, #tpu.memory_space<vmem>>, vector<2x1x128xf32>,
    %305 = vector.extract_strided_slice %300 {offsets = [2, 0], sizes = [2, 128], strides = [1, 1]} : vector<4x128xf32> to vector<2x128xf32>
    %c0_99 = arith.constant 0 : index
    %c1_100 = arith.constant 1 : index
    %c128_101 = arith.constant 128 : index
    %306 = vector.load %arg7[%c0_99, %c1_100, %c128_101] : memref<2x8x256xf32, #tpu.memory_space<vmem>>, vector<2x1x128xf32>
    %307 = vector.shape_cast %306 : vector<2x1x128xf32> to vector<2x128xf32>
    %308 = vector.shape_cast %305 : vector<2x128xf32> to vector<2x1x128xf32>
    tpu.vector_store %arg7[%c0_99, %c1_100, %c128_101], %308 {strides = array<i32>} : memref<2x8x256xf32, #tpu.memory_space<vmem>>, vector<2x1x128xf32>,
    %c14_102 = arith.constant 14 : index
    %c0_103 = arith.constant 0 : index
    %309 = vector.load %arg12[%c14_102, %c0_103] : memref<16x1024xf32, #tpu.memory_space<vmem>>, vector<2x512xf32>
    %c0_104 = arith.constant 0 : index
    %c512_105 = arith.constant 512 : index
    %310 = vector.load %arg12[%c0_104, %c512_105] : memref<16x1024xf32, #tpu.memory_space<vmem>>, vector<2x512xf32>
    %311 = tpu.concatenate %309, %310 in 0 : vector<2x512xf32>, vector<2x512xf32> -> vector<4x512xf32>
    %312 = tpu.concatenate %300, %300 in 1 : vector<4x128xf32>, vector<4x128xf32> -> vector<4x256xf32>
    %cst_106 = arith.constant 0.000000e+00 : f32
    %313 = vector.broadcast %cst_106 : f32 to vector<4x256xf32>
    %314 = arith.select %12, %312, %313 : vector<4x256xi1>, vector<4x256xf32>
    %315 = arith.truncf %314 : vector<4x256xf32> to vector<4x256xbf16>
    %cst_107 = arith.constant dense<0.000000e+00> : vector<4x512xf32>
    %316 = tpu.matmul %315, %4, %cst_107 {dimension_numbers = #tpu.dot_dimension_numbers<[1], [0], [0], [1], [0, 0, 1, 1], [], []>} : vector<4x256xbf16>, vector<256x512xbf16>, vector<4x512xf32> -> vector<4x512xf32>
    %317 = arith.addf %311, %316 : vector<4x512xf32>
    %318 = vector.extract_strided_slice %317 {offsets = [0, 0], sizes = [4, 128], strides = [1, 1]} : vector<4x512xf32> to vector<4x128xf32>
    %319 = arith.negf %318 : vector<4x128xf32>
    %320 = math.exp %319 : vector<4x128xf32>
    %cst_108 = arith.constant 1.000000e+00 : f32
    %321 = vector.broadcast %cst_108 : f32 to vector<4x128xf32>
    %322 = arith.addf %321, %320 : vector<4x128xf32>
    %323 = arith.divf %321, %322 : vector<4x128xf32>
    %324 = vector.extract_strided_slice %317 {offsets = [0, 128], sizes = [4, 128], strides = [1, 1]} : vector<4x512xf32> to vector<4x128xf32>
    %325 = arith.negf %324 : vector<4x128xf32>
    %326 = math.exp %325 : vector<4x128xf32>
    %cst_109 = arith.constant 1.000000e+00 : f32
    %327 = vector.broadcast %cst_109 : f32 to vector<4x128xf32>
    %328 = arith.addf %327, %326 : vector<4x128xf32>
    %329 = arith.divf %327, %328 : vector<4x128xf32>
    %330 = vector.extract_strided_slice %317 {offsets = [0, 256], sizes = [4, 128], strides = [1, 1]} : vector<4x512xf32> to vector<4x128xf32>
    %331 = math.tanh %330 : vector<4x128xf32>
    %332 = vector.extract_strided_slice %317 {offsets = [0, 384], sizes = [4, 128], strides = [1, 1]} : vector<4x512xf32> to vector<4x128xf32>
    %333 = arith.negf %332 : vector<4x128xf32>
    %334 = math.exp %333 : vector<4x128xf32>
    %cst_110 = arith.constant 1.000000e+00 : f32
    %335 = vector.broadcast %cst_110 : f32 to vector<4x128xf32>
    %336 = arith.addf %335, %334 : vector<4x128xf32>
    %337 = arith.divf %335, %336 : vector<4x128xf32>
    %338 = arith.mulf %329, %298 : vector<4x128xf32>
    %339 = arith.mulf %323, %331 : vector<4x128xf32>
    %340 = arith.addf %338, %339 : vector<4x128xf32>
    %341 = math.tanh %340 : vector<4x128xf32>
    %342 = arith.mulf %337, %341 : vector<4x128xf32>
    %343 = vector.extract_strided_slice %342 {offsets = [0, 0], sizes = [2, 128], strides = [1, 1]} : vector<4x128xf32> to vector<2x128xf32>
    %c0_111 = arith.constant 0 : index
    %c7_112 = arith.constant 7 : index
    %c0_113 = arith.constant 0 : index
    %344 = vector.load %arg7[%c0_111, %c7_112, %c0_113] : memref<2x8x256xf32, #tpu.memory_space<vmem>>, vector<2x1x128xf32>
    %345 = vector.shape_cast %344 : vector<2x1x128xf32> to vector<2x128xf32>
    %346 = vector.shape_cast %343 : vector<2x128xf32> to vector<2x1x128xf32>
    tpu.vector_store %arg7[%c0_111, %c7_112, %c0_113], %346 {strides = array<i32>} : memref<2x8x256xf32, #tpu.memory_space<vmem>>, vector<2x1x128xf32>,
    %347 = vector.extract_strided_slice %342 {offsets = [2, 0], sizes = [2, 128], strides = [1, 1]} : vector<4x128xf32> to vector<2x128xf32>
    %c0_114 = arith.constant 0 : index
    %c0_115 = arith.constant 0 : index
    %c128_116 = arith.constant 128 : index
    %348 = vector.load %arg7[%c0_114, %c0_115, %c128_116] : memref<2x8x256xf32, #tpu.memory_space<vmem>>, vector<2x1x128xf32>
    %349 = vector.shape_cast %348 : vector<2x1x128xf32> to vector<2x128xf32>
    %350 = vector.shape_cast %347 : vector<2x128xf32> to vector<2x1x128xf32>
    tpu.vector_store %arg7[%c0_114, %c0_115, %c128_116], %350 {strides = array<i32>} : memref<2x8x256xf32, #tpu.memory_space<vmem>>, vector<2x1x128xf32>,
    %351 = vector.extract_strided_slice %342 {offsets = [0, 0], sizes = [2, 128], strides = [1, 1]} : vector<4x128xf32> to vector<2x128xf32>
    %c0_117 = arith.constant 0 : index
    %c0_118 = arith.constant 0 : index
    %c0_119 = arith.constant 0 : index
    %352 = vector.load %arg8[%c0_117, %c0_118, %c0_119] : memref<2x2x128xf32, #tpu.memory_space<vmem>>, vector<1x2x128xf32>
    %353 = vector.shape_cast %352 : vector<1x2x128xf32> to vector<2x128xf32>
    %354 = vector.shape_cast %351 : vector<2x128xf32> to vector<1x2x128xf32>
    tpu.vector_store %arg8[%c0_117, %c0_118, %c0_119], %354 {strides = array<i32>} : memref<2x2x128xf32, #tpu.memory_space<vmem>>, vector<1x2x128xf32>,
    %355 = vector.extract_strided_slice %342 {offsets = [2, 0], sizes = [2, 128], strides = [1, 1]} : vector<4x128xf32> to vector<2x128xf32>
    %c1_120 = arith.constant 1 : index
    %c0_121 = arith.constant 0 : index
    %c0_122 = arith.constant 0 : index
    %356 = vector.load %arg8[%c1_120, %c0_121, %c0_122] : memref<2x2x128xf32, #tpu.memory_space<vmem>>, vector<1x2x128xf32>
    %357 = vector.shape_cast %356 : vector<1x2x128xf32> to vector<2x128xf32>
    %358 = vector.shape_cast %355 : vector<2x128xf32> to vector<1x2x128xf32>
    tpu.vector_store %arg8[%c1_120, %c0_121, %c0_122], %358 {strides = array<i32>} : memref<2x2x128xf32, #tpu.memory_space<vmem>>, vector<1x2x128xf32>,
    %359 = vector.extract_strided_slice %340 {offsets = [0, 0], sizes = [2, 128], strides = [1, 1]} : vector<4x128xf32> to vector<2x128xf32>
    %c0_123 = arith.constant 0 : index
    %c0_124 = arith.constant 0 : index
    %c0_125 = arith.constant 0 : index
    %360 = vector.load %arg9[%c0_123, %c0_124, %c0_125] : memref<2x2x128xf32, #tpu.memory_space<vmem>>, vector<1x2x128xf32>
    %361 = vector.shape_cast %360 : vector<1x2x128xf32> to vector<2x128xf32>
    %362 = vector.shape_cast %359 : vector<2x128xf32> to vector<1x2x128xf32>
    tpu.vector_store %arg9[%c0_123, %c0_124, %c0_125], %362 {strides = array<i32>} : memref<2x2x128xf32, #tpu.memory_space<vmem>>, vector<1x2x128xf32>,
    %363 = vector.extract_strided_slice %340 {offsets = [2, 0], sizes = [2, 128], strides = [1, 1]} : vector<4x128xf32> to vector<2x128xf32>
    %c1_126 = arith.constant 1 : index
    %c0_127 = arith.constant 0 : index
    %c0_128 = arith.constant 0 : index
    %364 = vector.load %arg9[%c1_126, %c0_127, %c0_128] : memref<2x2x128xf32, #tpu.memory_space<vmem>>, vector<1x2x128xf32>
    %365 = vector.shape_cast %364 : vector<1x2x128xf32> to vector<2x128xf32>
    %366 = vector.shape_cast %363 : vector<2x128xf32> to vector<1x2x128xf32>
    tpu.vector_store %arg9[%c1_126, %c0_127, %c0_128], %366 {strides = array<i32>} : memref<2x2x128xf32, #tpu.memory_space<vmem>>, vector<1x2x128xf32>,
    %c0_129 = arith.constant 0 : index
    %c0_130 = arith.constant 0 : index
    %367 = vector.load %arg2[%c0_129, %c0_130] : memref<2x128xbf16, #tpu.memory_space<vmem>>, vector<2x128xbf16>
    %c0_131 = arith.constant 0 : index
    %c0_132 = arith.constant 0 : index
    %368 = vector.load %arg5[%c0_131, %c0_132] : memref<128x128xbf16, #tpu.memory_space<vmem>>, vector<128x128xbf16>
    %cst_133 = arith.constant dense<0.000000e+00> : vector<2x128xf32>
    %369 = tpu.matmul %367, %368, %cst_133 {dimension_numbers = #tpu.dot_dimension_numbers<[1], [0], [0], [1], [0, 0, 1, 1], [], []>} : vector<2x128xbf16>, vector<128x128xbf16>, vector<2x128xf32> -> vector<2x128xf32>
    %cst_134 = arith.constant 0.000000e+00 : f32
    %370 = vector.broadcast %cst_134 : f32 to vector<2x128xf32>
    %371 = arith.cmpf ogt, %369, %370 : vector<2x128xf32>
    %cst_135 = arith.constant 0.000000e+00 : f32
    %372 = vector.broadcast %cst_135 : f32 to vector<2x128xf32>
    %373 = arith.minimumf %369, %372 : vector<2x128xf32>
    %374 = math.exp %373 : vector<2x128xf32>
    %cst_136 = arith.constant 1.000000e+00 : f32
    %375 = vector.broadcast %cst_136 : f32 to vector<2x128xf32>
    %376 = arith.subf %374, %375 : vector<2x128xf32>
    %377 = arith.select %371, %369, %376 : vector<2x128xi1>, vector<2x128xf32>
    %c0_137 = arith.constant 0 : index
    %c0_138 = arith.constant 0 : index
    %378 = vector.load %arg10[%c0_137, %c0_138] : memref<2x128xf32, #tpu.memory_space<vmem>>, vector<2x128xf32>
    tpu.vector_store %arg10[%c0_137, %c0_138], %377 {strides = array<i32>} : memref<2x128xf32, #tpu.memory_space<vmem>>, vector<2x128xf32>,
    %379 = arith.truncf %377 : vector<2x128xf32> to vector<2x128xbf16>
    %c0_139 = arith.constant 0 : index
    %c0_140 = arith.constant 0 : index
    %380 = vector.load %arg6[%c0_139, %c0_140] : memref<128x128xbf16, #tpu.memory_space<vmem>>, vector<128x128xbf16>
    %cst_141 = arith.constant dense<0.000000e+00> : vector<2x128xf32>
    %381 = tpu.matmul %379, %380, %cst_141 {dimension_numbers = #tpu.dot_dimension_numbers<[1], [0], [0], [1], [0, 0, 1, 1], [], []>} : vector<2x128xbf16>, vector<128x128xbf16>, vector<2x128xf32> -> vector<2x128xf32>
    %cst_142 = arith.constant 0.000000e+00 : f32
    %382 = vector.broadcast %cst_142 : f32 to vector<2x128xf32>
    %383 = arith.cmpf ogt, %381, %382 : vector<2x128xf32>
    %cst_143 = arith.constant 0.000000e+00 : f32
    %384 = vector.broadcast %cst_143 : f32 to vector<2x128xf32>
    %385 = arith.minimumf %381, %384 : vector<2x128xf32>
    %386 = math.exp %385 : vector<2x128xf32>
    %cst_144 = arith.constant 1.000000e+00 : f32
    %387 = vector.broadcast %cst_144 : f32 to vector<2x128xf32>
    %388 = arith.subf %386, %387 : vector<2x128xf32>
    %389 = arith.select %383, %381, %388 : vector<2x128xi1>, vector<2x128xf32>
    %c0_145 = arith.constant 0 : index
    %c0_146 = arith.constant 0 : index
    %390 = vector.load %arg11[%c0_145, %c0_146] : memref<2x128xf32, #tpu.memory_space<vmem>>, vector<2x128xf32>
    tpu.vector_store %arg11[%c0_145, %c0_146], %389 {strides = array<i32>} : memref<2x128xf32, #tpu.memory_space<vmem>>, vector<2x128xf32>,
    return
  }
  func.func @transform_0(%arg0: i32) -> (i32, i32) {
    %c0_i32 = arith.constant 0 : i32
    %c0_i32_0 = arith.constant 0 : i32
    %c0_i32_1 = arith.constant 0 : i32
    return %c0_i32, %c0_i32_0 : i32, i32
  }
  func.func @transform_1(%arg0: i32) -> (i32, i32) {
    %c0_i32 = arith.constant 0 : i32
    %c0_i32_0 = arith.constant 0 : i32
    %c0_i32_1 = arith.constant 0 : i32
    return %c0_i32, %c0_i32_0 : i32, i32
  }
  func.func @transform_2(%arg0: i32) -> (i32, i32) {
    %c0_i32 = arith.constant 0 : i32
    %c0_i32_0 = arith.constant 0 : i32
    %c0_i32_1 = arith.constant 0 : i32
    return %c0_i32, %c0_i32_0 : i32, i32
  }
  func.func @transform_3(%arg0: i32) -> (i32, i32) {
    %c0_i32 = arith.constant 0 : i32
    %c0_i32_0 = arith.constant 0 : i32
    %c0_i32_1 = arith.constant 0 : i32
    return %c0_i32, %c0_i32_0 : i32, i32
  }
  func.func @transform_4(%arg0: i32) -> (i32, i32) {
    %c0_i32 = arith.constant 0 : i32
    %c0_i32_0 = arith.constant 0 : i32
    %c0_i32_1 = arith.constant 0 : i32
    return %c0_i32, %c0_i32_0 : i32, i32
  }
  func.func @transform_5(%arg0: i32) -> (i32, i32) {
    %c0_i32 = arith.constant 0 : i32
    %c0_i32_0 = arith.constant 0 : i32
    %c0_i32_1 = arith.constant 0 : i32
    return %c0_i32, %c0_i32_0 : i32, i32
  }
  func.func @transform_6(%arg0: i32) -> (i32, i32, i32) {
    %c0_i32 = arith.constant 0 : i32
    %c0_i32_0 = arith.constant 0 : i32
    %c0_i32_1 = arith.constant 0 : i32
    %c0_i32_2 = arith.constant 0 : i32
    return %c0_i32, %c0_i32_0, %c0_i32_1 : i32, i32, i32
  }
  func.func @transform_7(%arg0: i32) -> (i32, i32, i32) {
    %c0_i32 = arith.constant 0 : i32
    %c0_i32_0 = arith.constant 0 : i32
    %c0_i32_1 = arith.constant 0 : i32
    %c0_i32_2 = arith.constant 0 : i32
    return %c0_i32, %c0_i32_0, %c0_i32_1 : i32, i32, i32
  }
  func.func @transform_8(%arg0: i32) -> (i32, i32, i32) {
    %c0_i32 = arith.constant 0 : i32
    %c0_i32_0 = arith.constant 0 : i32
    %c0_i32_1 = arith.constant 0 : i32
    %c0_i32_2 = arith.constant 0 : i32
    return %c0_i32, %c0_i32_0, %c0_i32_1 : i32, i32, i32
  }
  func.func @transform_9(%arg0: i32) -> (i32, i32) {
    %c0_i32 = arith.constant 0 : i32
    %c0_i32_0 = arith.constant 0 : i32
    %c0_i32_1 = arith.constant 0 : i32
    return %c0_i32, %c0_i32_0 : i32, i32
  }
  func.func @transform_10(%arg0: i32) -> (i32, i32) {
    %c0_i32 = arith.constant 0 : i32
    %c0_i32_0 = arith.constant 0 : i32
    %c0_i32_1 = arith.constant 0 : i32
    return %c0_i32, %c0_i32_0 : i32, i32
  }
}

</mosaic_0001>

<bundles_post_ra>
// kernel: lstm_al_forward.1
= control target key start
LH: loop header
LB: loop body
LE: loop exit
PB: predicated region body
PF: predicated region fallthrough
CT: control target
= control target key end

     0   :  { %16 = vsyncpa [#allocation4], 0  ;;  %s5256_s0 = inlined_call_operand.vmem [shape: bf16[16,128], index: 0, kind: input, shape index: {}]   ;;  %s5257_s1 = inlined_call_operand.vmem [shape: bf16[2,128], index: 1, kind: input, shape index: {}]   ;;  %s5258_s2 = inlined_call_operand.hbm [shape: bf16[128,1024], index: 2, kind: input, shape index: {}]   ;;  %s5259_s3 = inlined_call_operand.hbm [shape: bf16[256,512], index: 3, kind: input, shape index: {}]   ;;  %s5260_s4 = inlined_call_operand.hbm [shape: bf16[128,128], index: 4, kind: input, shape index: {}]   ;;  %s5261_s5 = inlined_call_operand.hbm [shape: bf16[128,128], index: 5, kind: input, shape index: {}]   ;;  %s5262_s6 = inlined_call_operand.hbm [shape: f32[2,8,256], index: 6, kind: output, shape index: {0}]   ;;  %s5263_s7 = inlined_call_operand.vmem [shape: f32[2,2,128], index: 7, kind: output, shape index: {1}]   ;;  %s5264_s8 = inlined_call_operand.hbm [shape: f32[2,2,128], index: 8, kind: output, shape index: {2}]   ;;  %s5265_s9 = inlined_call_operand.hbm [shape: f32[2,128], index: 9, kind: output, shape index: {3}]   ;;  %s5266_s10 = inlined_call_operand.hbm [shape: f32[2,128], index: 10, kind: output, shape index: {4}]  }
   0x1   :  { %17 = vsyncpa [#allocation7], 0 }
   0x2   :  { %18 = vsyncpa [#allocation10], 0 }
   0x3   :  { %19 = vsyncpa [#allocation5], 0 }
   0x4   :  { %20 = vsyncpa [#allocation13], 0  ;;  %s43_s15 = sshll.u32 %s5259_s3, 4  ;;  %s44_s15 = int_to_ptr.hbm [resolvable:$true] %s43_s15 }
   0x5   :  { %21 = vsyncpa [#allocation16], 0  ;;  %s4283_s16 = smov [#allocation6]   ;;  %s30_s20 = sshll.u32 %s5258_s2, 4  ;;  %s31_s20 = int_to_ptr.hbm [resolvable:$true] %s30_s20 }
   0x6   :  { %s45_s17 = sshll.u32 %s4283_s16, 4  ;;  %s4284_s21 = smov 256   ;;  %s46_s17 = int_to_ptr.vmem [resolvable:$true] %s45_s17 }
   0x7   :  { %s4285_s22 = smov 16   ;;  %s4286_s23 = smov [#allocation3]  }
   0x8   :  { %51 = dma.hbm_to_vmem [thread:$0]  %s44_s15, 8192, %s46_s17, [#allocation7], %s4284_s21, %s4284_s21, %s4285_s22  }
   0x9   :  { %s32_s24 = sshll.u32 %s4286_s23, 4  ;;  %s4287_s3 = smov 512   ;;  %s33_s24 = int_to_ptr.vmem [resolvable:$true] %s32_s24 }
   0xa   :  { %s4288_s25 = smov 32   ;;  %s56_s28 = sshll.u32 %s5260_s4, 4  ;;  %s57_s28 = int_to_ptr.hbm [resolvable:$true] %s56_s28 }
   0xb   :  { %38 = dma.hbm_to_vmem [thread:$0]  %s31_s20, 8192, %s33_s24, [#allocation4], %s4287_s3, %s4287_s3, %s4288_s25  }
   0xc   :  { %s4289_s2 = smov [#allocation8]   ;;  %s69_s12 = sshll.u32 %s5261_s5, 4  ;;  %s70_s12 = int_to_ptr.hbm [resolvable:$true] %s69_s12 }
   0xd   :  { %s58_s29 = sshll.u32 %s4289_s2, 4  ;;  %s4290_s13 = smov 64   ;;  %s59_s29 = int_to_ptr.vmem [resolvable:$true] %s58_s29 }
   0xe   :  { %s4291_s14 = smov 4   ;;  %s4292_s15 = smov [#allocation9]  }
   0xf   :  { %64 = dma.hbm_to_vmem [thread:$0]  %s57_s28, 1024, %s59_s29, [#allocation7], %s4290_s13, %s4290_s13, %s4291_s14  }
  0x10   :  { %s71_s16 = sshll.u32 %s4292_s15, 4  ;;  %s72_s16 = int_to_ptr.vmem [resolvable:$true] %s71_s16 }
  0x11   :  { %77 = dma.hbm_to_vmem [thread:$0]  %s70_s12, 1024, %s72_s16, [#allocation10], %s4290_s13, %s4290_s13, %s4291_s14  }
  0x12   :  { %4271 = dma.done.wait [#allocation4], 8192  }
  0x13   :  { %4272 = vsyncadd [#allocation4], 4294959104 }
  0x14   :  { %4273 = dma.done.wait [#allocation7], 9216  }
  0x15   :  { %4274 = vsyncadd [#allocation7], 4294958080 }
  0x16   :  { %4275 = dma.done.wait [#allocation10], 1024  }
  0x17   :  { %4276 = vsyncadd [#allocation10], 4294966272  ;;  %v3240_v0 = vld [vmem:[#allocation3 + $0x1c0] sm:$0xf]  ;;  %v3842_v2 = vld [vmem:[#allocation3 + $0x1c4] sm:$0xf] }
  0x18   :  { %v3846_v1 = vld [vmem:[#allocation3 + $0x1dc] sm:$0xf0]  ;;  %v3242_v4 = vld [vmem:[#allocation3 + $0x1e0] sm:$0xf0]  ;;  %v3248_v5 = vld [vmem:[#allocation3 + $0x1c8] sm:$0xf] }
  0x19   :  { %v3241_v3 = vor.u32 %v3846_v1, %v3240_v0  ;;  %v3847_v6 = vld [vmem:[#allocation3 + $0x1e4] sm:$0xf0]  ;;  %v3245_v7 = vor.u32 %v3842_v2, %v3242_v4  ;;  %v3843_v9 = vld [vmem:[#allocation3 + $0x1cc] sm:$0xf]  ;;  %v3208_v11 = vld [vmem:[#allocation3 + $0x180] sm:$0xf] }
  0x1a   :  { %v3249_v8 = vor.u32 %v3847_v6, %v3248_v5  ;;  %v3250_v10 = vld [vmem:[#allocation3 + $0x1e8] sm:$0xf0]  ;;  %v3838_v13 = vld [vmem:[#allocation3 + $0x19c] sm:$0xf0]  ;;  %v3834_v14 = vld [vmem:[#allocation3 + $0x184] sm:$0xf] }
  0x1b   :  { %486 = vmatpush.bf16.msra.mxu0 %v3241_v3  ;;  %v3253_v12 = vor.u32 %v3843_v9, %v3250_v10  ;;  %v3210_v15 = vld [vmem:[#allocation3 + $0x1a0] sm:$0xf0]  ;;  %500 = vmatpush.bf16.msra.mxu1 %v3245_v7  ;;  %v3209_v16 = vor.u32 %v3838_v13, %v3208_v11  ;;  %v3216_v18 = vld [vmem:[#allocation3 + $0x188] sm:$0xf]  ;;  %v3835_v20 = vld [vmem:[#allocation3 + $0x18c] sm:$0xf] }
  0x1c   :  { %514 = vmatpush.bf16.msra.mxu2 %v3249_v8  ;;  %v3213_v17 = vor.u32 %v3834_v14, %v3210_v15  ;;  %v3839_v19 = vld [vmem:[#allocation3 + $0x1a4] sm:$0xf0]  ;;  %v3218_v22 = vld [vmem:[#allocation3 + $0x1a8] sm:$0xf0]  ;;  %v3176_v23 = vld [vmem:[#allocation3 + $0x140] sm:$0xf] }
  0x1d   :  { %528 = vmatpush.bf16.msra.mxu3 %v3253_v12  ;;  %v3217_v21 = vor.u32 %v3839_v19, %v3216_v18  ;;  %v3830_v24 = vld [vmem:[#allocation3 + $0x15c] sm:$0xf0]  ;;  %v3221_v25 = vor.u32 %v3835_v20, %v3218_v22  ;;  %v3826_v26 = vld [vmem:[#allocation3 + $0x144] sm:$0xf]  ;;  %v3184_v28 = vld [vmem:[#allocation3 + $0x148] sm:$0xf] }
  0x1e   :  { %v3178_v27 = vld [vmem:[#allocation3 + $0x160] sm:$0xf0]  ;;  %v3177_v29 = vor.u32 %v3830_v24, %v3176_v23  ;;  %v3831_v30 = vld [vmem:[#allocation3 + $0x164] sm:$0xf0]  ;;  %v3827_v31 = vld [vmem:[#allocation3 + $0x14c] sm:$0xf] }
  0x1f   :  { %487 = vmatpush.bf16.msra.mxu0 %v3209_v16  ;;  %v3186_v32 = vld [vmem:[#allocation3 + $0x168] sm:$0xf0]  ;;  %501 = vmatpush.bf16.msra.mxu1 %v3213_v17  ;;  %v3181_v33 = vor.u32 %v3826_v26, %v3178_v27  ;;  %v3185_v34 = vor.u32 %v3831_v30, %v3184_v28  ;;  %v3144_v35 = vld [vmem:[#allocation3 + $0x100] sm:$0xf]  ;;  %v3818_v37 = vld [vmem:[#allocation3 + $0x104] sm:$0xf] }
  0x20   :  { %515 = vmatpush.bf16.msra.mxu2 %v3217_v21  ;;  %v3822_v36 = vld [vmem:[#allocation3 + $0x11c] sm:$0xf0]  ;;  %v3189_v38 = vor.u32 %v3827_v31, %v3186_v32  ;;  %v3146_v39 = vld [vmem:[#allocation3 + $0x120] sm:$0xf0]  ;;  %v3152_v40 = vld [vmem:[#allocation3 + $0x108] sm:$0xf] }
  0x21   :  { %529 = vmatpush.bf16.msra.mxu3 %v3221_v25  ;;  %v3823_v41 = vld [vmem:[#allocation3 + $0x124] sm:$0xf0]  ;;  %v3819_v42 = vld [vmem:[#allocation3 + $0x10c] sm:$0xf]  ;;  %v3145_v44 = vor.u32 %v3822_v36, %v3144_v35  ;;  %v3149_v45 = vor.u32 %v3818_v37, %v3146_v39  ;;  %v3112_v47 = vld [vmem:[#allocation3 + $0xc0] sm:$0xf] }
  0x22   :  { %v3154_v43 = vld [vmem:[#allocation3 + $0x128] sm:$0xf0]  ;;  %v3153_v46 = vor.u32 %v3823_v41, %v3152_v40  ;;  %v3814_v48 = vld [vmem:[#allocation3 + $0xdc] sm:$0xf0]  ;;  %v3810_v49 = vld [vmem:[#allocation3 + $0xc4] sm:$0xf] }
  0x23   :  { %488 = vmatpush.bf16.msra.mxu0 %v3177_v29  ;;  %502 = vmatpush.bf16.msra.mxu1 %v3181_v33  ;;  %v3157_v50 = vor.u32 %v3819_v42, %v3154_v43  ;;  %v3114_v51 = vld [vmem:[#allocation3 + $0xe0] sm:$0xf0]  ;;  %v3120_v52 = vld [vmem:[#allocation3 + $0xc8] sm:$0xf]  ;;  %v3811_v54 = vld [vmem:[#allocation3 + $0xcc] sm:$0xf]  ;;  %v3113_v56 = vor.u32 %v3814_v48, %v3112_v47 }
  0x24   :  { %516 = vmatpush.bf16.msra.mxu2 %v3185_v34  ;;  %v3815_v53 = vld [vmem:[#allocation3 + $0xe4] sm:$0xf0]  ;;  %v3122_v55 = vld [vmem:[#allocation3 + $0xe8] sm:$0xf0]  ;;  %v3117_v57 = vor.u32 %v3810_v49, %v3114_v51  ;;  %v3080_v59 = vld [vmem:[#allocation3 + $0x80] sm:$0xf] }
  0x25   :  { %530 = vmatpush.bf16.msra.mxu3 %v3189_v38  ;;  %v3121_v58 = vor.u32 %v3815_v53, %v3120_v52  ;;  %v3806_v60 = vld [vmem:[#allocation3 + $0x9c] sm:$0xf0]  ;;  %v3802_v61 = vld [vmem:[#allocation3 + $0x84] sm:$0xf]  ;;  %v3125_v62 = vor.u32 %v3811_v54, %v3122_v55  ;;  %v3088_v0 = vld [vmem:[#allocation3 + $0x88] sm:$0xf] }
  0x26   :  { %v3082_v63 = vld [vmem:[#allocation3 + $0xa0] sm:$0xf0]  ;;  %v3807_v1 = vld [vmem:[#allocation3 + $0xa4] sm:$0xf0]  ;;  %v3803_v2 = vld [vmem:[#allocation3 + $0x8c] sm:$0xf]  ;;  %v3081_v4 = vor.u32 %v3806_v60, %v3080_v59 }
  0x27   :  { %489 = vmatpush.bf16.msra.mxu0 %v3145_v44  ;;  %503 = vmatpush.bf16.msra.mxu1 %v3149_v45  ;;  %v3090_v3 = vld [vmem:[#allocation3 + $0xa8] sm:$0xf0]  ;;  %v3085_v5 = vor.u32 %v3802_v61, %v3082_v63  ;;  %v3089_v6 = vor.u32 %v3807_v1, %v3088_v0  ;;  %v3048_v7 = vld [vmem:[#allocation3 + $0x40] sm:$0xf]  ;;  %v3794_v9 = vld [vmem:[#allocation3 + $0x44] sm:$0xf] }
  0x28   :  { %517 = vmatpush.bf16.msra.mxu2 %v3153_v46  ;;  %v3798_v8 = vld [vmem:[#allocation3 + $0x5c] sm:$0xf0]  ;;  %v3093_v10 = vor.u32 %v3803_v2, %v3090_v3  ;;  %v3050_v11 = vld [vmem:[#allocation3 + $0x60] sm:$0xf0]  ;;  %v3056_v12 = vld [vmem:[#allocation3 + $0x48] sm:$0xf] }
  0x29   :  { %531 = vmatpush.bf16.msra.mxu3 %v3157_v50  ;;  %v3799_v13 = vld [vmem:[#allocation3 + $0x64] sm:$0xf0]  ;;  %v3795_v14 = vld [vmem:[#allocation3 + $0x4c] sm:$0xf]  ;;  %v3049_v16 = vor.u32 %v3798_v8, %v3048_v7  ;;  %v3016_v17 = vld [vmem:[#allocation3] sm:$0xf]  ;;  %v3053_v19 = vor.u32 %v3794_v9, %v3050_v11 }
  0x2a   :  { %v3058_v15 = vld [vmem:[#allocation3 + $0x68] sm:$0xf0]  ;;  %v3790_v18 = vld [vmem:[#allocation3 + $0x1c] sm:$0xf0]  ;;  %v3057_v20 = vor.u32 %v3799_v13, %v3056_v12  ;;  %v3786_v21 = vld [vmem:[#allocation3 + $0x4] sm:$0xf] }
  0x2b   :  { %490 = vmatpush.bf16.msra.mxu0 %v3113_v56  ;;  %504 = vmatpush.bf16.msra.mxu1 %v3117_v57  ;;  %v3018_v22 = vld [vmem:[#allocation3 + $0x20] sm:$0xf0]  ;;  %v3024_v23 = vld [vmem:[#allocation3 + $0x8] sm:$0xf]  ;;  %v3061_v24 = vor.u32 %v3795_v14, %v3058_v15  ;;  %v3787_v26 = vld [vmem:[#allocation3 + $0xc] sm:$0xf]  ;;  %v3017_v31 = vor.u32 %v3790_v18, %v3016_v17 }
  0x2c   :  { %518 = vmatpush.bf16.msra.mxu2 %v3121_v58  ;;  %v3791_v25 = vld [vmem:[#allocation3 + $0x24] sm:$0xf0]  ;;  %v3026_v27 = vld [vmem:[#allocation3 + $0x28] sm:$0xf0]  ;;  %v3256_v28 = vld [vmem:[#allocation3 + $0x1d0] sm:$0xf]  ;;  %v3021_v35 = vor.u32 %v3786_v21, %v3018_v22 }
  0x2d   :  { %532 = vmatpush.bf16.msra.mxu3 %v3125_v62  ;;  %v3848_v29 = vld [vmem:[#allocation3 + $0x1ec] sm:$0xf0]  ;;  %v3844_v30 = vld [vmem:[#allocation3 + $0x1d4] sm:$0xf]  ;;  %v3264_v33 = vld [vmem:[#allocation3 + $0x1d8] sm:$0xf]  ;;  %v3025_v36 = vor.u32 %v3791_v25, %v3024_v23  ;;  %v3029_v39 = vor.u32 %v3787_v26, %v3026_v27 }
  0x2e   :  { %v3258_v32 = vld [vmem:[#allocation3 + $0x1f0] sm:$0xf0]  ;;  %v3849_v34 = vld [vmem:[#allocation3 + $0x1f4] sm:$0xf0]  ;;  %v3845_v37 = vld [vmem:[#allocation3 + $0x1dc] sm:$0xf]  ;;  %v3257_v40 = vor.u32 %v3848_v29, %v3256_v28 }
  0x2f   :  { %491 = vmatpush.bf16.msra.mxu0 %v3081_v4  ;;  %505 = vmatpush.bf16.msra.mxu1 %v3085_v5  ;;  %v3266_v38 = vld [vmem:[#allocation3 + $0x1f8] sm:$0xf0]  ;;  %v3261_v41 = vor.u32 %v3844_v30, %v3258_v32  ;;  %v3265_v42 = vor.u32 %v3849_v34, %v3264_v33  ;;  %v3224_v43 = vld [vmem:[#allocation3 + $0x190] sm:$0xf]  ;;  %v3836_v45 = vld [vmem:[#allocation3 + $0x194] sm:$0xf] }
  0x30   :  { %519 = vmatpush.bf16.msra.mxu2 %v3089_v6  ;;  %v3840_v44 = vld [vmem:[#allocation3 + $0x1ac] sm:$0xf0]  ;;  %v3269_v46 = vor.u32 %v3845_v37, %v3266_v38  ;;  %v3226_v47 = vld [vmem:[#allocation3 + $0x1b0] sm:$0xf0]  ;;  %v3232_v48 = vld [vmem:[#allocation3 + $0x198] sm:$0xf] }
  0x31   :  { %533 = vmatpush.bf16.msra.mxu3 %v3093_v10  ;;  %v3841_v49 = vld [vmem:[#allocation3 + $0x1b4] sm:$0xf0]  ;;  %v3837_v50 = vld [vmem:[#allocation3 + $0x19c] sm:$0xf]  ;;  %v3225_v53 = vor.u32 %v3840_v44, %v3224_v43  ;;  %v3229_v54 = vor.u32 %v3836_v45, %v3226_v47  ;;  %v3192_v56 = vld [vmem:[#allocation3 + $0x150] sm:$0xf] }
  0x32   :  { %v3234_v51 = vld [vmem:[#allocation3 + $0x1b8] sm:$0xf0]  ;;  %v3233_v55 = vor.u32 %v3841_v49, %v3232_v48  ;;  %v3832_v57 = vld [vmem:[#allocation3 + $0x16c] sm:$0xf0]  ;;  %v3828_v58 = vld [vmem:[#allocation3 + $0x154] sm:$0xf] }
  0x33   :  { %492 = vmatpush.bf16.msra.mxu0 %v3049_v16  ;;  %506 = vmatpush.bf16.msra.mxu1 %v3053_v19  ;;  %v4374_v52 = vld [vmem:[%s5256_s0] sm:$0xff]  ;;  %v3237_v59 = vor.u32 %v3837_v50, %v3234_v51  ;;  %v3194_v60 = vld [vmem:[#allocation3 + $0x170] sm:$0xf0]  ;;  %v3193_v1 = vor.u32 %v3832_v57, %v3192_v56  ;;  %v3160_v4 = vld [vmem:[#allocation3 + $0x110] sm:$0xf]  ;;  %vm710_vm0 = vcmask 1041408  }
  0x34   :  { %520 = vmatpush.bf16.msra.mxu2 %v3057_v20  ;;  %v3200_v61 = vld [vmem:[#allocation3 + $0x158] sm:$0xf]  ;;  %v3829_v63 = vld [vmem:[#allocation3 + $0x15c] sm:$0xf]  ;;  %v3197_v2 = vor.u32 %v3828_v58, %v3194_v60  ;;  %v3824_v5 = vld [vmem:[#allocation3 + $0x12c] sm:$0xf0] }
  0x35   :  { %534 = vmatpush.bf16.msra.mxu3 %v3061_v24  ;;  %v3833_v62 = vld [vmem:[#allocation3 + $0x174] sm:$0xf0]  ;;  %v3202_v0 = vld [vmem:[#allocation3 + $0x178] sm:$0xf0]  ;;  %v3820_v6 = vld [vmem:[#allocation3 + $0x114] sm:$0xf]  ;;  %v3161_v13 = vor.u32 %v3824_v5, %v3160_v4 }
  0x36   :  { %v3201_v3 = vor.u32 %v3833_v62, %v3200_v61  ;;  %v3205_v7 = vor.u32 %v3829_v63, %v3202_v0  ;;  %v3162_v8 = vld [vmem:[#allocation3 + $0x130] sm:$0xf0]  ;;  %v3168_v9 = vld [vmem:[#allocation3 + $0x118] sm:$0xf]  ;;  %v3821_v11 = vld [vmem:[#allocation3 + $0x11c] sm:$0xf] }
  0x37   :  { %493 = vmatpush.bf16.msra.mxu0 %v3017_v31  ;;  %507 = vmatpush.bf16.msra.mxu1 %v3021_v35  ;;  %v3825_v10 = vld [vmem:[#allocation3 + $0x134] sm:$0xf0]  ;;  %v3170_v12 = vld [vmem:[#allocation3 + $0x138] sm:$0xf0]  ;;  %v3165_v14 = vor.u32 %v3820_v6, %v3162_v8  ;;  %v3128_v16 = vld [vmem:[#allocation3 + $0xd0] sm:$0xf] }
  0x38   :  { %521 = vmatpush.bf16.msra.mxu2 %v3025_v36  ;;  %v3169_v15 = vor.u32 %v3825_v10, %v3168_v9  ;;  %v3816_v17 = vld [vmem:[#allocation3 + $0xec] sm:$0xf0]  ;;  %v3812_v18 = vld [vmem:[#allocation3 + $0xd4] sm:$0xf]  ;;  %v3173_v19 = vor.u32 %v3821_v11, %v3170_v12  ;;  %v3136_v21 = vld [vmem:[#allocation3 + $0xd8] sm:$0xf] }
  0x39   :  { %535 = vmatpush.bf16.msra.mxu3 %v3029_v39  ;;  %v3130_v20 = vld [vmem:[#allocation3 + $0xf0] sm:$0xf0]  ;;  %v3817_v22 = vld [vmem:[#allocation3 + $0xf4] sm:$0xf0]  ;;  %v3813_v23 = vld [vmem:[#allocation3 + $0xdc] sm:$0xf]  ;;  %v3129_v25 = vor.u32 %v3816_v17, %v3128_v16 }
  0x3a   :  { %494 = vmatmul.bf16.vlgmr.msra.gmra.mxu0 %v4374_v52  ;;  %508 = vmatmul.bf16.vlgmr.msra.gmra.mxu1 %v4374_v52  ;;  %v3138_v24 = vld [vmem:[#allocation3 + $0xf8] sm:$0xf0]  ;;  %v3133_v26 = vor.u32 %v3812_v18, %v3130_v20  ;;  %v3137_v27 = vor.u32 %v3817_v22, %v3136_v21  ;;  %v3096_v28 = vld [vmem:[#allocation3 + $0x90] sm:$0xf]  ;;  %v3804_v30 = vld [vmem:[#allocation3 + $0x94] sm:$0xf] }
  0x3b   :  { %542 = vmatpush.bf16.msrb.mxu0 %v3257_v40  ;;  %556 = vmatpush.bf16.msrb.mxu1 %v3261_v41  ;;  %v3808_v29 = vld [vmem:[#allocation3 + $0xac] sm:$0xf0]  ;;  %v3141_v31 = vor.u32 %v3813_v23, %v3138_v24  ;;  %v3098_v32 = vld [vmem:[#allocation3 + $0xb0] sm:$0xf0]  ;;  %v3104_v33 = vld [vmem:[#allocation3 + $0x98] sm:$0xf] }
  0x3c   :  { %570 = vmatpush.bf16.msrb.mxu2 %v3265_v42  ;;  %536 = vmatmul.bf16.vlgmr.msra.gmra.mxu3 %v4374_v52  ;;  %v3809_v34 = vld [vmem:[#allocation3 + $0xb4] sm:$0xf0]  ;;  %v3805_v35 = vld [vmem:[#allocation3 + $0x9c] sm:$0xf]  ;;  %v3097_v37 = vor.u32 %v3808_v29, %v3096_v28  ;;  %v3101_v38 = vor.u32 %v3804_v30, %v3098_v32  ;;  %v3064_v40 = vld [vmem:[#allocation3 + $0x50] sm:$0xf] }
  0x3d   :  { %584 = vmatpush.bf16.msrb.mxu3 %v3269_v46  ;;  %522 = vmatmul.bf16.vlgmr.msra.gmra.mxu2 %v4374_v52  ;;  %v3106_v36 = vld [vmem:[#allocation3 + $0xb8] sm:$0xf0]  ;;  %v3105_v39 = vor.u32 %v3809_v34, %v3104_v33  ;;  %v3800_v41 = vld [vmem:[#allocation3 + $0x6c] sm:$0xf0]  ;;  %v3796_v42 = vld [vmem:[#allocation3 + $0x54] sm:$0xf] }
  0x3e   :  { %v3109_v43 = vor.u32 %v3805_v35, %v3106_v36  ;;  %v3066_v44 = vld [vmem:[#allocation3 + $0x70] sm:$0xf0]  ;;  %v3072_v45 = vld [vmem:[#allocation3 + $0x58] sm:$0xf]  ;;  %v3797_v47 = vld [vmem:[#allocation3 + $0x5c] sm:$0xf]  ;;  %v3065_v49 = vor.u32 %v3800_v41, %v3064_v40 }
  0x3f   :  { %543 = vmatpush.bf16.msrb.mxu0 %v3225_v53  ;;  %557 = vmatpush.bf16.msrb.mxu1 %v3229_v54  ;;  %v3801_v46 = vld [vmem:[#allocation3 + $0x74] sm:$0xf0]  ;;  %v3074_v48 = vld [vmem:[#allocation3 + $0x78] sm:$0xf0]  ;;  %v3032_v50 = vld [vmem:[#allocation3 + $0x10] sm:$0xf]  ;;  %v3069_v53 = vor.u32 %v3796_v42, %v3066_v44 }
  0x40   :  { %571 = vmatpush.bf16.msrb.mxu2 %v3233_v55  ;;  %v3792_v51 = vld [vmem:[#allocation3 + $0x2c] sm:$0xf0]  ;;  %v3073_v54 = vor.u32 %v3801_v46, %v3072_v45  ;;  %v3788_v55 = vld [vmem:[#allocation3 + $0x14] sm:$0xf]  ;;  %v3040_v57 = vld [vmem:[#allocation3 + $0x18] sm:$0xf]  ;;  %v3077_v58 = vor.u32 %v3797_v47, %v3074_v48 }
  0x41   :  { %585 = vmatpush.bf16.msrb.mxu3 %v3237_v59  ;;  %v3034_v56 = vld [vmem:[#allocation3 + $0x30] sm:$0xf0]  ;;  %v3793_v59 = vld [vmem:[#allocation3 + $0x34] sm:$0xf0]  ;;  %v3789_v60 = vld [vmem:[#allocation3 + $0x1c] sm:$0xf] }
  0x42   :  { %v3042_v61 = vld [vmem:[#allocation3 + $0x38] sm:$0xf0]  ;;  %v3384_v62 = vld [vmem:[#allocation6 + $0xe0] sm:$0xf]  ;;  %v3880_v63 = vld [vmem:[#allocation6 + $0xec] sm:$0xf0]  ;;  %v3037_v5 = vor.u32 %v3788_v55, %v3034_v56  ;;  %v3041_v6 = vor.u32 %v3793_v59, %v3040_v57 }
  0x43   :  { %544 = vmatpush.bf16.msrb.mxu0 %v3193_v1  ;;  %558 = vmatpush.bf16.msrb.mxu1 %v3197_v2  ;;  %v3512_v0 = vld [vmem:[#allocation6 + $0x1e0] sm:$0xf]  ;;  %v3033_v1 = vor.u32 %v3792_v51, %v3032_v50  ;;  %v3912_v2 = vld [vmem:[#allocation6 + $0x1ec] sm:$0xf0]  ;;  %v3386_v4 = vld [vmem:[#allocation6 + $0xf0] sm:$0xf0]  ;;  %v3045_v9 = vor.u32 %v3789_v60, %v3042_v61  ;;  %v4380_v10 = vor.u32 %v3880_v63, %v3384_v62 }
  0x44   :  { %572 = vmatpush.bf16.msrb.mxu2 %v3201_v3  ;;  %v3878_v3 = vld [vmem:[#allocation6 + $0xe4] sm:$0xf]  ;;  %v3514_v8 = vld [vmem:[#allocation6 + $0x1f0] sm:$0xf0]  ;;  %v4382_v11 = vor.u32 %v3912_v2, %v3512_v0  ;;  %v3908_v17 = vld [vmem:[#allocation6 + $0x1cc] sm:$0xf0] }
  0x45   :  { %586 = vmatpush.bf16.msrb.mxu3 %v3205_v7  ;;  %v3910_v7 = vld [vmem:[#allocation6 + $0x1e4] sm:$0xf]  ;;  %v4384_v12 = vor.u32 %v3878_v3, %v3386_v4  ;;  %v3498_v21 = vld [vmem:[#allocation6 + $0x1d0] sm:$0xf0]  ;;  %v3904_v29 = vld [vmem:[#allocation6 + $0x1ac] sm:$0xf0] }
  0x46   :  { %v4386_v16 = vor.u32 %v3910_v7, %v3514_v8  ;;  %v3874_v18 = vld [vmem:[#allocation6 + $0xc4] sm:$0xf]  ;;  %v3482_v33 = vld [vmem:[#allocation6 + $0x1b0] sm:$0xf0]  ;;  %v3900_v41 = vld [vmem:[#allocation6 + $0x18c] sm:$0xf0] }
  0x47   :  { %545 = vmatpush.bf16.msrb.mxu0 %v3161_v13  ;;  %559 = vmatpush.bf16.msrb.mxu1 %v3165_v14  ;;  %v3368_v13 = vld [vmem:[#allocation6 + $0xc0] sm:$0xf]  ;;  %v3876_v14 = vld [vmem:[#allocation6 + $0xcc] sm:$0xf0]  ;;  %v3906_v20 = vld [vmem:[#allocation6 + $0x1c4] sm:$0xf] }
  0x48   :  { %573 = vmatpush.bf16.msrb.mxu2 %v3169_v15  ;;  %v3496_v15 = vld [vmem:[#allocation6 + $0x1c0] sm:$0xf]  ;;  %v4389_v22 = vor.u32 %v3876_v14, %v3368_v13  ;;  %v4399_v28 = vor.u32 %v3906_v20, %v3498_v21  ;;  %v3870_v30 = vld [vmem:[#allocation6 + $0xa4] sm:$0xf]  ;;  %v3466_v44 = vld [vmem:[#allocation6 + $0x190] sm:$0xf0] }
  0x49   :  { %587 = vmatpush.bf16.msrb.mxu3 %v3173_v19  ;;  %v3370_v19 = vld [vmem:[#allocation6 + $0xd0] sm:$0xf0]  ;;  %v4393_v23 = vor.u32 %v3908_v17, %v3496_v15  ;;  %v3902_v32 = vld [vmem:[#allocation6 + $0x1a4] sm:$0xf]  ;;  %v3320_v48 = vld [vmem:[#allocation6 + $0x60] sm:$0xf] }
  0x4a   :  { %v4395_v24 = vor.u32 %v3874_v18, %v3370_v19  ;;  %v4414_v40 = vor.u32 %v3902_v32, %v3482_v33  ;;  %v3866_v42 = vld [vmem:[#allocation6 + $0x84] sm:$0xf]  ;;  %v3448_v50 = vld [vmem:[#allocation6 + $0x160] sm:$0xf]  ;;  %v3322_v55 = vld [vmem:[#allocation6 + $0x70] sm:$0xf0] }
  0x4b   :  { %546 = vmatpush.bf16.msrb.mxu0 %v3129_v25  ;;  %560 = vmatpush.bf16.msrb.mxu1 %v3133_v26  ;;  %v3352_v25 = vld [vmem:[#allocation6 + $0xa0] sm:$0xf]  ;;  %v3872_v26 = vld [vmem:[#allocation6 + $0xac] sm:$0xf0]  ;;  %v3894_v56 = vld [vmem:[#allocation6 + $0x164] sm:$0xf] }
  0x4c   :  { %574 = vmatpush.bf16.msrb.mxu2 %v3137_v27  ;;  %v3480_v27 = vld [vmem:[#allocation6 + $0x1a0] sm:$0xf]  ;;  %v4405_v34 = vor.u32 %v3872_v26, %v3352_v25  ;;  %v3450_v57 = vld [vmem:[#allocation6 + $0x170] sm:$0xf0]  ;;  %v3860_v62 = vld [vmem:[#allocation6 + $0x4c] sm:$0xf0] }
  0x4d   :  { %588 = vmatpush.bf16.msrb.mxu3 %v3141_v31  ;;  %v3354_v31 = vld [vmem:[#allocation6 + $0xb0] sm:$0xf0]  ;;  %v4409_v35 = vor.u32 %v3904_v29, %v3480_v27  ;;  %v3304_v61 = vld [vmem:[#allocation6 + $0x40] sm:$0xf]  ;;  %v4438_v0 = vor.u32 %v3894_v56, %v3450_v57  ;;  %v3858_v2 = vld [vmem:[#allocation6 + $0x44] sm:$0xf] }
  0x4e   :  { %v4411_v36 = vor.u32 %v3870_v30, %v3354_v31  ;;  %v3432_v63 = vld [vmem:[#allocation6 + $0x140] sm:$0xf]  ;;  %v3306_v3 = vld [vmem:[#allocation6 + $0x50] sm:$0xf0]  ;;  %v3890_v4 = vld [vmem:[#allocation6 + $0x144] sm:$0xf] }
  0x4f   :  { %547 = vmatpush.bf16.msrb.mxu0 %v3097_v37  ;;  %561 = vmatpush.bf16.msrb.mxu1 %v3101_v38  ;;  %v3336_v37 = vld [vmem:[#allocation6 + $0x80] sm:$0xf]  ;;  %v3868_v38 = vld [vmem:[#allocation6 + $0x8c] sm:$0xf0]  ;;  %v4447_v8 = vor.u32 %v3858_v2, %v3306_v3  ;;  %v3854_v18 = vld [vmem:[#allocation6 + $0x24] sm:$0xf] }
  0x50   :  { %575 = vmatpush.bf16.msrb.mxu2 %v3105_v39  ;;  %v3464_v39 = vld [vmem:[#allocation6 + $0x180] sm:$0xf]  ;;  %v4417_v45 = vor.u32 %v3868_v38, %v3336_v37  ;;  %v3856_v13 = vld [vmem:[#allocation6 + $0x2c] sm:$0xf0]  ;;  %v3290_v19 = vld [vmem:[#allocation6 + $0x30] sm:$0xf0] }
  0x51   :  { %589 = vmatpush.bf16.msrb.mxu3 %v3109_v43  ;;  %v3898_v43 = vld [vmem:[#allocation6 + $0x184] sm:$0xf]  ;;  %v4421_v46 = vor.u32 %v3900_v41, %v3464_v39  ;;  %v3416_v14 = vld [vmem:[#allocation6 + $0x120] sm:$0xf]  ;;  %v3888_v17 = vld [vmem:[#allocation6 + $0x12c] sm:$0xf0]  ;;  %v4459_v30 = vor.u32 %v3854_v18, %v3290_v19 }
  0x52   :  { %v4426_v51 = vor.u32 %v3898_v43, %v3466_v44  ;;  %v3886_v20 = vld [vmem:[#allocation6 + $0x124] sm:$0xf]  ;;  %v3418_v21 = vld [vmem:[#allocation6 + $0x130] sm:$0xf0]  ;;  %v3272_v26 = vld [vmem:[#allocation6] sm:$0xf]  ;;  %v4457_v29 = vor.u32 %v3888_v17, %v3416_v14 }
  0x53   :  { %548 = vmatpush.bf16.msrb.mxu0 %v3065_v49  ;;  %562 = vmatpush.bf16.msrb.mxu1 %v3069_v53  ;;  %v3864_v49 = vld [vmem:[#allocation6 + $0x6c] sm:$0xf0]  ;;  %v3400_v31 = vld [vmem:[#allocation6 + $0x100] sm:$0xf]  ;;  %v3850_v33 = vld [vmem:[#allocation6 + $0x4] sm:$0xf]  ;;  %v4462_v37 = vor.u32 %v3886_v20, %v3418_v21 }
  0x54   :  { %576 = vmatpush.bf16.msrb.mxu2 %v3073_v54  ;;  %v3896_v53 = vld [vmem:[#allocation6 + $0x16c] sm:$0xf0]  ;;  %v3862_v54 = vld [vmem:[#allocation6 + $0x64] sm:$0xf]  ;;  %v3274_v38 = vld [vmem:[#allocation6 + $0x10] sm:$0xf0] }
  0x55   :  { %590 = vmatpush.bf16.msrb.mxu3 %v3077_v58  ;;  %v4429_v58 = vor.u32 %v3864_v49, %v3320_v48  ;;  %v4433_v59 = vor.u32 %v3896_v53, %v3448_v50  ;;  %v4435_v60 = vor.u32 %v3862_v54, %v3322_v55  ;;  %v3852_v27 = vld [vmem:[#allocation6 + $0xc] sm:$0xf0]  ;;  %v3882_v39 = vld [vmem:[#allocation6 + $0x104] sm:$0xf]  ;;  %v3402_v41 = vld [vmem:[#allocation6 + $0x110] sm:$0xf0]  ;;  %v4471_v54 = vor.u32 %v3850_v33, %v3274_v38 }
  0x56   :  { %v3884_v32 = vld [vmem:[#allocation6 + $0x10c] sm:$0xf0]  ;;  %v3520_v43 = vld [vmem:[#allocation6 + $0x1e8] sm:$0xf]  ;;  %v4465_v44 = vor.u32 %v3852_v27, %v3272_v26  ;;  %v3913_v48 = vld [vmem:[#allocation6 + $0x1f4] sm:$0xf0]  ;;  %v4474_v57 = vor.u32 %v3882_v39, %v3402_v41 }
  0x57   :  { %549 = vmatpush.bf16.msrb.mxu0 %v3033_v1  ;;  %563 = vmatpush.bf16.msrb.mxu1 %v3037_v5  ;;  %v3892_v1 = vld [vmem:[#allocation6 + $0x14c] sm:$0xf0]  ;;  %v3434_v5 = vld [vmem:[#allocation6 + $0x150] sm:$0xf0]  ;;  %v3879_v49 = vld [vmem:[#allocation6 + $0xec] sm:$0xf]  ;;  %v4469_v53 = vor.u32 %v3884_v32, %v3400_v31 }
  0x58   :  { %577 = vmatpush.bf16.msrb.mxu2 %v3041_v6  ;;  %v4441_v6 = vor.u32 %v3860_v62, %v3304_v61  ;;  %v4445_v7 = vor.u32 %v3892_v1, %v3432_v63  ;;  %v4450_v15 = vor.u32 %v3890_v4, %v3434_v5  ;;  %v3394_v50 = vld [vmem:[#allocation6 + $0xf8] sm:$0xf0]  ;;  %v3911_v55 = vld [vmem:[#allocation6 + $0x1ec] sm:$0xf]  ;;  %v4478_v62 = vor.u32 %v3913_v48, %v3520_v43  ;;  %v3376_v1 = vld [vmem:[#allocation6 + $0xc8] sm:$0xf] }
  0x59   :  { %591 = vmatpush.bf16.msrb.mxu3 %v3045_v9  ;;  %v3288_v9 = vld [vmem:[#allocation6 + $0x20] sm:$0xf]  ;;  %v3522_v56 = vld [vmem:[#allocation6 + $0x1f8] sm:$0xf0]  ;;  %v4480_v63 = vor.u32 %v3879_v49, %v3394_v50  ;;  %v3877_v2 = vld [vmem:[#allocation6 + $0xd4] sm:$0xf0] }
  0x5a   :  { %550 = vmatmul.bf16.vlgmr.msrb.gmra.mxu0 %v4374_v52  ;;  %564 = vmatmul.bf16.vlgmr.msrb.gmra.mxu1 %v4374_v52  ;;  %v4453_v25 = vor.u32 %v3856_v13, %v3288_v9  ;;  %5332 = vst [vmem:[#allocation23_spill] sm:$0xff] %v4478_v62  ;;  %v3504_v3 = vld [vmem:[#allocation6 + $0x1c8] sm:$0xf]  ;;  %v4483_v4 = vor.u32 %v3911_v55, %v3522_v56  ;;  %v3909_v5 = vld [vmem:[#allocation6 + $0x1d4] sm:$0xf0]  ;;  %v5267_v31 = vmov 0.0|0.0  }
  0x5b   :  { %1036 = vmatpush.bf16.msra.mxu0 %v4380_v10  ;;  %1049 = vmatpush.bf16.msra.mxu1 %v4382_v11  ;;  %5333 = vst [vmem:[#allocation24_spill] sm:$0xff] %v4480_v63  ;;  %v3875_v9 = vld [vmem:[#allocation6 + $0xcc] sm:$0xf]  ;;  %v3378_v13 = vld [vmem:[#allocation6 + $0xd8] sm:$0xf0]  ;;  %v4489_v18 = vor.u32 %v3877_v2, %v3376_v1  ;;  %v4493_v19 = vor.u32 %v3909_v5, %v3504_v3  ;;  %vm4294_vm10 = vmmov 1  }
  0x5c   :  { %1062 = vmatpush.bf16.msra.mxu2 %v4384_v12  ;;  %592 = vmatmul.bf16.vlgmr.msrb.gmra.mxu3 %v4374_v52  ;;  %5334 = vst [vmem:[#allocation25_spill] sm:$0xff] %v4483_v4  ;;  %v3907_v14 = vld [vmem:[#allocation6 + $0x1cc] sm:$0xf]  ;;  %v3506_v17 = vld [vmem:[#allocation6 + $0x1d8] sm:$0xf0]  ;;  %v4495_v20 = vor.u32 %v3875_v9, %v3378_v13  ;;  %s2957_s23 = sshll.u32 %s5264_s8, 4  ;;  %s2958_s23 = int_to_ptr.hbm [resolvable:$true] %s2957_s23 }
  0x5d   :  { %1075 = vmatpush.bf16.msra.mxu3 %v4386_v16  ;;  %578 = vmatmul.bf16.vlgmr.msrb.gmra.mxu2 %v4374_v52  ;;  %v3338_v52 = vld [vmem:[#allocation6 + $0x90] sm:$0xf0]  ;;  %5335 = vst [vmem:[#allocation26_spill] sm:$0xff] %v4489_v18  ;;  %v3360_v21 = vld [vmem:[#allocation6 + $0xa8] sm:$0xf]  ;;  %v4499_v32 = vor.u32 %v3907_v14, %v3506_v17  ;;  %s4295_s24 = smov [#allocation12]  }
  0x5e   :  { %v4423_v47 = vor.u32 %v3866_v42, %v3338_v52  ;;  %v3392_v42 = vld [vmem:[#allocation6 + $0xe8] sm:$0xf]  ;;  %v3881_v52 = vld [vmem:[#allocation6 + $0xf4] sm:$0xf0]  ;;  %5336 = vst [vmem:[#allocation27_spill] sm:$0xff] %v4493_v19  ;;  %s2955_s3 = sshll.u32 %s4295_s24, 4  ;;  %s2956_s3 = int_to_ptr.vmem [resolvable:$true] %s2955_s3 }
  0x5f   :  { %1037 = vmatpush.bf16.msra.mxu0 %v4389_v22  ;;  %1050 = vmatpush.bf16.msra.mxu1 %v4393_v23  ;;  %v4476_v61 = vor.u32 %v3881_v52, %v3392_v42  ;;  %5337 = vst [vmem:[#allocation28_spill] sm:$0xff] %v4495_v20  ;;  %v3873_v26 = vld [vmem:[#allocation6 + $0xb4] sm:$0xf0]  ;;  %v3488_v27 = vld [vmem:[#allocation6 + $0x1a8] sm:$0xf]  ;;  %s4296_s26 = smov 2  }
  0x60   :  { %1063 = vmatpush.bf16.msra.mxu2 %v4395_v24  ;;  %5338 = vst [vmem:[#allocation29_spill] sm:$0xff] %v4499_v32  ;;  %v3905_v33 = vld [vmem:[#allocation6 + $0x1b4] sm:$0xf0]  ;;  %v3871_v38 = vld [vmem:[#allocation6 + $0xac] sm:$0xf]  ;;  %v4505_v52 = vor.u32 %v3873_v26, %v3360_v21  ;;  %s2942_s2 = sshll.u32 %s5262_s6, 4  ;;  %s2943_s2 = int_to_ptr.hbm [resolvable:$true] %s2942_s2 }
  0x61   :  { %1076 = vmatpush.bf16.msra.mxu3 %v4399_v28  ;;  %v3362_v39 = vld [vmem:[#allocation6 + $0xb8] sm:$0xf0]  ;;  %v3903_v41 = vld [vmem:[#allocation6 + $0x1ac] sm:$0xf]  ;;  %v4509_v43 = vor.u32 %v3905_v33, %v3488_v27  ;;  %v3344_v49 = vld [vmem:[#allocation6 + $0x88] sm:$0xf] }
  0x62   :  { %v3490_v42 = vld [vmem:[#allocation6 + $0x1b8] sm:$0xf0]  ;;  %5339 = vst [vmem:[#allocation30_spill] sm:$0xff] %v4505_v52  ;;  %v4511_v48 = vor.u32 %v3871_v38, %v3362_v39  ;;  %v3869_v50 = vld [vmem:[#allocation6 + $0x94] sm:$0xf0]  ;;  %s4298_s8 = smov [#allocation14]  }
  0x63   :  { %1038 = vmatpush.bf16.msra.mxu0 %v4405_v34  ;;  %1051 = vmatpush.bf16.msra.mxu1 %v4409_v35  ;;  %5340 = vst [vmem:[#allocation31_spill] sm:$0xff] %v4509_v43  ;;  %v3472_v55 = vld [vmem:[#allocation6 + $0x188] sm:$0xf]  ;;  %v4514_v56 = vor.u32 %v3903_v41, %v3490_v42  ;;  %v3901_v1 = vld [vmem:[#allocation6 + $0x194] sm:$0xf0]  ;;  %v4517_v13 = vor.u32 %v3869_v50, %v3344_v49  ;;  %s2969_s30 = sshll.u32 %s4298_s8, 4  ;;  %s2970_s30 = int_to_ptr.vmem [resolvable:$true] %s2969_s30 }
  0x64   :  { %1064 = vmatpush.bf16.msra.mxu2 %v4411_v36  ;;  %5341 = vst [vmem:[#allocation32_spill] sm:$0xff] %v4511_v48  ;;  %v3867_v2 = vld [vmem:[#allocation6 + $0x8c] sm:$0xf]  ;;  %v3346_v3 = vld [vmem:[#allocation6 + $0x98] sm:$0xf0]  ;;  %v4521_v14 = vor.u32 %v3901_v1, %v3472_v55  ;;  %s2971_s12 = sshll.u32 %s5265_s9, 4  ;;  %s2972_s12 = int_to_ptr.hbm [resolvable:$true] %s2971_s12 }
  0x65   :  { %1077 = vmatpush.bf16.msra.mxu3 %v4414_v40  ;;  %5342 = vst [vmem:[#allocation33_spill] sm:$0xff] %v4514_v56  ;;  %v3899_v5 = vld [vmem:[#allocation6 + $0x18c] sm:$0xf]  ;;  %v3474_v9 = vld [vmem:[#allocation6 + $0x198] sm:$0xf0]  ;;  %v4523_v17 = vor.u32 %v3867_v2, %v3346_v3  ;;  %s4299_s6 = smov [#allocation15]  }
  0x66   :  { %5343 = vst [vmem:[#allocation34_spill] sm:$0xff] %v4517_v13  ;;  %v3328_v21 = vld [vmem:[#allocation6 + $0x68] sm:$0xf]  ;;  %v3865_v26 = vld [vmem:[#allocation6 + $0x74] sm:$0xf0]  ;;  %v4526_v33 = vor.u32 %v3899_v5, %v3474_v9  ;;  %s2980_s13 = sshll.u32 %s4299_s6, 4  ;;  %s2981_s13 = int_to_ptr.vmem [resolvable:$true] %s2980_s13 }
  0x67   :  { %1039 = vmatpush.bf16.msra.mxu0 %v4417_v45  ;;  %1052 = vmatpush.bf16.msra.mxu1 %v4421_v46  ;;  %5344 = vst [vmem:[#allocation35_spill] sm:$0xff] %v4521_v14  ;;  %v3456_v27 = vld [vmem:[#allocation6 + $0x168] sm:$0xf]  ;;  %v3897_v38 = vld [vmem:[#allocation6 + $0x174] sm:$0xf0]  ;;  %v4529_v50 = vor.u32 %v3865_v26, %v3328_v21 }
  0x68   :  { %1065 = vmatpush.bf16.msra.mxu2 %v4423_v47  ;;  %5345 = vst [vmem:[#allocation36_spill] sm:$0xff] %v4523_v17  ;;  %v3863_v39 = vld [vmem:[#allocation6 + $0x6c] sm:$0xf]  ;;  %v3330_v41 = vld [vmem:[#allocation6 + $0x78] sm:$0xf0]  ;;  %v4533_v55 = vor.u32 %v3897_v38, %v3456_v27 }
  0x69   :  { %1078 = vmatpush.bf16.msra.mxu3 %v4426_v51  ;;  %5346 = vst [vmem:[#allocation37_spill] sm:$0xff] %v4526_v33  ;;  %v3895_v42 = vld [vmem:[#allocation6 + $0x16c] sm:$0xf]  ;;  %v3458_v49 = vld [vmem:[#allocation6 + $0x178] sm:$0xf0]  ;;  %v4535_v1 = vor.u32 %v3863_v39, %v3330_v41 }
  0x6a   :  { %5347 = vst [vmem:[#allocation38_spill] sm:$0xff] %v4529_v50  ;;  %v3312_v2 = vld [vmem:[#allocation6 + $0x48] sm:$0xf]  ;;  %v3861_v3 = vld [vmem:[#allocation6 + $0x54] sm:$0xf0]  ;;  %v4538_v9 = vor.u32 %v3895_v42, %v3458_v49 }
  0x6b   :  { %1040 = vmatpush.bf16.msra.mxu0 %v4429_v58  ;;  %1053 = vmatpush.bf16.msra.mxu1 %v4433_v59  ;;  %5348 = vst [vmem:[#allocation39_spill] sm:$0xff] %v4533_v55  ;;  %v3440_v5 = vld [vmem:[#allocation6 + $0x148] sm:$0xf]  ;;  %v3891_v21 = vld [vmem:[#allocation6 + $0x14c] sm:$0xf] }
  0x6c   :  { %1066 = vmatpush.bf16.msra.mxu2 %v4435_v60  ;;  %5349 = vst [vmem:[#allocation40_spill] sm:$0xff] %v4535_v1  ;;  %v3442_v26 = vld [vmem:[#allocation6 + $0x158] sm:$0xf0]  ;;  %v3296_v39 = vld [vmem:[#allocation6 + $0x28] sm:$0xf] }
  0x6d   :  { %1079 = vmatpush.bf16.msra.mxu3 %v4438_v0  ;;  %5350 = vst [vmem:[#allocation41_spill] sm:$0xff] %v4538_v9  ;;  %v3857_v41 = vld [vmem:[#allocation6 + $0x34] sm:$0xf0]  ;;  %v3424_v42 = vld [vmem:[#allocation6 + $0x128] sm:$0xf]  ;;  %v4550_v49 = vor.u32 %v3891_v21, %v3442_v26 }
  0x6e   :  { %v3408_v21 = vld [vmem:[#allocation6 + $0x108] sm:$0xf] }
  0x6f   :  { %1041 = vmatpush.bf16.msra.mxu0 %v4441_v6  ;;  %1054 = vmatpush.bf16.msra.mxu1 %v4445_v7  ;;  %5354 = vst [vmem:[#allocation45_spill] sm:$0xff] %v4550_v49 }
  0x70   :  { %1067 = vmatpush.bf16.msra.mxu2 %v4447_v8 }
  0x71   :  { %1080 = vmatpush.bf16.msra.mxu3 %v4450_v15 }
  0x73   :  { %1042 = vmatpush.bf16.msra.mxu0 %v4453_v25  ;;  %1055 = vmatpush.bf16.msra.mxu1 %v4457_v29 }
  0x74   :  { %1068 = vmatpush.bf16.msra.mxu2 %v4459_v30 }
  0x75   :  { %1081 = vmatpush.bf16.msra.mxu3 %v4462_v37 }
  0x77   :  { %1043 = vmatpush.bf16.msra.mxu0 %v4465_v44  ;;  %1056 = vmatpush.bf16.msra.mxu1 %v4469_v53 }
  0x78   :  { %1069 = vmatpush.bf16.msra.mxu2 %v4471_v54 }
  0x79   :  { %1082 = vmatpush.bf16.msra.mxu3 %v4474_v57 }
  0x7a   :  { %1044 = vmatmul.bf16.vlgmr.msra.gmra.mxu0 %v5267_v31  ;;  %1057 = vmatmul.bf16.vlgmr.msra.gmra.mxu1 %v5267_v31 }
  0x7b   :  { %1088 = vmatpush.bf16.msrb.mxu0 %v4476_v61  ;;  %1101 = vmatpush.bf16.msrb.mxu1 %v4478_v62 }
  0x7c   :  { %1114 = vmatpush.bf16.msrb.mxu2 %v4480_v63  ;;  %1083 = vmatmul.bf16.vlgmr.msra.gmra.mxu3 %v5267_v31 }
  0x7d   :  { %1127 = vmatpush.bf16.msrb.mxu3 %v4483_v4  ;;  %1070 = vmatmul.bf16.vlgmr.msra.gmra.mxu2 %v5267_v31  ;;  %v3893_v31 = vld [vmem:[#allocation6 + $0x154] sm:$0xf0] }
  0x7e   :  { %v4545_v27 = vor.u32 %v3893_v31, %v3440_v5  ;;  %v3853_v5 = vld [vmem:[#allocation6 + $0x14] sm:$0xf0] }
  0x7f   :  { %1089 = vmatpush.bf16.msrb.mxu0 %v4489_v18  ;;  %1102 = vmatpush.bf16.msrb.mxu1 %v4493_v19 }
  0x80   :  { %1115 = vmatpush.bf16.msrb.mxu2 %v4495_v20  ;;  %5352 = vst [vmem:[#allocation43_spill] sm:$0xff] %v4545_v27 }
  0x81   :  { %1128 = vmatpush.bf16.msrb.mxu3 %v4499_v32 }
  0x83   :  { %1090 = vmatpush.bf16.msrb.mxu0 %v4505_v52  ;;  %1103 = vmatpush.bf16.msrb.mxu1 %v4509_v43 }
  0x84   :  { %1116 = vmatpush.bf16.msrb.mxu2 %v4511_v48 }
  0x85   :  { %1129 = vmatpush.bf16.msrb.mxu3 %v4514_v56  ;;  %v3859_v56 = vld [vmem:[#allocation6 + $0x4c] sm:$0xf] }
  0x87   :  { %1091 = vmatpush.bf16.msrb.mxu0 %v4517_v13  ;;  %1104 = vmatpush.bf16.msrb.mxu1 %v4521_v14  ;;  %v3314_v13 = vld [vmem:[#allocation6 + $0x58] sm:$0xf0]  ;;  %v4541_v14 = vor.u32 %v3861_v3, %v3312_v2  ;;  %v3887_v2 = vld [vmem:[#allocation6 + $0x12c] sm:$0xf] }
  0x88   :  { %1117 = vmatpush.bf16.msrb.mxu2 %v4523_v17  ;;  %v4547_v38 = vor.u32 %v3859_v56, %v3314_v13  ;;  %v3855_v17 = vld [vmem:[#allocation6 + $0x2c] sm:$0xf]  ;;  %v3426_v3 = vld [vmem:[#allocation6 + $0x138] sm:$0xf0]  ;;  %v3280_v13 = vld [vmem:[#allocation6 + $0x8] sm:$0xf] }
  0x89   :  { %1130 = vmatpush.bf16.msrb.mxu3 %v4526_v33  ;;  %5351 = vst [vmem:[#allocation42_spill] sm:$0xff] %v4541_v14  ;;  %v3889_v33 = vld [vmem:[#allocation6 + $0x134] sm:$0xf0]  ;;  %v4562_v26 = vor.u32 %v3887_v2, %v3426_v3  ;;  %v5365_v2 = vld [vmem:[#allocation34_spill] sm:$0xff]  ;;  %v5366_v3 = vld [vmem:[#allocation35_spill] sm:$0xff] }
  0x8a   :  { %5353 = vst [vmem:[#allocation44_spill] sm:$0xff] %v4547_v38  ;;  %v4557_v31 = vor.u32 %v3889_v33, %v3424_v42  ;;  %v5363_v42 = vmov 0.0|0.0  }
  0x8b   :  { %1092 = vmatpush.bf16.msrb.mxu0 %v4529_v50  ;;  %1105 = vmatpush.bf16.msrb.mxu1 %v4533_v55  ;;  %v3298_v50 = vld [vmem:[#allocation6 + $0x38] sm:$0xf0]  ;;  %v4553_v55 = vor.u32 %v3857_v41, %v3296_v39  ;;  %5358 = vst [vmem:[#allocation49_spill] sm:$0xff] %v4562_v26  ;;  %v3883_v39 = vld [vmem:[#allocation6 + $0x10c] sm:$0xf] }
  0x8c   :  { %1118 = vmatpush.bf16.msrb.mxu2 %v4535_v1  ;;  %5356 = vst [vmem:[#allocation47_spill] sm:$0xff] %v4557_v31  ;;  %v4559_v56 = vor.u32 %v3855_v17, %v3298_v50  ;;  %v3851_v1 = vld [vmem:[#allocation6 + $0xc] sm:$0xf]  ;;  %v3410_v41 = vld [vmem:[#allocation6 + $0x118] sm:$0xf0] }
  0x8d   :  { %1131 = vmatpush.bf16.msrb.mxu3 %v4538_v9  ;;  %5355 = vst [vmem:[#allocation46_spill] sm:$0xff] %v4553_v55  ;;  %v3885_v9 = vld [vmem:[#allocation6 + $0x114] sm:$0xf0]  ;;  %v4574_v50 = vor.u32 %v3883_v39, %v3410_v41  ;;  %v5369_v41 = vld [vmem:[#allocation38_spill] sm:$0xff] }
  0x8e   :  { %5357 = vst [vmem:[#allocation48_spill] sm:$0xff] %v4559_v56  ;;  %v4569_v17 = vor.u32 %v3885_v9, %v3408_v21  ;;  %v5364_v9 = vld [vmem:[#allocation33_spill] sm:$0xff]  ;;  %v5367_v21 = vld [vmem:[#allocation36_spill] sm:$0xff] }
  0x8f   :  { %1093 = vmatpush.bf16.msrb.mxu0 %v4541_v14  ;;  %1106 = vmatpush.bf16.msrb.mxu1 %v4545_v27  ;;  %v3282_v14 = vld [vmem:[#allocation6 + $0x18] sm:$0xf0]  ;;  %v4565_v27 = vor.u32 %v3853_v5, %v3280_v13  ;;  %5362 = vst [vmem:[#allocation53_spill] sm:$0xff] %v4574_v50 }
  0x90   :  { %1119 = vmatpush.bf16.msrb.mxu2 %v4547_v38  ;;  %5360 = vst [vmem:[#allocation51_spill] sm:$0xff] %v4569_v17  ;;  %v4571_v33 = vor.u32 %v3851_v1, %v3282_v14  ;;  %v5368_v39 = vld [vmem:[#allocation37_spill] sm:$0xff] }
  0x91   :  { %1132 = vmatpush.bf16.msrb.mxu3 %v4550_v49  ;;  %5359 = vst [vmem:[#allocation50_spill] sm:$0xff] %v4565_v27 }
  0x92   :  { %5361 = vst [vmem:[#allocation52_spill] sm:$0xff] %v4571_v33 }
  0x93   :  { %1094 = vmatpush.bf16.msrb.mxu0 %v4553_v55  ;;  %1107 = vmatpush.bf16.msrb.mxu1 %v4557_v31 }
  0x94   :  { %1120 = vmatpush.bf16.msrb.mxu2 %v4559_v56 }
  0x95   :  { %1133 = vmatpush.bf16.msrb.mxu3 %v4562_v26 }
  0x97   :  { %1095 = vmatpush.bf16.msrb.mxu0 %v4565_v27  ;;  %1108 = vmatpush.bf16.msrb.mxu1 %v4569_v17 }
  0x98   :  { %1121 = vmatpush.bf16.msrb.mxu2 %v4571_v33 }
  0x99   :  { %1134 = vmatpush.bf16.msrb.mxu3 %v4574_v50 }
  0x9a   :  { %1096 = vmatmul.bf16.vlgmr.msrb.gmra.mxu0 %v5363_v42  ;;  %1109 = vmatmul.bf16.vlgmr.msrb.gmra.mxu1 %v5363_v42 }
  0x9b   :  { %1261 = vmatpush.bf16.msra.mxu0 %v4380_v10  ;;  %1274 = vmatpush.bf16.msra.mxu1 %v4382_v11 }
  0x9c   :  { %1122 = vmatmul.bf16.vlgmr.msrb.gmra.mxu2 %v5363_v42  ;;  %1135 = vmatmul.bf16.vlgmr.msrb.gmra.mxu3 %v5363_v42 }
  0x9d   :  { %1287 = vmatpush.bf16.msra.mxu2 %v4384_v12  ;;  %1300 = vmatpush.bf16.msra.mxu3 %v4386_v16 }
  0x9f   :  { %1262 = vmatpush.bf16.msra.mxu0 %v4389_v22  ;;  %1275 = vmatpush.bf16.msra.mxu1 %v4393_v23 }
  0xa1   :  { %1288 = vmatpush.bf16.msra.mxu2 %v4395_v24  ;;  %1301 = vmatpush.bf16.msra.mxu3 %v4399_v28 }
  0xa3   :  { %1263 = vmatpush.bf16.msra.mxu0 %v4405_v34  ;;  %1276 = vmatpush.bf16.msra.mxu1 %v4409_v35 }
  0xa5   :  { %1289 = vmatpush.bf16.msra.mxu2 %v4411_v36  ;;  %1302 = vmatpush.bf16.msra.mxu3 %v4414_v40 }
  0xa7   :  { %1264 = vmatpush.bf16.msra.mxu0 %v4417_v45  ;;  %1277 = vmatpush.bf16.msra.mxu1 %v4421_v46 }
  0xa9   :  { %1290 = vmatpush.bf16.msra.mxu2 %v4423_v47  ;;  %1303 = vmatpush.bf16.msra.mxu3 %v4426_v51 }
  0xab   :  { %1265 = vmatpush.bf16.msra.mxu0 %v4429_v58  ;;  %1278 = vmatpush.bf16.msra.mxu1 %v4433_v59 }
  0xad   :  { %1291 = vmatpush.bf16.msra.mxu2 %v4435_v60  ;;  %1304 = vmatpush.bf16.msra.mxu3 %v4438_v0 }
  0xaf   :  { %1266 = vmatpush.bf16.msra.mxu0 %v4441_v6  ;;  %1279 = vmatpush.bf16.msra.mxu1 %v4445_v7 }
  0xb1   :  { %1292 = vmatpush.bf16.msra.mxu2 %v4447_v8  ;;  %1305 = vmatpush.bf16.msra.mxu3 %v4450_v15 }
  0xb3   :  { %1267 = vmatpush.bf16.msra.mxu0 %v4453_v25  ;;  %1280 = vmatpush.bf16.msra.mxu1 %v4457_v29 }
  0xb5   :  { %1293 = vmatpush.bf16.msra.mxu2 %v4459_v30  ;;  %1306 = vmatpush.bf16.msra.mxu3 %v4462_v37 }
  0xb7   :  { %1268 = vmatpush.bf16.msra.mxu0 %v4465_v44  ;;  %1281 = vmatpush.bf16.msra.mxu1 %v4469_v53  ;;  %v495_v14 = vpop.f32.mrf.mxu0  ;;  %v509_v1 = vpop.f32.mrf.mxu1 }
  0xb8   :  { %598 = vst [vmem:[#allocation2 + $0x30] sm:$0xff] %v495_v14  ;;  %v5370_v14 = vld [vmem:[#allocation39_spill] sm:$0xff] }
  0xb9   :  { %1294 = vmatpush.bf16.msra.mxu2 %v4471_v54  ;;  %1307 = vmatpush.bf16.msra.mxu3 %v4474_v57  ;;  %599 = vst [vmem:[#allocation2] sm:$0xff] %v509_v1 }
  0xbb   :  { %1313 = vmatpush.bf16.msrb.mxu0 %v4476_v61  ;;  %1326 = vmatpush.bf16.msrb.mxu1 %v4478_v62 }
  0xbd   :  { %1339 = vmatpush.bf16.msrb.mxu2 %v4480_v63  ;;  %1352 = vmatpush.bf16.msrb.mxu3 %v4483_v4 }
  0xbf   :  { %1314 = vmatpush.bf16.msrb.mxu0 %v4489_v18  ;;  %1327 = vmatpush.bf16.msrb.mxu1 %v4493_v19  ;;  %v537_v5 = vpop.f32.mrf.mxu3  ;;  %v497_v42 = vpop.f32.mrf.mxu0 }
  0xc0   :  { %v523_v13 = vpop.f32.mrf.mxu2  ;;  %601 = vst [vmem:[#allocation2 + $0x18] sm:$0xff] %v537_v5  ;;  %v511_v1 = vpop.f32.mrf.mxu1 }
  0xc1   :  { %1340 = vmatpush.bf16.msrb.mxu2 %v4495_v20  ;;  %1353 = vmatpush.bf16.msrb.mxu3 %v4499_v32  ;;  %600 = vst [vmem:[#allocation2 + $0x58] sm:$0xff] %v523_v13  ;;  %v5374_v13 = vld [vmem:[#allocation43_spill] sm:$0xff] }
  0xc2   :  { %606 = vst [vmem:[#allocation2 + $0x40] sm:$0xff] %v497_v42 }
  0xc3   :  { %1315 = vmatpush.bf16.msrb.mxu0 %v4505_v52  ;;  %1328 = vmatpush.bf16.msrb.mxu1 %v4509_v43  ;;  %607 = vst [vmem:[#allocation2 + $0x20] sm:$0xff] %v511_v1 }
  0xc5   :  { %1341 = vmatpush.bf16.msrb.mxu2 %v4511_v48  ;;  %1354 = vmatpush.bf16.msrb.mxu3 %v5364_v9  ;;  %v5371_v9 = vld [vmem:[#allocation40_spill] sm:$0xff] }
  0xc7   :  { %1316 = vmatpush.bf16.msrb.mxu0 %v5365_v2  ;;  %1329 = vmatpush.bf16.msrb.mxu1 %v5366_v3  ;;  %v5372_v2 = vld [vmem:[#allocation41_spill] sm:$0xff]  ;;  %v5373_v3 = vld [vmem:[#allocation42_spill] sm:$0xff]  ;;  %v539_v5 = vpop.f32.mrf.mxu3 }
  0xc8   :  { %609 = vst [vmem:[#allocation2 + $0x38] sm:$0xff] %v539_v5  ;;  %v692_v43 = vld [vmem:[#allocation2 + $0x58] sm:$0x3] }
  0xc9   :  { %1342 = vmatpush.bf16.msrb.mxu2 %v5367_v21  ;;  %1355 = vmatpush.bf16.msrb.mxu3 %v5368_v39  ;;  %v525_v21 = vpop.f32.mrf.mxu2 }
  0xca   :  { %608 = vst [vmem:[#allocation2 + $0x10] sm:$0xff] %v525_v21 }
  0xcb   :  { %1317 = vmatpush.bf16.msrb.mxu0 %v5369_v41  ;;  %1330 = vmatpush.bf16.msrb.mxu1 %v5370_v14 }
  0xcd   :  { %1343 = vmatpush.bf16.msrb.mxu2 %v5371_v9  ;;  %1356 = vmatpush.bf16.msrb.mxu3 %v5372_v2 }
  0xcf   :  { %1318 = vmatpush.bf16.msrb.mxu0 %v5373_v3  ;;  %1331 = vmatpush.bf16.msrb.mxu1 %v5374_v13 }
  0xd1   :  { %1344 = vmatpush.bf16.msrb.mxu2 %v4547_v38  ;;  %1357 = vmatpush.bf16.msrb.mxu3 %v4550_v49 }
  0xd3   :  { %1319 = vmatpush.bf16.msrb.mxu0 %v4553_v55  ;;  %1332 = vmatpush.bf16.msrb.mxu1 %v4557_v31 }
  0xd5   :  { %1345 = vmatpush.bf16.msrb.mxu2 %v4559_v56  ;;  %1358 = vmatpush.bf16.msrb.mxu3 %v4562_v26 }
  0xd7   :  { %1320 = vmatpush.bf16.msrb.mxu0 %v4565_v27  ;;  %1333 = vmatpush.bf16.msrb.mxu1 %v4569_v17  ;;  %v551_v21 = vpop.f32.mrf.mxu0  ;;  %v565_v42 = vpop.f32.mrf.mxu1 }
  0xd8   :  { %602 = vst [vmem:[#allocation2 + $0x50] sm:$0xff] %v551_v21 }
  0xd9   :  { %1346 = vmatpush.bf16.msrb.mxu2 %v4571_v33  ;;  %1359 = vmatpush.bf16.msrb.mxu3 %v4574_v50  ;;  %603 = vst [vmem:[#allocation2 + $0x68] sm:$0xff] %v565_v42  ;;  %v690_v50 = vld [vmem:[#allocation2 + $0x30] sm:$0x3] }
  0xdf   :  { %v593_v5 = vpop.f32.mrf.mxu3  ;;  %v553_v31 = vpop.f32.mrf.mxu0 }
  0xe0   :  { %v579_v1 = vpop.f32.mrf.mxu2  ;;  %605 = vst [vmem:[#allocation2 + $0x48] sm:$0xff] %v593_v5  ;;  %v567_v56 = vpop.f32.mrf.mxu1 }
  0xe1   :  { %604 = vst [vmem:[#allocation2 + $0x8] sm:$0xff] %v579_v1 }
  0xe2   :  { %610 = vst [vmem:[#allocation2 + $0x60] sm:$0xff] %v553_v31  ;;  %v691_v31 = vld [vmem:[#allocation2] sm:$0x3] }
  0xe3   :  { %611 = vst [vmem:[#allocation2 + $0x70] sm:$0xff] %v567_v56 }
  0xe7   :  { %v595_v27 = vpop.f32.mrf.mxu3 }
  0xe8   :  { %v581_v26 = vpop.f32.mrf.mxu2  ;;  %613 = vst [vmem:[#allocation2 + $0x28] sm:$0xff] %v595_v27 }
  0xe9   :  { %612 = vst [vmem:[#allocation2 + $0x78] sm:$0xff] %v581_v26  ;;  %v694_v17 = vld [vmem:[#allocation2 + $0x60] sm:$0xc0] }
  0xea   :  { %v702_v33 = vrot.slane %v694_v17, 4  ;;  %v695_v1 = vld [vmem:[#allocation2 + $0x70] sm:$0xc0] }
  0xeb   :  { %v703_v5 = vrot.slane %v695_v1, 4 }
  0xec   :  { %v711_v42 = vsel %vm710_vm0, %v690_v50, %v702_v33 }
  0xed   :  { %v712_v27 = vsel %vm710_vm0, %v691_v31, %v703_v5 }
  0xf7   :  { %v1045_v55 = vpop.f32.mrf.mxu0  ;;  %v1058_v49 = vpop.f32.mrf.mxu1 }
  0xf8   :  { %v1059_v21 = vadd.f32 %v1058_v49, %v1045_v55 }
  0xfa   :  { %v1140_v38 = vadd.f32 %v1059_v21, %v711_v42 }
  0xfc   :  { %v3526_v3 = vmul.f32 -1.442695, %v1140_v38 }
  0xfe   :  { %3947 = vpow2.f32 %v3526_v3 }
  0xff   :  { %v1084_v56 = vpop.f32.mrf.mxu3  ;;  %v1047_v2 = vpop.f32.mrf.mxu0 }
 0x100   :  { %v1071_v13 = vpop.f32.mrf.mxu2  ;;  %v1060_v9 = vpop.f32.mrf.mxu1 }
 0x101   :  { %v1085_v26 = vadd.f32 %v1084_v56, %v1071_v13  ;;  %v697_v13 = vld [vmem:[#allocation2 + $0x28] sm:$0xc0]  ;;  %v696_v9 = vld [vmem:[#allocation2 + $0x78] sm:$0xc0] }
 0x102   :  { %v705_v31 = vrot.slane %v697_v13, 4 }
 0x103   :  { %v1141_v17 = vadd.f32 %v1085_v26, %v712_v27  ;;  %v704_v26 = vrot.slane %v696_v9, 4 }
 0x104   :  { %v3948_v49 = vpop.eup %3947 }
 0x105   :  { %v3527_v14 = vmul.f32 -1.442695, %v1141_v17  ;;  %v1147_v50 = vadd.f32 1.0, %v3948_v49  ;;  %v693_v17 = vld [vmem:[#allocation2 + $0x18] sm:$0x3]  ;;  %v713_v32 = vsel %vm710_vm0, %v692_v43, %v704_v26 }
 0x106   :  { %v714_v48 = vsel %vm710_vm0, %v693_v17, %v705_v31 }
 0x107   :  { %3949 = vpow2.f32 %v3527_v14  ;;  %v1086_v55 = vpop.f32.mrf.mxu3  ;;  %vm1153_vm3 = vweird.f32 %v1147_v50 }
 0x108   :  { %v1073_v41 = vpop.f32.mrf.mxu2  ;;  %3951 = vrcp.f32 %v1147_v50 }
 0x10d   :  { %v3950_v33 = vpop.eup %3949 }
 0x10e   :  { %v1166_v21 = vadd.f32 1.0, %v3950_v33  ;;  %v3952_v1 = vpop.eup %3951 }
 0x10f   :  { %v1149_v56 = vmul.f32 %v3952_v1, %v1147_v50  ;;  %vm1154_vm1 = vweird.f32 %v3952_v1 }
 0x110   :  { %3953 = vrcp.f32 %v1166_v21  ;;  %vm1172_vm4 = vweird.f32 %v1166_v21  ;;  %vm4652_vm5 = vmor %vm1153_vm3, %vm1154_vm1 }
 0x111   :  { %v1150_v33 = vsub.f32 1.0, %v1149_v56  ;;  %v1178_v56 = vand.u32 2147483648, %v1166_v21 }
 0x113   :  { %v1151_v13 = vmul.f32 %v3952_v1, %v1150_v33 }
 0x116   :  { %v3954_v2 = vpop.eup %3953 }
 0x117   :  { %v1097_v42 = vpop.f32.mrf.mxu0  ;;  %v1110_v38 = vpop.f32.mrf.mxu1  ;;  %v1168_v5 = vmul.f32 %v3954_v2, %v1166_v21  ;;  %vm1173_vm2 = vweird.f32 %v3954_v2 }
 0x118   :  { %v1111_v27 = vadd.f32 %v1110_v38, %v1097_v42  ;;  %v1152_v42 = vadd.f32 %v3952_v1, %v1151_v13  ;;  %vm1174_vm6 = vmor %vm1172_vm4, %vm1173_vm2 }
 0x119   :  { %v1169_v39 = vsub.f32 1.0, %v1168_v5  ;;  %v1159_v5 = vand.u32 2147483648, %v1147_v50 }
 0x11a   :  { %v1142_v20 = vadd.f32 %v1111_v27, %v713_v32  ;;  %v1157_v32 = vand.u32 2147483647, %v1147_v50 }
 0x11b   :  { %v1170_v18 = vmul.f32 %v3954_v2, %v1169_v39  ;;  %v1160_v31 = vor.u32 1.1754944e-38, %v1159_v5 }
 0x11c   :  { %vm1158_vm7 = vcmp.eq.f32.partialorder %v1157_v32, 8.507059e+37  ;;  %v2535_v32 = vld [vmem:[#allocation2 + $0x40] sm:$0xc0] }
 0x11d   :  { %v1171_v38 = vadd.f32 %v3954_v2, %v1170_v18  ;;  %v1179_v18 = vor.u32 1.1754944e-38, %v1178_v56 }
 0x11f   :  { %v1123_v3 = vpop.f32.mrf.mxu2  ;;  %v1136_v14 = vpop.f32.mrf.mxu3 }
 0x120   :  { %v1099_v41 = vpop.f32.mrf.mxu0  ;;  %v1137_v55 = vadd.f32 %v1136_v14, %v1123_v3  ;;  %v1112_v49 = vpop.f32.mrf.mxu1  ;;  %v678_v3 = vlaneseq }
 0x121   :  { %v5396_v49 = vld [vmem:[#allocation38_spill] sm:$0xff] }
 0x122   :  { %v1143_v52 = vadd.f32 %v1137_v55, %v714_v48  ;;  %v679_v27 = vshrl.u32 %v678_v3, 7  ;;  %v5386_v3 = vld [vmem:[#allocation28_spill] sm:$0xff] }
 0x124   :  { %v3528_v19 = vmul.f32 -1.442695, %v1143_v52  ;;  %v1176_v52 = vand.u32 2147483647, %v1166_v21  ;;  %vm683_vm9 = vcmp.lt.s32.totalorder %v679_v27, 2  ;;  %v5390_v27 = vld [vmem:[#allocation32_spill] sm:$0xff] }
 0x125   :  { %vm4661_vm11 = vmxor %vm683_vm9, %vm4294_vm10 }
 0x126   :  { %3955 = vpow2.f32 %v3528_v19  ;;  %v1175_v19 = vsel %vm1174_vm6, %v3954_v2, %v1171_v38  ;;  %vm1177_vm8 = vcmp.eq.f32.partialorder %v1176_v52, 8.507059e+37  ;;  %vm688_vm14 = vmxor %vm4661_vm11, %vm4294_vm10  ;;  %v3927_v52 = vld [vmem:[#allocation9 + $0x28] sm:$0xff] }
 0x127   :  { %v1125_v9 = vpop.f32.mrf.mxu2  ;;  %v1138_v4 = vpop.f32.mrf.mxu3  ;;  %3957 = vtanh.f32 %v1142_v20  ;;  %v1180_v14 = vsel %vm1177_vm8, %v1179_v18, %v1175_v19  ;;  %vm4667_vm2 = vmpackc.low %vm688_vm14, %vm688_vm14  ;;  %v5384_v18 = vld [vmem:[#allocation26_spill] sm:$0xff] }
 0x128   :  { %v1156_v4 = vsel %vm4652_vm5, %v3952_v1, %v1152_v42  ;;  %v1202_v50 = vmul.f32 0.0, %v1180_v14  ;;  %vm4674_vm3 = vmpackc.low %vm4661_vm11, %vm4661_vm11  ;;  %v5388_v14 = vld [vmem:[#allocation30_spill] sm:$0xff] }
 0x129   :  { %v1161_v26 = vsel %vm1158_vm7, %v1160_v31, %v1156_v4  ;;  %v5385_v31 = vld [vmem:[#allocation27_spill] sm:$0xff] }
 0x12c   :  { %v3956_v43 = vpop.eup %3955 }
 0x12d   :  { %v1186_v20 = vadd.f32 1.0, %v3956_v43  ;;  %v3958_v39 = vpop.eup %3957 }
 0x12e   :  { %v1203_v41 = vmul.f32 %v3958_v39, %v1161_v26  ;;  %v5383_v39 = vld [vmem:[#allocation25_spill] sm:$0xff] }
 0x12f   :  { %3959 = vrcp.f32 %v1186_v20  ;;  %v1198_v2 = vand.u32 2147483648, %v1186_v20  ;;  %v1196_v13 = vand.u32 2147483647, %v1186_v20  ;;  %vm1192_vm13 = vweird.f32 %v1186_v20  ;;  %v5387_v26 = vld [vmem:[#allocation29_spill] sm:$0xff] }
 0x130   :  { %v4658_v17 = vadd.f32 %v1203_v41, %v1202_v50  ;;  %v5389_v41 = vld [vmem:[#allocation31_spill] sm:$0xff]  ;;  %v5391_v50 = vld [vmem:[#allocation33_spill] sm:$0xff] }
 0x131   :  { %v1199_v42 = vor.u32 1.1754944e-38, %v1198_v2  ;;  %vm1197_vm1 = vcmp.eq.f32.partialorder %v1196_v13, 8.507059e+37  ;;  %v5395_v2 = vld [vmem:[#allocation37_spill] sm:$0xff]  ;;  %v5398_v13 = vld [vmem:[#allocation40_spill] sm:$0xff] }
 0x132   :  { %3961 = vtanh.f32 %v4658_v17 }
 0x135   :  { %v3960_v21 = vpop.eup %3959 }
 0x136   :  { %v1188_v55 = vmul.f32 %v3960_v21, %v1186_v20  ;;  %vm1193_vm12 = vweird.f32 %v3960_v21 }
 0x137   :  { %vm1194_vm15 = vmor %vm1192_vm13, %vm1193_vm12 }
 0x138   :  { %v1189_v1 = vsub.f32 1.0, %v1188_v55  ;;  %v3962_v56 = vpop.eup %3961  ;;  %v5393_v55 = vld [vmem:[#allocation35_spill] sm:$0xff] }
 0x13a   :  { %v1190_v33 = vmul.f32 %v3960_v21, %v1189_v1  ;;  %v5394_v1 = vld [vmem:[#allocation36_spill] sm:$0xff] }
 0x13c   :  { %v1191_v9 = vadd.f32 %v3960_v21, %v1190_v33  ;;  %v5397_v33 = vld [vmem:[#allocation39_spill] sm:$0xff] }
 0x13e   :  { %v1195_v38 = vsel %vm1194_vm15, %v3960_v21, %v1191_v9  ;;  %v5392_v21 = vld [vmem:[#allocation34_spill] sm:$0xff]  ;;  %v5399_v9 = vld [vmem:[#allocation41_spill] sm:$0xff] }
 0x13f   :  { %v1200_v5 = vsel %vm1197_vm1, %v1199_v42, %v1195_v38  ;;  %v5400_v42 = vld [vmem:[#allocation42_spill] sm:$0xff]  ;;  %v5401_v38 = vld [vmem:[#allocation43_spill] sm:$0xff] }
 0x140   :  { %v1206_v48 = vmul.f32 %v3962_v56, %v1200_v5  ;;  %v5402_v56 = vld [vmem:[#allocation44_spill] sm:$0xff]  ;;  %v5403_v5 = vld [vmem:[#allocation45_spill] sm:$0xff] }
 0x142   :  { %v1208_v43 = vrot.slane %v1206_v48, 1  ;;  %1210 = vst [vmem:[#allocation11] sm:$0x1] %v1206_v48  ;;  %v3530_v4 = vpack.c.bf16 %v1206_v48, %v1206_v48 }
 0x143   :  { %1212 = vst [vmem:[#allocation1] sm:$0xff] %v1206_v48  ;;  %v5404_v48 = vld [vmem:[#allocation46_spill] sm:$0xff] }
 0x144   :  { %1211 = vst [vmem:[#allocation11 + $0x10] sm:$0x1] %v1208_v43  ;;  %3531 = vmatmul.msk.bf16.vlgmr.msra.gmra.mxu0 %vm4667_vm2, %v3530_v4  ;;  %3534 = vmatmul.msk.bf16.vlgmr.msra.gmra.mxu1 %vm4674_vm3, %v3530_v4  ;;  %v5405_v43 = vld [vmem:[#allocation47_spill] sm:$0xff] }
 0x145   :  { %3537 = vmatmul.msk.bf16.vlgmr.msra.gmra.mxu2 %vm4667_vm2, %v3530_v4  ;;  %3540 = vmatmul.msk.bf16.vlgmr.msra.gmra.mxu3 %vm4674_vm3, %v3530_v4 }
 0x146   :  { %1474 = vmatpush.bf16.msra.mxu0 %v4380_v10  ;;  %1487 = vmatpush.bf16.msra.mxu1 %v4382_v11 }
 0x147   :  { %1500 = vmatpush.bf16.msra.mxu2 %v4384_v12  ;;  %1513 = vmatpush.bf16.msra.mxu3 %v4386_v16 }
 0x14a   :  { %1475 = vmatpush.bf16.msra.mxu0 %v4389_v22  ;;  %1488 = vmatpush.bf16.msra.mxu1 %v4393_v23  ;;  %v1214_v19 = vld [vmem:[#allocation1 + $0x2] ss:$9 sm:$0xff] }
 0x14b   :  { %v1216_v20 = vld [vmem:[#allocation1 + $0x3] ss:$9 sm:$0xff]  ;;  %1501 = vmatpush.bf16.msra.mxu2 %v4395_v24  ;;  %1514 = vmatpush.bf16.msra.mxu3 %v4399_v28  ;;  %1219 = vst [vmem:[#allocation11 + $0xf] sm:$0x1] %v1214_v19 }
 0x14c   :  { %1220 = vst [vmem:[#allocation11 + $0x1f] sm:$0x1] %v1216_v20  ;;  %v5407_v19 = vld [vmem:[#allocation49_spill] sm:$0xff]  ;;  %v5408_v20 = vld [vmem:[#allocation50_spill] sm:$0xff] }
 0x14e   :  { %1476 = vmatpush.bf16.msra.mxu0 %v4405_v34  ;;  %1489 = vmatpush.bf16.msra.mxu1 %v4409_v35 }
 0x14f   :  { %1502 = vmatpush.bf16.msra.mxu2 %v4411_v36  ;;  %1515 = vmatpush.bf16.msra.mxu3 %v4414_v40 }
 0x152   :  { %1477 = vmatpush.bf16.msra.mxu0 %v4417_v45  ;;  %1490 = vmatpush.bf16.msra.mxu1 %v4421_v46 }
 0x153   :  { %1503 = vmatpush.bf16.msra.mxu2 %v4423_v47  ;;  %1516 = vmatpush.bf16.msra.mxu3 %v4426_v51 }
 0x154   :  { %3543 = vmatmul.msk.bf16.vlgmr.msrb.gmra.mxu0 %vm4667_vm2, %v3530_v4  ;;  %3546 = vmatmul.msk.bf16.vlgmr.msrb.gmra.mxu1 %vm4674_vm3, %v3530_v4 }
 0x155   :  { %3549 = vmatmul.msk.bf16.vlgmr.msrb.gmra.mxu2 %vm4667_vm2, %v3530_v4  ;;  %3552 = vmatmul.msk.bf16.vlgmr.msrb.gmra.mxu3 %vm4674_vm3, %v3530_v4  ;;  %v5406_v4 = vld [vmem:[#allocation48_spill] sm:$0xff] }
 0x156   :  { %1478 = vmatpush.bf16.msra.mxu0 %v4429_v58  ;;  %1491 = vmatpush.bf16.msra.mxu1 %v4433_v59 }
 0x157   :  { %1504 = vmatpush.bf16.msra.mxu2 %v4435_v60  ;;  %1517 = vmatpush.bf16.msra.mxu3 %v4438_v0 }
 0x15a   :  { %1479 = vmatpush.bf16.msra.mxu0 %v4441_v6  ;;  %1492 = vmatpush.bf16.msra.mxu1 %v4445_v7 }
 0x15b   :  { %1505 = vmatpush.bf16.msra.mxu2 %v4447_v8  ;;  %1518 = vmatpush.bf16.msra.mxu3 %v4450_v15 }
 0x15e   :  { %1480 = vmatpush.bf16.msra.mxu0 %v4453_v25  ;;  %1493 = vmatpush.bf16.msra.mxu1 %v4457_v29 }
 0x15f   :  { %1506 = vmatpush.bf16.msra.mxu2 %v4459_v30  ;;  %1519 = vmatpush.bf16.msra.mxu3 %v4462_v37 }
 0x162   :  { %1481 = vmatpush.bf16.msra.mxu0 %v4465_v44  ;;  %1494 = vmatpush.bf16.msra.mxu1 %v4469_v53 }
 0x163   :  { %1507 = vmatpush.bf16.msra.mxu2 %v4471_v54  ;;  %1520 = vmatpush.bf16.msra.mxu3 %v4474_v57 }
 0x166   :  { %1526 = vmatpush.bf16.msrb.mxu0 %v4476_v61  ;;  %1539 = vmatpush.bf16.msrb.mxu1 %v4478_v62 }
 0x167   :  { %1552 = vmatpush.bf16.msrb.mxu2 %v4480_v63  ;;  %1565 = vmatpush.bf16.msrb.mxu3 %v5383_v39 }
 0x16a   :  { %1527 = vmatpush.bf16.msrb.mxu0 %v5384_v18  ;;  %1540 = vmatpush.bf16.msrb.mxu1 %v5385_v31 }
 0x16b   :  { %1553 = vmatpush.bf16.msrb.mxu2 %v5386_v3  ;;  %1566 = vmatpush.bf16.msrb.mxu3 %v5387_v26 }
 0x16e   :  { %1528 = vmatpush.bf16.msrb.mxu0 %v5388_v14  ;;  %1541 = vmatpush.bf16.msrb.mxu1 %v5389_v41 }
 0x16f   :  { %1554 = vmatpush.bf16.msrb.mxu2 %v5390_v27  ;;  %1567 = vmatpush.bf16.msrb.mxu3 %v5391_v50 }
 0x172   :  { %1529 = vmatpush.bf16.msrb.mxu0 %v5392_v21  ;;  %1542 = vmatpush.bf16.msrb.mxu1 %v5393_v55 }
 0x173   :  { %1555 = vmatpush.bf16.msrb.mxu2 %v5394_v1  ;;  %1568 = vmatpush.bf16.msrb.mxu3 %v5395_v2  ;;  %v1226_v1 = vld [vmem:[#allocation2 + $0x70] sm:$0x30] }
 0x174   :  { %v1246_v21 = vrot.slane %v1226_v1, 2 }
 0x176   :  { %1530 = vmatpush.bf16.msrb.mxu0 %v5396_v49  ;;  %1543 = vmatpush.bf16.msrb.mxu1 %v5397_v33 }
 0x177   :  { %1556 = vmatpush.bf16.msrb.mxu2 %v5398_v13  ;;  %1569 = vmatpush.bf16.msrb.mxu3 %v5399_v9  ;;  %v5409_v13 = vld [vmem:[#allocation51_spill] sm:$0xff]  ;;  %v5410_v9 = vld [vmem:[#allocation52_spill] sm:$0xff] }
 0x17a   :  { %1531 = vmatpush.bf16.msrb.mxu0 %v5400_v42  ;;  %1544 = vmatpush.bf16.msrb.mxu1 %v5401_v38  ;;  %v5411_v42 = vld [vmem:[#allocation53_spill] sm:$0xff]  ;;  %v1221_v38 = vld [vmem:[#allocation2 + $0x30] sm:$0xc] }
 0x17b   :  { %1557 = vmatpush.bf16.msrb.mxu2 %v5402_v56  ;;  %1570 = vmatpush.bf16.msrb.mxu3 %v5403_v5  ;;  %v1225_v56 = vld [vmem:[#allocation2 + $0x60] sm:$0x30]  ;;  %v1233_v33 = vrot.slane %v1221_v38, 2 }
 0x17c   :  { %v1245_v5 = vrot.slane %v1225_v56, 2 }
 0x17e   :  { %1532 = vmatpush.bf16.msrb.mxu0 %v5404_v48  ;;  %1545 = vmatpush.bf16.msrb.mxu1 %v5405_v43  ;;  %v1253_v43 = vsel %vm710_vm0, %v1233_v33, %v1245_v5 }
 0x17f   :  { %1558 = vmatpush.bf16.msrb.mxu2 %v5406_v4  ;;  %1571 = vmatpush.bf16.msrb.mxu3 %v5407_v19  ;;  %v1222_v4 = vld [vmem:[#allocation2] sm:$0xc] }
 0x182   :  { %1533 = vmatpush.bf16.msrb.mxu0 %v5408_v20  ;;  %1546 = vmatpush.bf16.msrb.mxu1 %v5409_v13  ;;  %v1234_v20 = vrot.slane %v1222_v4, 2 }
 0x183   :  { %1559 = vmatpush.bf16.msrb.mxu2 %v5410_v9  ;;  %1572 = vmatpush.bf16.msrb.mxu3 %v5411_v42 }
 0x184   :  { %v1254_v38 = vsel %vm710_vm0, %v1234_v20, %v1246_v21 }
 0x1c1   :  { %v1270_v49 = vpop.f32.mrf.mxu0  ;;  %v1283_v48 = vpop.f32.mrf.mxu1 }
 0x1c2   :  { %v1284_v2 = vadd.f32 %v1283_v48, %v1270_v49 }
 0x1c4   :  { %v1365_v19 = vadd.f32 %v1284_v2, %v1253_v43  ;;  %v1228_v43 = vld [vmem:[#allocation2 + $0x28] sm:$0x30] }
 0x1c6   :  { %v3553_v55 = vmul.f32 -1.442695, %v1365_v19  ;;  %v1248_v19 = vrot.slane %v1228_v43, 2 }
 0x1c8   :  { %3963 = vpow2.f32 %v3553_v55  ;;  %v1296_v13 = vpop.f32.mrf.mxu2  ;;  %v1309_v9 = vpop.f32.mrf.mxu3  ;;  %v1224_v55 = vld [vmem:[#allocation2 + $0x18] sm:$0xc] }
 0x1c9   :  { %v1310_v50 = vadd.f32 %v1309_v9, %v1296_v13  ;;  %v1272_v42 = vpop.f32.mrf.mxu0  ;;  %v1285_v27 = vpop.f32.mrf.mxu1  ;;  %v1236_v21 = vrot.slane %v1224_v55, 2 }
 0x1ca   :  { %v1227_v42 = vld [vmem:[#allocation2 + $0x78] sm:$0x30] }
 0x1cb   :  { %v1366_v56 = vadd.f32 %v1310_v50, %v1254_v38  ;;  %v1247_v26 = vrot.slane %v1227_v42, 2 }
 0x1cd   :  { %v3554_v41 = vmul.f32 -1.442695, %v1366_v56  ;;  %v1256_v56 = vsel %vm710_vm0, %v1236_v21, %v1248_v19 }
 0x1ce   :  { %v3964_v14 = vpop.eup %3963 }
 0x1cf   :  { %v1372_v49 = vadd.f32 1.0, %v3964_v14  ;;  %3965 = vpow2.f32 %v3554_v41 }
 0x1d0   :  { %v1298_v33 = vpop.f32.mrf.mxu2  ;;  %v1311_v5 = vpop.f32.mrf.mxu3 }
 0x1d1   :  { %3967 = vrcp.f32 %v1372_v49  ;;  %v1322_v2 = vpop.f32.mrf.mxu0  ;;  %v1335_v48 = vpop.f32.mrf.mxu1  ;;  %v1223_v33 = vld [vmem:[#allocation2 + $0x58] sm:$0xc]  ;;  %v1384_v21 = vand.u32 2147483648, %v1372_v49  ;;  %vm1378_vm6 = vweird.f32 %v1372_v49 }
 0x1d2   :  { %v1336_v3 = vadd.f32 %v1335_v48, %v1322_v2  ;;  %v1235_v43 = vrot.slane %v1223_v33, 2  ;;  %v1382_v2 = vand.u32 2147483647, %v1372_v49 }
 0x1d4   :  { %v1255_v55 = vsel %vm710_vm0, %v1235_v43, %v1247_v26  ;;  %vm1383_vm11 = vcmp.eq.f32.partialorder %v1382_v2, 8.507059e+37 }
 0x1d5   :  { %v3966_v1 = vpop.eup %3965 }
 0x1d6   :  { %v1391_v4 = vadd.f32 1.0, %v3966_v1 }
 0x1d7   :  { %v3968_v13 = vpop.eup %3967 }
 0x1d8   :  { %v1374_v9 = vmul.f32 %v3968_v13, %v1372_v49  ;;  %3969 = vrcp.f32 %v1391_v4  ;;  %v1348_v27 = vpop.f32.mrf.mxu2  ;;  %v1361_v50 = vpop.f32.mrf.mxu3  ;;  %vm1379_vm4 = vweird.f32 %v3968_v13  ;;  %v1401_v42 = vand.u32 2147483647, %v1391_v4 }
 0x1d9   :  { %v1362_v20 = vadd.f32 %v1361_v50, %v1348_v27  ;;  %v1324_v14 = vpop.f32.mrf.mxu0  ;;  %v1337_v41 = vpop.f32.mrf.mxu1  ;;  %v1367_v50 = vadd.f32 %v1336_v3, %v1255_v55  ;;  %vm1397_vm7 = vweird.f32 %v1391_v4  ;;  %vm1380_vm8 = vmor %vm1378_vm6, %vm1379_vm4 }
 0x1da   :  { %v1375_v38 = vsub.f32 1.0, %v1374_v9  ;;  %v1403_v14 = vand.u32 2147483648, %v1391_v4  ;;  %vm1402_vm10 = vcmp.eq.f32.partialorder %v1401_v42, 8.507059e+37 }
 0x1db   :  { %v1368_v5 = vadd.f32 %v1362_v20, %v1256_v56 }
 0x1dc   :  { %v1376_v18 = vmul.f32 %v3968_v13, %v1375_v38 }
 0x1dd   :  { %v3555_v31 = vmul.f32 -1.442695, %v1368_v5 }
 0x1de   :  { %v3970_v1 = vpop.eup %3969  ;;  %v1377_v9 = vadd.f32 %v3968_v13, %v1376_v18 }
 0x1df   :  { %v1393_v39 = vmul.f32 %v3970_v1, %v1391_v4  ;;  %3971 = vpow2.f32 %v3555_v31  ;;  %vm1398_vm5 = vweird.f32 %v3970_v1  ;;  %v1404_v31 = vor.u32 1.1754944e-38, %v1403_v14 }
 0x1e0   :  { %v1350_v63 = vpop.f32.mrf.mxu2  ;;  %v1363_v62 = vpop.f32.mrf.mxu3  ;;  %3973 = vtanh.f32 %v1367_v50  ;;  %vm1399_vm9 = vmor %vm1397_vm7, %vm1398_vm5 }
 0x1e1   :  { %v1394_v27 = vsub.f32 1.0, %v1393_v39  ;;  %v1381_v63 = vsel %vm1380_vm8, %v3968_v13, %v1377_v9  ;;  %v1385_v39 = vor.u32 1.1754944e-38, %v1384_v21 }
 0x1e3   :  { %v1395_v19 = vmul.f32 %v3970_v1, %v1394_v27  ;;  %v1386_v26 = vsel %vm1383_vm11, %v1385_v39, %v1381_v63  ;;  %v5415_v63 = vld [vmem:[#allocation26_spill] sm:$0xff]  ;;  %v5417_v39 = vld [vmem:[#allocation28_spill] sm:$0xff] }
 0x1e5   :  { %v3972_v48 = vpop.eup %3971  ;;  %v1396_v20 = vadd.f32 %v3970_v1, %v1395_v19 }
 0x1e6   :  { %v1411_v62 = vadd.f32 1.0, %v3972_v48  ;;  %v3974_v38 = vpop.eup %3973  ;;  %v5412_v48 = vld [vmem:[#allocation23_spill] sm:$0xff] }
 0x1e7   :  { %v1400_v3 = vsel %vm1399_vm9, %v3970_v1, %v1396_v20  ;;  %v1428_v49 = vmul.f32 %v3974_v38, %v1386_v26  ;;  %v5413_v20 = vld [vmem:[#allocation24_spill] sm:$0xff]  ;;  %v5420_v26 = vld [vmem:[#allocation31_spill] sm:$0xff]  ;;  %v5422_v38 = vld [vmem:[#allocation33_spill] sm:$0xff] }
 0x1e8   :  { %v1405_v18 = vsel %vm1402_vm10, %v1404_v31, %v1400_v3  ;;  %3975 = vrcp.f32 %v1411_v62  ;;  %v1423_v13 = vand.u32 2147483648, %v1411_v62  ;;  %v1421_v1 = vand.u32 2147483647, %v1411_v62  ;;  %v5414_v31 = vld [vmem:[#allocation25_spill] sm:$0xff] }
 0x1e9   :  { %v1427_v41 = vmul.f32 %v1405_v18, %v4658_v17  ;;  %vm1417_vm13 = vweird.f32 %v1411_v62  ;;  %v5418_v3 = vld [vmem:[#allocation29_spill] sm:$0xff]  ;;  %v5419_v18 = vld [vmem:[#allocation30_spill] sm:$0xff] }
 0x1ea   :  { %v1424_v27 = vor.u32 1.1754944e-38, %v1423_v13  ;;  %vm1422_vm15 = vcmp.eq.f32.partialorder %v1421_v1, 8.507059e+37  ;;  %v5427_v13 = vld [vmem:[#allocation38_spill] sm:$0xff]  ;;  %v5429_v1 = vld [vmem:[#allocation40_spill] sm:$0xff] }
 0x1eb   :  { %v4763_v4 = vadd.f32 %v1428_v49, %v1427_v41  ;;  %v5421_v41 = vld [vmem:[#allocation32_spill] sm:$0xff]  ;;  %v5423_v49 = vld [vmem:[#allocation34_spill] sm:$0xff] }
 0x1ed   :  { %3977 = vtanh.f32 %v4763_v4 }
 0x1ee   :  { %v3976_v56 = vpop.eup %3975 }
 0x1ef   :  { %v1413_v33 = vmul.f32 %v3976_v56, %v1411_v62  ;;  %vm1418_vm12 = vweird.f32 %v3976_v56  ;;  %v5416_v62 = vld [vmem:[#allocation27_spill] sm:$0xff] }
 0x1f0   :  { %vm1419_vm14 = vmor %vm1417_vm13, %vm1418_vm12 }
 0x1f1   :  { %v1414_v5 = vsub.f32 1.0, %v1413_v33  ;;  %v5425_v33 = vld [vmem:[#allocation36_spill] sm:$0xff] }
 0x1f3   :  { %v1415_v43 = vmul.f32 %v3976_v56, %v1414_v5  ;;  %v3978_v17 = vpop.eup %3977  ;;  %v5426_v5 = vld [vmem:[#allocation37_spill] sm:$0xff] }
 0x1f5   :  { %v1416_v55 = vadd.f32 %v3976_v56, %v1415_v43  ;;  %v5428_v43 = vld [vmem:[#allocation39_spill] sm:$0xff] }
 0x1f7   :  { %v1420_v50 = vsel %vm1419_vm14, %v3976_v56, %v1416_v55  ;;  %v5424_v56 = vld [vmem:[#allocation35_spill] sm:$0xff]  ;;  %v5430_v55 = vld [vmem:[#allocation41_spill] sm:$0xff] }
 0x1f8   :  { %v1425_v14 = vsel %vm1422_vm15, %v1424_v27, %v1420_v50  ;;  %v5431_v27 = vld [vmem:[#allocation42_spill] sm:$0xff]  ;;  %v5432_v50 = vld [vmem:[#allocation43_spill] sm:$0xff] }
 0x1f9   :  { %v1431_v9 = vmul.f32 %v3978_v17, %v1425_v14  ;;  %v5433_v17 = vld [vmem:[#allocation44_spill] sm:$0xff]  ;;  %v5434_v14 = vld [vmem:[#allocation45_spill] sm:$0xff] }
 0x1fb   :  { %v1433_v19 = vrot.slane %v1431_v9, 1  ;;  %1435 = vst [vmem:[#allocation11 + $0x1] sm:$0x1] %v1431_v9  ;;  %v3557_v21 = vpack.c.bf16 %v1431_v9, %v1431_v9 }
 0x1fc   :  { %1437 = vst [vmem:[#allocation1] sm:$0xff] %v1431_v9  ;;  %v5435_v9 = vld [vmem:[#allocation46_spill] sm:$0xff] }
 0x1fd   :  { %1436 = vst [vmem:[#allocation11 + $0x11] sm:$0x1] %v1433_v19  ;;  %3558 = vmatmul.msk.bf16.vlgmr.msra.gmra.mxu0 %vm4667_vm2, %v3557_v21  ;;  %3561 = vmatmul.msk.bf16.vlgmr.msra.gmra.mxu1 %vm4674_vm3, %v3557_v21  ;;  %v5436_v19 = vld [vmem:[#allocation47_spill] sm:$0xff] }
 0x1fe   :  { %3564 = vmatmul.msk.bf16.vlgmr.msra.gmra.mxu2 %vm4667_vm2, %v3557_v21  ;;  %3567 = vmatmul.msk.bf16.vlgmr.msra.gmra.mxu3 %vm4674_vm3, %v3557_v21 }
 0x1ff   :  { %1699 = vmatpush.bf16.msra.mxu0 %v4380_v10  ;;  %1712 = vmatpush.bf16.msra.mxu1 %v4382_v11 }
 0x200   :  { %1725 = vmatpush.bf16.msra.mxu2 %v4384_v12  ;;  %1738 = vmatpush.bf16.msra.mxu3 %v4386_v16 }
 0x203   :  { %1700 = vmatpush.bf16.msra.mxu0 %v4389_v22  ;;  %1713 = vmatpush.bf16.msra.mxu1 %v4393_v23  ;;  %v1439_v42 = vld [vmem:[#allocation1 + $0x2] ss:$9 sm:$0xff] }
 0x204   :  { %v1441_v2 = vld [vmem:[#allocation1 + $0x3] ss:$9 sm:$0xff]  ;;  %1726 = vmatpush.bf16.msra.mxu2 %v4395_v24  ;;  %1739 = vmatpush.bf16.msra.mxu3 %v4399_v28  ;;  %1444 = vst [vmem:[#allocation11 + $0xe] sm:$0x1] %v1439_v42 }
 0x205   :  { %1445 = vst [vmem:[#allocation11 + $0x1e] sm:$0x1] %v1441_v2  ;;  %v5438_v42 = vld [vmem:[#allocation49_spill] sm:$0xff]  ;;  %v5439_v2 = vld [vmem:[#allocation50_spill] sm:$0xff] }
 0x207   :  { %1701 = vmatpush.bf16.msra.mxu0 %v4405_v34  ;;  %1714 = vmatpush.bf16.msra.mxu1 %v4409_v35 }
 0x208   :  { %1727 = vmatpush.bf16.msra.mxu2 %v4411_v36  ;;  %1740 = vmatpush.bf16.msra.mxu3 %v4414_v40 }
 0x20b   :  { %1702 = vmatpush.bf16.msra.mxu0 %v4417_v45  ;;  %1715 = vmatpush.bf16.msra.mxu1 %v4421_v46 }
 0x20c   :  { %1728 = vmatpush.bf16.msra.mxu2 %v4423_v47  ;;  %1741 = vmatpush.bf16.msra.mxu3 %v4426_v51 }
 0x20d   :  { %3570 = vmatmul.msk.bf16.vlgmr.msrb.gmra.mxu0 %vm4667_vm2, %v3557_v21  ;;  %3573 = vmatmul.msk.bf16.vlgmr.msrb.gmra.mxu1 %vm4674_vm3, %v3557_v21 }
 0x20e   :  { %3576 = vmatmul.msk.bf16.vlgmr.msrb.gmra.mxu2 %vm4667_vm2, %v3557_v21  ;;  %3579 = vmatmul.msk.bf16.vlgmr.msrb.gmra.mxu3 %vm4674_vm3, %v3557_v21  ;;  %v5437_v21 = vld [vmem:[#allocation48_spill] sm:$0xff] }
 0x20f   :  { %1703 = vmatpush.bf16.msra.mxu0 %v4429_v58  ;;  %1716 = vmatpush.bf16.msra.mxu1 %v4433_v59 }
 0x210   :  { %1729 = vmatpush.bf16.msra.mxu2 %v4435_v60  ;;  %1742 = vmatpush.bf16.msra.mxu3 %v4438_v0 }
 0x213   :  { %1704 = vmatpush.bf16.msra.mxu0 %v4441_v6  ;;  %1717 = vmatpush.bf16.msra.mxu1 %v4445_v7 }
 0x214   :  { %1730 = vmatpush.bf16.msra.mxu2 %v4447_v8  ;;  %1743 = vmatpush.bf16.msra.mxu3 %v4450_v15 }
 0x217   :  { %1705 = vmatpush.bf16.msra.mxu0 %v4453_v25  ;;  %1718 = vmatpush.bf16.msra.mxu1 %v4457_v29 }
 0x218   :  { %1731 = vmatpush.bf16.msra.mxu2 %v4459_v30  ;;  %1744 = vmatpush.bf16.msra.mxu3 %v4462_v37 }
 0x21b   :  { %1706 = vmatpush.bf16.msra.mxu0 %v4465_v44  ;;  %1719 = vmatpush.bf16.msra.mxu1 %v4469_v53 }
 0x21c   :  { %1732 = vmatpush.bf16.msra.mxu2 %v4471_v54  ;;  %1745 = vmatpush.bf16.msra.mxu3 %v4474_v57 }
 0x21f   :  { %1751 = vmatpush.bf16.msrb.mxu0 %v4476_v61  ;;  %1764 = vmatpush.bf16.msrb.mxu1 %v5412_v48 }
 0x220   :  { %1777 = vmatpush.bf16.msrb.mxu2 %v5413_v20  ;;  %1790 = vmatpush.bf16.msrb.mxu3 %v5414_v31 }
 0x223   :  { %1752 = vmatpush.bf16.msrb.mxu0 %v5415_v63  ;;  %1765 = vmatpush.bf16.msrb.mxu1 %v5416_v62 }
 0x224   :  { %1778 = vmatpush.bf16.msrb.mxu2 %v5417_v39  ;;  %1791 = vmatpush.bf16.msrb.mxu3 %v5418_v3 }
 0x227   :  { %1753 = vmatpush.bf16.msrb.mxu0 %v5419_v18  ;;  %1766 = vmatpush.bf16.msrb.mxu1 %v5420_v26 }
 0x228   :  { %1779 = vmatpush.bf16.msrb.mxu2 %v5421_v41  ;;  %1792 = vmatpush.bf16.msrb.mxu3 %v5422_v38 }
 0x22b   :  { %1754 = vmatpush.bf16.msrb.mxu0 %v5423_v49  ;;  %1767 = vmatpush.bf16.msrb.mxu1 %v5424_v56  ;;  %v1451_v56 = vld [vmem:[#allocation2 + $0x70] sm:$0xc] }
 0x22c   :  { %1780 = vmatpush.bf16.msrb.mxu2 %v5425_v33  ;;  %1793 = vmatpush.bf16.msrb.mxu3 %v5426_v5  ;;  %v1447_v5 = vld [vmem:[#allocation2] sm:$0x30] }
 0x22f   :  { %1755 = vmatpush.bf16.msrb.mxu0 %v5427_v13  ;;  %1768 = vmatpush.bf16.msrb.mxu1 %v5428_v43  ;;  %v1450_v43 = vld [vmem:[#allocation2 + $0x60] sm:$0xc] }
 0x230   :  { %1781 = vmatpush.bf16.msrb.mxu2 %v5429_v1  ;;  %1794 = vmatpush.bf16.msrb.mxu3 %v5430_v55  ;;  %v5440_v1 = vld [vmem:[#allocation51_spill] sm:$0xff]  ;;  %v5441_v55 = vld [vmem:[#allocation52_spill] sm:$0xff] }
 0x233   :  { %1756 = vmatpush.bf16.msrb.mxu0 %v5431_v27  ;;  %1769 = vmatpush.bf16.msrb.mxu1 %v5432_v50  ;;  %v5442_v27 = vld [vmem:[#allocation53_spill] sm:$0xff]  ;;  %v1446_v50 = vld [vmem:[#allocation2 + $0x30] sm:$0x30] }
 0x234   :  { %1782 = vmatpush.bf16.msrb.mxu2 %v5433_v17  ;;  %1795 = vmatpush.bf16.msrb.mxu3 %v5434_v14  ;;  %v1458_v17 = vrot.slane %v1446_v50, 4 }
 0x237   :  { %1757 = vmatpush.bf16.msrb.mxu0 %v5435_v9  ;;  %1770 = vmatpush.bf16.msrb.mxu1 %v5436_v19  ;;  %v1466_v19 = vsel %vm710_vm0, %v1458_v17, %v1450_v43 }
 0x238   :  { %1783 = vmatpush.bf16.msrb.mxu2 %v5437_v21  ;;  %1796 = vmatpush.bf16.msrb.mxu3 %v5438_v42  ;;  %v1459_v42 = vrot.slane %v1447_v5, 4 }
 0x23b   :  { %1758 = vmatpush.bf16.msrb.mxu0 %v5439_v2  ;;  %1771 = vmatpush.bf16.msrb.mxu1 %v5440_v1 }
 0x23c   :  { %1784 = vmatpush.bf16.msrb.mxu2 %v5441_v55  ;;  %1797 = vmatpush.bf16.msrb.mxu3 %v5442_v27  ;;  %v1467_v27 = vsel %vm710_vm0, %v1459_v42, %v1451_v56 }
 0x27a   :  { %v1483_v14 = vpop.f32.mrf.mxu0  ;;  %v1496_v13 = vpop.f32.mrf.mxu1 }
 0x27b   :  { %v1497_v9 = vadd.f32 %v1496_v13, %v1483_v14 }
 0x27d   :  { %v1578_v21 = vadd.f32 %v1497_v9, %v1466_v19  ;;  %v1449_v9 = vld [vmem:[#allocation2 + $0x18] sm:$0x30] }
 0x27f   :  { %v3580_v33 = vmul.f32 -1.442695, %v1578_v21  ;;  %v1453_v21 = vld [vmem:[#allocation2 + $0x28] sm:$0xc] }
 0x281   :  { %3979 = vpow2.f32 %v3580_v33  ;;  %v1509_v2 = vpop.f32.mrf.mxu2  ;;  %v1522_v1 = vpop.f32.mrf.mxu3 }
 0x282   :  { %v1523_v49 = vadd.f32 %v1522_v1, %v1509_v2  ;;  %v1485_v55 = vpop.f32.mrf.mxu0  ;;  %v1498_v38 = vpop.f32.mrf.mxu1  ;;  %v1448_v2 = vld [vmem:[#allocation2 + $0x58] sm:$0x30] }
 0x283   :  { %v1461_v55 = vrot.slane %v1449_v9, 4 }
 0x284   :  { %v1579_v50 = vadd.f32 %v1523_v49, %v1467_v27 }
 0x286   :  { %v3581_v41 = vmul.f32 -1.442695, %v1579_v50 }
 0x287   :  { %v3980_v26 = vpop.eup %3979 }
 0x288   :  { %v1585_v18 = vadd.f32 1.0, %v3980_v26  ;;  %3981 = vpow2.f32 %v3581_v41  ;;  %v1469_v41 = vsel %vm710_vm0, %v1461_v55, %v1453_v21 }
 0x289   :  { %v1511_v13 = vpop.f32.mrf.mxu2  ;;  %v1524_v43 = vpop.f32.mrf.mxu3 }
 0x28a   :  { %3983 = vrcp.f32 %v1585_v18  ;;  %v1535_v17 = vpop.f32.mrf.mxu0  ;;  %v1548_v14 = vpop.f32.mrf.mxu1  ;;  %v1452_v13 = vld [vmem:[#allocation2 + $0x78] sm:$0xc]  ;;  %v1597_v55 = vand.u32 2147483648, %v1585_v18  ;;  %vm1591_vm5 = vweird.f32 %v1585_v18 }
 0x28b   :  { %v1549_v43 = vadd.f32 %v1548_v14, %v1535_v17  ;;  %v1595_v17 = vand.u32 2147483647, %v1585_v18 }
 0x28d   :  { %vm1596_vm10 = vcmp.eq.f32.partialorder %v1595_v17, 8.507059e+37 }
 0x28e   :  { %v3982_v5 = vpop.eup %3981 }
 0x28f   :  { %v1604_v33 = vadd.f32 1.0, %v3982_v5  ;;  %v1460_v5 = vrot.slane %v1448_v2, 4 }
 0x290   :  { %v3984_v19 = vpop.eup %3983 }
 0x291   :  { %v1587_v1 = vmul.f32 %v3984_v19, %v1585_v18  ;;  %3985 = vrcp.f32 %v1604_v33  ;;  %v1561_v38 = vpop.f32.mrf.mxu2  ;;  %v1574_v56 = vpop.f32.mrf.mxu3  ;;  %v1468_v31 = vsel %vm710_vm0, %v1460_v5, %v1452_v13  ;;  %vm1592_vm1 = vweird.f32 %v3984_v19 }
 0x292   :  { %v1575_v49 = vadd.f32 %v1574_v56, %v1561_v38  ;;  %v1537_v27 = vpop.f32.mrf.mxu0  ;;  %v1550_v42 = vpop.f32.mrf.mxu1  ;;  %v1580_v56 = vadd.f32 %v1549_v43, %v1468_v31  ;;  %vm1610_vm6 = vweird.f32 %v1604_v33  ;;  %vm1593_vm7 = vmor %vm1591_vm5, %vm1592_vm1 }
 0x293   :  { %v1588_v26 = vsub.f32 1.0, %v1587_v1  ;;  %v1616_v27 = vand.u32 2147483648, %v1604_v33 }
 0x294   :  { %v1581_v50 = vadd.f32 %v1575_v49, %v1469_v41  ;;  %v1614_v49 = vand.u32 2147483647, %v1604_v33 }
 0x295   :  { %v1589_v62 = vmul.f32 %v3984_v19, %v1588_v26 }
 0x296   :  { %v3582_v3 = vmul.f32 -1.442695, %v1581_v50  ;;  %vm1615_vm9 = vcmp.eq.f32.partialorder %v1614_v49, 8.507059e+37 }
 0x297   :  { %v3986_v39 = vpop.eup %3985  ;;  %v1590_v1 = vadd.f32 %v3984_v19, %v1589_v62 }
 0x298   :  { %v1606_v63 = vmul.f32 %v3986_v39, %v1604_v33  ;;  %3987 = vpow2.f32 %v3582_v3  ;;  %vm1611_vm4 = vweird.f32 %v3986_v39  ;;  %v1617_v3 = vor.u32 1.1754944e-38, %v1616_v27 }
 0x299   :  { %v1563_v9 = vpop.f32.mrf.mxu2  ;;  %v1576_v20 = vpop.f32.mrf.mxu3  ;;  %3989 = vtanh.f32 %v1580_v56  ;;  %vm1612_vm8 = vmor %vm1610_vm6, %vm1611_vm4  ;;  %v1594_v26 = vsel %vm1593_vm7, %v3984_v19, %v1590_v1 }
 0x29a   :  { %v1607_v38 = vsub.f32 1.0, %v1606_v63  ;;  %v1598_v63 = vor.u32 1.1754944e-38, %v1597_v55 }
 0x29c   :  { %v1608_v21 = vmul.f32 %v3986_v39, %v1607_v38  ;;  %v1599_v41 = vsel %vm1596_vm10, %v1598_v63, %v1594_v26  ;;  %v5445_v26 = vld [vmem:[#allocation26_spill] sm:$0xff]  ;;  %v5447_v63 = vld [vmem:[#allocation28_spill] sm:$0xff] }
 0x29e   :  { %v3988_v14 = vpop.eup %3987  ;;  %v1609_v42 = vadd.f32 %v3986_v39, %v1608_v21 }
 0x29f   :  { %v1624_v20 = vadd.f32 1.0, %v3988_v14  ;;  %v3990_v50 = vpop.eup %3989 }
 0x2a0   :  { %v1613_v31 = vsel %vm1612_vm8, %v3986_v39, %v1609_v42  ;;  %v1641_v18 = vmul.f32 %v3990_v50, %v1599_v41  ;;  %v5443_v42 = vld [vmem:[#allocation24_spill] sm:$0xff]  ;;  %v5450_v41 = vld [vmem:[#allocation31_spill] sm:$0xff]  ;;  %v5452_v50 = vld [vmem:[#allocation33_spill] sm:$0xff] }
 0x2a1   :  { %v1618_v62 = vsel %vm1615_vm9, %v1617_v3, %v1613_v31  ;;  %3991 = vrcp.f32 %v1624_v20  ;;  %v1636_v19 = vand.u32 2147483648, %v1624_v20  ;;  %v1634_v39 = vand.u32 2147483647, %v1624_v20  ;;  %v5444_v3 = vld [vmem:[#allocation25_spill] sm:$0xff] }
 0x2a2   :  { %v1640_v2 = vmul.f32 %v1618_v62, %v4763_v4  ;;  %vm1630_vm12 = vweird.f32 %v1624_v20  ;;  %v5448_v31 = vld [vmem:[#allocation29_spill] sm:$0xff]  ;;  %v5449_v62 = vld [vmem:[#allocation30_spill] sm:$0xff] }
 0x2a3   :  { %v1637_v56 = vor.u32 1.1754944e-38, %v1636_v19  ;;  %vm1635_vm14 = vcmp.eq.f32.partialorder %v1634_v39, 8.507059e+37  ;;  %v5457_v19 = vld [vmem:[#allocation38_spill] sm:$0xff]  ;;  %v5459_v39 = vld [vmem:[#allocation40_spill] sm:$0xff] }
 0x2a4   :  { %v4851_v33 = vadd.f32 %v1641_v18, %v1640_v2  ;;  %v5451_v2 = vld [vmem:[#allocation32_spill] sm:$0xff]  ;;  %v5453_v18 = vld [vmem:[#allocation34_spill] sm:$0xff] }
 0x2a6   :  { %3993 = vtanh.f32 %v4851_v33 }
 0x2a7   :  { %v3992_v13 = vpop.eup %3991 }
 0x2a8   :  { %v1626_v43 = vmul.f32 %v3992_v13, %v1624_v20  ;;  %vm1631_vm11 = vweird.f32 %v3992_v13  ;;  %v5446_v20 = vld [vmem:[#allocation27_spill] sm:$0xff] }
 0x2a9   :  { %vm1632_vm13 = vmor %vm1630_vm12, %vm1631_vm11 }
 0x2aa   :  { %v1627_v5 = vsub.f32 1.0, %v1626_v43  ;;  %v5455_v43 = vld [vmem:[#allocation36_spill] sm:$0xff] }
 0x2ac   :  { %v1628_v9 = vmul.f32 %v3992_v13, %v1627_v5  ;;  %v3994_v4 = vpop.eup %3993  ;;  %v5456_v5 = vld [vmem:[#allocation37_spill] sm:$0xff] }
 0x2ae   :  { %v1629_v38 = vadd.f32 %v3992_v13, %v1628_v9  ;;  %v5458_v9 = vld [vmem:[#allocation39_spill] sm:$0xff] }
 0x2b0   :  { %v1633_v27 = vsel %vm1632_vm13, %v3992_v13, %v1629_v38  ;;  %v5454_v13 = vld [vmem:[#allocation35_spill] sm:$0xff]  ;;  %v5460_v38 = vld [vmem:[#allocation41_spill] sm:$0xff] }
 0x2b1   :  { %v1638_v1 = vsel %vm1635_vm14, %v1637_v56, %v1633_v27  ;;  %v5461_v56 = vld [vmem:[#allocation42_spill] sm:$0xff]  ;;  %v5462_v27 = vld [vmem:[#allocation43_spill] sm:$0xff] }
 0x2b2   :  { %v1644_v21 = vmul.f32 %v3994_v4, %v1638_v1  ;;  %v5463_v4 = vld [vmem:[#allocation44_spill] sm:$0xff]  ;;  %v5464_v1 = vld [vmem:[#allocation45_spill] sm:$0xff] }
 0x2b4   :  { %v1646_v55 = vrot.slane %v1644_v21, 1  ;;  %1648 = vst [vmem:[#allocation11 + $0x2] sm:$0x1] %v1644_v21  ;;  %v3584_v49 = vpack.c.bf16 %v1644_v21, %v1644_v21 }
 0x2b5   :  { %1650 = vst [vmem:[#allocation1] sm:$0xff] %v1644_v21  ;;  %v5465_v21 = vld [vmem:[#allocation46_spill] sm:$0xff] }
 0x2b6   :  { %1649 = vst [vmem:[#allocation11 + $0x12] sm:$0x1] %v1646_v55  ;;  %3585 = vmatmul.msk.bf16.vlgmr.msra.gmra.mxu0 %vm4667_vm2, %v3584_v49  ;;  %3588 = vmatmul.msk.bf16.vlgmr.msra.gmra.mxu1 %vm4674_vm3, %v3584_v49  ;;  %v5466_v55 = vld [vmem:[#allocation47_spill] sm:$0xff] }
 0x2b7   :  { %3591 = vmatmul.msk.bf16.vlgmr.msra.gmra.mxu2 %vm4667_vm2, %v3584_v49  ;;  %3594 = vmatmul.msk.bf16.vlgmr.msra.gmra.mxu3 %vm4674_vm3, %v3584_v49 }
 0x2b8   :  { %1912 = vmatpush.bf16.msra.mxu0 %v4380_v10  ;;  %1925 = vmatpush.bf16.msra.mxu1 %v4382_v11 }
 0x2b9   :  { %1938 = vmatpush.bf16.msra.mxu2 %v4384_v12  ;;  %1951 = vmatpush.bf16.msra.mxu3 %v4386_v16 }
 0x2bc   :  { %v1652_v17 = vld [vmem:[#allocation1 + $0x2] ss:$9 sm:$0xff]  ;;  %1913 = vmatpush.bf16.msra.mxu0 %v4389_v22  ;;  %1926 = vmatpush.bf16.msra.mxu1 %v4393_v23 }
 0x2bd   :  { %v1654_v14 = vld [vmem:[#allocation1 + $0x3] ss:$9 sm:$0xff]  ;;  %1657 = vst [vmem:[#allocation11 + $0xd] sm:$0x1] %v1652_v17  ;;  %1939 = vmatpush.bf16.msra.mxu2 %v4395_v24  ;;  %1952 = vmatpush.bf16.msra.mxu3 %v4399_v28 }
 0x2be   :  { %1658 = vst [vmem:[#allocation11 + $0x1d] sm:$0x1] %v1654_v14  ;;  %v5468_v17 = vld [vmem:[#allocation49_spill] sm:$0xff]  ;;  %v5469_v14 = vld [vmem:[#allocation50_spill] sm:$0xff] }
 0x2c0   :  { %1914 = vmatpush.bf16.msra.mxu0 %v4405_v34  ;;  %1927 = vmatpush.bf16.msra.mxu1 %v4409_v35 }
 0x2c1   :  { %1940 = vmatpush.bf16.msra.mxu2 %v4411_v36  ;;  %1953 = vmatpush.bf16.msra.mxu3 %v4414_v40 }
 0x2c4   :  { %1915 = vmatpush.bf16.msra.mxu0 %v4417_v45  ;;  %1928 = vmatpush.bf16.msra.mxu1 %v4421_v46 }
 0x2c5   :  { %1941 = vmatpush.bf16.msra.mxu2 %v4423_v47  ;;  %1954 = vmatpush.bf16.msra.mxu3 %v4426_v51 }
 0x2c6   :  { %3597 = vmatmul.msk.bf16.vlgmr.msrb.gmra.mxu0 %vm4667_vm2, %v3584_v49  ;;  %3600 = vmatmul.msk.bf16.vlgmr.msrb.gmra.mxu1 %vm4674_vm3, %v3584_v49 }
 0x2c7   :  { %3603 = vmatmul.msk.bf16.vlgmr.msrb.gmra.mxu2 %vm4667_vm2, %v3584_v49  ;;  %3606 = vmatmul.msk.bf16.vlgmr.msrb.gmra.mxu3 %vm4674_vm3, %v3584_v49  ;;  %v5467_v49 = vld [vmem:[#allocation48_spill] sm:$0xff] }
 0x2c8   :  { %1916 = vmatpush.bf16.msra.mxu0 %v4429_v58  ;;  %1929 = vmatpush.bf16.msra.mxu1 %v4433_v59 }
 0x2c9   :  { %1942 = vmatpush.bf16.msra.mxu2 %v4435_v60  ;;  %1955 = vmatpush.bf16.msra.mxu3 %v4438_v0 }
 0x2cc   :  { %1917 = vmatpush.bf16.msra.mxu0 %v4441_v6  ;;  %1930 = vmatpush.bf16.msra.mxu1 %v4445_v7 }
 0x2cd   :  { %1943 = vmatpush.bf16.msra.mxu2 %v4447_v8  ;;  %1956 = vmatpush.bf16.msra.mxu3 %v4450_v15 }
 0x2d0   :  { %1918 = vmatpush.bf16.msra.mxu0 %v4453_v25  ;;  %1931 = vmatpush.bf16.msra.mxu1 %v4457_v29 }
 0x2d1   :  { %1944 = vmatpush.bf16.msra.mxu2 %v4459_v30  ;;  %1957 = vmatpush.bf16.msra.mxu3 %v4462_v37 }
 0x2d4   :  { %1919 = vmatpush.bf16.msra.mxu0 %v4465_v44  ;;  %1932 = vmatpush.bf16.msra.mxu1 %v4469_v53 }
 0x2d5   :  { %1945 = vmatpush.bf16.msra.mxu2 %v4471_v54  ;;  %1958 = vmatpush.bf16.msra.mxu3 %v4474_v57 }
 0x2d8   :  { %1964 = vmatpush.bf16.msrb.mxu0 %v4476_v61  ;;  %1977 = vmatpush.bf16.msrb.mxu1 %v5412_v48 }
 0x2d9   :  { %1990 = vmatpush.bf16.msrb.mxu2 %v5443_v42  ;;  %2003 = vmatpush.bf16.msrb.mxu3 %v5444_v3 }
 0x2dc   :  { %1965 = vmatpush.bf16.msrb.mxu0 %v5445_v26  ;;  %1978 = vmatpush.bf16.msrb.mxu1 %v5446_v20 }
 0x2dd   :  { %1991 = vmatpush.bf16.msrb.mxu2 %v5447_v63  ;;  %2004 = vmatpush.bf16.msrb.mxu3 %v5448_v31 }
 0x2e0   :  { %1966 = vmatpush.bf16.msrb.mxu0 %v5449_v62  ;;  %1979 = vmatpush.bf16.msrb.mxu1 %v5450_v41 }
 0x2e1   :  { %1992 = vmatpush.bf16.msrb.mxu2 %v5451_v2  ;;  %2005 = vmatpush.bf16.msrb.mxu3 %v5452_v50 }
 0x2e4   :  { %1967 = vmatpush.bf16.msrb.mxu0 %v5453_v18  ;;  %1980 = vmatpush.bf16.msrb.mxu1 %v5454_v13 }
 0x2e5   :  { %1993 = vmatpush.bf16.msrb.mxu2 %v5455_v43  ;;  %2006 = vmatpush.bf16.msrb.mxu3 %v5456_v5  ;;  %v1664_v43 = vld [vmem:[#allocation2 + $0x70] sm:$0x3] }
 0x2e6   :  { %v1684_v18 = vrot.slane %v1664_v43, 6 }
 0x2e8   :  { %1968 = vmatpush.bf16.msrb.mxu0 %v5457_v19  ;;  %1981 = vmatpush.bf16.msrb.mxu1 %v5458_v9 }
 0x2e9   :  { %1994 = vmatpush.bf16.msrb.mxu2 %v5459_v39  ;;  %2007 = vmatpush.bf16.msrb.mxu3 %v5460_v38  ;;  %v5470_v39 = vld [vmem:[#allocation51_spill] sm:$0xff]  ;;  %v5471_v38 = vld [vmem:[#allocation52_spill] sm:$0xff] }
 0x2ec   :  { %1969 = vmatpush.bf16.msrb.mxu0 %v5461_v56  ;;  %1982 = vmatpush.bf16.msrb.mxu1 %v5462_v27  ;;  %v5472_v56 = vld [vmem:[#allocation53_spill] sm:$0xff]  ;;  %v1659_v27 = vld [vmem:[#allocation2 + $0x30] sm:$0xc0] }
 0x2ed   :  { %1995 = vmatpush.bf16.msrb.mxu2 %v5463_v4  ;;  %2008 = vmatpush.bf16.msrb.mxu3 %v5464_v1  ;;  %v1663_v4 = vld [vmem:[#allocation2 + $0x60] sm:$0x3]  ;;  %v1671_v9 = vrot.slane %v1659_v27, 6 }
 0x2ee   :  { %v1683_v1 = vrot.slane %v1663_v4, 6 }
 0x2f0   :  { %1970 = vmatpush.bf16.msrb.mxu0 %v5465_v21  ;;  %1983 = vmatpush.bf16.msrb.mxu1 %v5466_v55  ;;  %v1691_v55 = vsel %vm710_vm0, %v1671_v9, %v1683_v1 }
 0x2f1   :  { %1996 = vmatpush.bf16.msrb.mxu2 %v5467_v49  ;;  %2009 = vmatpush.bf16.msrb.mxu3 %v5468_v17  ;;  %v1660_v49 = vld [vmem:[#allocation2] sm:$0xc0] }
 0x2f4   :  { %1971 = vmatpush.bf16.msrb.mxu0 %v5469_v14  ;;  %1984 = vmatpush.bf16.msrb.mxu1 %v5470_v39  ;;  %v1672_v14 = vrot.slane %v1660_v49, 6 }
 0x2f5   :  { %1997 = vmatpush.bf16.msrb.mxu2 %v5471_v38  ;;  %2010 = vmatpush.bf16.msrb.mxu3 %v5472_v56 }
 0x2f6   :  { %v1692_v27 = vsel %vm710_vm0, %v1672_v14, %v1684_v18 }
 0x333   :  { %v1708_v19 = vpop.f32.mrf.mxu0  ;;  %v1721_v21 = vpop.f32.mrf.mxu1 }
 0x334   :  { %v1722_v5 = vadd.f32 %v1721_v21, %v1708_v19 }
 0x336   :  { %v1803_v17 = vadd.f32 %v1722_v5, %v1691_v55  ;;  %v1666_v55 = vld [vmem:[#allocation2 + $0x28] sm:$0x3] }
 0x338   :  { %v3607_v13 = vmul.f32 -1.442695, %v1803_v17  ;;  %v1686_v17 = vrot.slane %v1666_v55, 6 }
 0x33a   :  { %3995 = vpow2.f32 %v3607_v13  ;;  %v1734_v39 = vpop.f32.mrf.mxu2  ;;  %v1747_v38 = vpop.f32.mrf.mxu3  ;;  %v1662_v13 = vld [vmem:[#allocation2 + $0x18] sm:$0xc0] }
 0x33b   :  { %v1748_v50 = vadd.f32 %v1747_v38, %v1734_v39  ;;  %v1710_v56 = vpop.f32.mrf.mxu0  ;;  %v1723_v2 = vpop.f32.mrf.mxu1  ;;  %v1674_v18 = vrot.slane %v1662_v13, 6 }
 0x33c   :  { %v1665_v56 = vld [vmem:[#allocation2 + $0x78] sm:$0x3] }
 0x33d   :  { %v1804_v4 = vadd.f32 %v1748_v50, %v1692_v27  ;;  %v1685_v31 = vrot.slane %v1665_v56, 6 }
 0x33f   :  { %v3608_v41 = vmul.f32 -1.442695, %v1804_v4  ;;  %v1694_v4 = vsel %vm710_vm0, %v1674_v18, %v1686_v17 }
 0x340   :  { %v3996_v62 = vpop.eup %3995 }
 0x341   :  { %v1810_v19 = vadd.f32 1.0, %v3996_v62  ;;  %3997 = vpow2.f32 %v3608_v41 }
 0x342   :  { %v1736_v9 = vpop.f32.mrf.mxu2  ;;  %v1749_v1 = vpop.f32.mrf.mxu3 }
 0x343   :  { %3999 = vrcp.f32 %v1810_v19  ;;  %v1760_v5 = vpop.f32.mrf.mxu0  ;;  %v1773_v21 = vpop.f32.mrf.mxu1  ;;  %v1661_v9 = vld [vmem:[#allocation2 + $0x58] sm:$0xc0]  ;;  %v1822_v18 = vand.u32 2147483648, %v1810_v19  ;;  %vm1816_vm4 = vweird.f32 %v1810_v19 }
 0x344   :  { %v1774_v63 = vadd.f32 %v1773_v21, %v1760_v5  ;;  %v1673_v55 = vrot.slane %v1661_v9, 6  ;;  %v1820_v5 = vand.u32 2147483647, %v1810_v19 }
 0x346   :  { %v1693_v13 = vsel %vm710_vm0, %v1673_v55, %v1685_v31  ;;  %vm1821_vm9 = vcmp.eq.f32.partialorder %v1820_v5, 8.507059e+37 }
 0x347   :  { %v3998_v43 = vpop.eup %3997 }
 0x348   :  { %v1829_v49 = vadd.f32 1.0, %v3998_v43 }
 0x349   :  { %v4000_v39 = vpop.eup %3999 }
 0x34a   :  { %v1812_v38 = vmul.f32 %v4000_v39, %v1810_v19  ;;  %4001 = vrcp.f32 %v1829_v49  ;;  %v1786_v2 = vpop.f32.mrf.mxu2  ;;  %v1799_v50 = vpop.f32.mrf.mxu3  ;;  %vm1817_vm15 = vweird.f32 %v4000_v39  ;;  %v1839_v56 = vand.u32 2147483647, %v1829_v49 }
 0x34b   :  { %v1800_v14 = vadd.f32 %v1799_v50, %v1786_v2  ;;  %v1762_v62 = vpop.f32.mrf.mxu0  ;;  %v1775_v41 = vpop.f32.mrf.mxu1  ;;  %v1805_v50 = vadd.f32 %v1774_v63, %v1693_v13  ;;  %vm1835_vm5 = vweird.f32 %v1829_v49  ;;  %vm1818_vm6 = vmor %vm1816_vm4, %vm1817_vm15 }
 0x34c   :  { %v1813_v27 = vsub.f32 1.0, %v1812_v38  ;;  %v1841_v62 = vand.u32 2147483648, %v1829_v49  ;;  %vm1840_vm8 = vcmp.eq.f32.partialorder %v1839_v56, 8.507059e+37 }
 0x34d   :  { %v1806_v1 = vadd.f32 %v1800_v14, %v1694_v4 }
 0x34e   :  { %v1814_v26 = vmul.f32 %v4000_v39, %v1813_v27 }
 0x34f   :  { %v3609_v20 = vmul.f32 -1.442695, %v1806_v1 }
 0x350   :  { %v4002_v43 = vpop.eup %4001  ;;  %v1815_v38 = vadd.f32 %v4000_v39, %v1814_v26 }
 0x351   :  { %v1831_v3 = vmul.f32 %v4002_v43, %v1829_v49  ;;  %4003 = vpow2.f32 %v3609_v20  ;;  %vm1836_vm1 = vweird.f32 %v4002_v43  ;;  %v1842_v20 = vor.u32 1.1754944e-38, %v1841_v62 }
 0x352   :  { %v1788_v42 = vpop.f32.mrf.mxu2  ;;  %v1801_v48 = vpop.f32.mrf.mxu3  ;;  %4005 = vtanh.f32 %v1805_v50  ;;  %vm1837_vm7 = vmor %vm1835_vm5, %vm1836_vm1 }
 0x353   :  { %v1832_v2 = vsub.f32 1.0, %v1831_v3  ;;  %v1819_v42 = vsel %vm1818_vm6, %v4000_v39, %v1815_v38  ;;  %v1823_v3 = vor.u32 1.1754944e-38, %v1822_v18 }
 0x355   :  { %v1833_v17 = vmul.f32 %v4002_v43, %v1832_v2  ;;  %v1824_v31 = vsel %vm1821_vm9, %v1823_v3, %v1819_v42  ;;  %v5476_v42 = vld [vmem:[#allocation26_spill] sm:$0xff]  ;;  %v5478_v3 = vld [vmem:[#allocation28_spill] sm:$0xff] }
 0x357   :  { %v4004_v21 = vpop.eup %4003  ;;  %v1834_v14 = vadd.f32 %v4002_v43, %v1833_v17 }
 0x358   :  { %v1849_v48 = vadd.f32 1.0, %v4004_v21  ;;  %v4006_v27 = vpop.eup %4005  ;;  %v5473_v21 = vld [vmem:[#allocation23_spill] sm:$0xff] }
 0x359   :  { %v1838_v63 = vsel %vm1837_vm7, %v4002_v43, %v1834_v14  ;;  %v1866_v19 = vmul.f32 %v4006_v27, %v1824_v31  ;;  %v5474_v14 = vld [vmem:[#allocation24_spill] sm:$0xff]  ;;  %v5481_v31 = vld [vmem:[#allocation31_spill] sm:$0xff]  ;;  %v5483_v27 = vld [vmem:[#allocation33_spill] sm:$0xff] }
 0x35a   :  { %v1843_v26 = vsel %vm1840_vm8, %v1842_v20, %v1838_v63  ;;  %4007 = vrcp.f32 %v1849_v48  ;;  %v1861_v39 = vand.u32 2147483648, %v1849_v48  ;;  %v1859_v43 = vand.u32 2147483647, %v1849_v48  ;;  %v5475_v20 = vld [vmem:[#allocation25_spill] sm:$0xff] }
 0x35b   :  { %v1865_v41 = vmul.f32 %v1843_v26, %v4851_v33  ;;  %vm1855_vm11 = vweird.f32 %v1849_v48  ;;  %v5479_v63 = vld [vmem:[#allocation29_spill] sm:$0xff]  ;;  %v5480_v26 = vld [vmem:[#allocation30_spill] sm:$0xff] }
 0x35c   :  { %v1862_v2 = vor.u32 1.1754944e-38, %v1861_v39  ;;  %vm1860_vm13 = vcmp.eq.f32.partialorder %v1859_v43, 8.507059e+37  ;;  %v5488_v39 = vld [vmem:[#allocation38_spill] sm:$0xff]  ;;  %v5490_v43 = vld [vmem:[#allocation40_spill] sm:$0xff] }
 0x35d   :  { %v4939_v49 = vadd.f32 %v1866_v19, %v1865_v41  ;;  %v5482_v41 = vld [vmem:[#allocation32_spill] sm:$0xff]  ;;  %v5484_v19 = vld [vmem:[#allocation34_spill] sm:$0xff] }
 0x35f   :  { %4009 = vtanh.f32 %v4939_v49 }
 0x360   :  { %v4008_v4 = vpop.eup %4007 }
 0x361   :  { %v1851_v9 = vmul.f32 %v4008_v4, %v1849_v48  ;;  %vm1856_vm10 = vweird.f32 %v4008_v4  ;;  %v5477_v48 = vld [vmem:[#allocation27_spill] sm:$0xff] }
 0x362   :  { %vm1857_vm12 = vmor %vm1855_vm11, %vm1856_vm10 }
 0x363   :  { %v1852_v1 = vsub.f32 1.0, %v1851_v9  ;;  %v5486_v9 = vld [vmem:[#allocation36_spill] sm:$0xff] }
 0x365   :  { %v1853_v55 = vmul.f32 %v4008_v4, %v1852_v1  ;;  %v4010_v33 = vpop.eup %4009  ;;  %v5487_v1 = vld [vmem:[#allocation37_spill] sm:$0xff] }
 0x367   :  { %v1854_v13 = vadd.f32 %v4008_v4, %v1853_v55  ;;  %v5489_v55 = vld [vmem:[#allocation39_spill] sm:$0xff] }
 0x369   :  { %v1858_v50 = vsel %vm1857_vm12, %v4008_v4, %v1854_v13  ;;  %v5485_v4 = vld [vmem:[#allocation35_spill] sm:$0xff]  ;;  %v5491_v13 = vld [vmem:[#allocation41_spill] sm:$0xff] }
 0x36a   :  { %v1863_v62 = vsel %vm1860_vm13, %v1862_v2, %v1858_v50  ;;  %v5492_v2 = vld [vmem:[#allocation42_spill] sm:$0xff]  ;;  %v5493_v50 = vld [vmem:[#allocation43_spill] sm:$0xff] }
 0x36b   :  { %v1869_v38 = vmul.f32 %v4010_v33, %v1863_v62  ;;  %v5494_v33 = vld [vmem:[#allocation44_spill] sm:$0xff]  ;;  %v5495_v62 = vld [vmem:[#allocation45_spill] sm:$0xff] }
 0x36d   :  { %v1871_v17 = vrot.slane %v1869_v38, 1  ;;  %1873 = vst [vmem:[#allocation11 + $0x3] sm:$0x1] %v1869_v38  ;;  %v3611_v18 = vpack.c.bf16 %v1869_v38, %v1869_v38 }
 0x36e   :  { %1875 = vst [vmem:[#allocation1] sm:$0xff] %v1869_v38  ;;  %v5496_v38 = vld [vmem:[#allocation46_spill] sm:$0xff] }
 0x36f   :  { %1874 = vst [vmem:[#allocation11 + $0x13] sm:$0x1] %v1871_v17  ;;  %3612 = vmatmul.msk.bf16.vlgmr.msra.gmra.mxu0 %vm4667_vm2, %v3611_v18  ;;  %3615 = vmatmul.msk.bf16.vlgmr.msra.gmra.mxu1 %vm4674_vm3, %v3611_v18  ;;  %v5497_v17 = vld [vmem:[#allocation47_spill] sm:$0xff] }
 0x370   :  { %3618 = vmatmul.msk.bf16.vlgmr.msra.gmra.mxu2 %vm4667_vm2, %v3611_v18  ;;  %3621 = vmatmul.msk.bf16.vlgmr.msra.gmra.mxu3 %vm4674_vm3, %v3611_v18 }
 0x371   :  { %2137 = vmatpush.bf16.msra.mxu0 %v4380_v10  ;;  %2150 = vmatpush.bf16.msra.mxu1 %v4382_v11 }
 0x372   :  { %2163 = vmatpush.bf16.msra.mxu2 %v4384_v12  ;;  %2176 = vmatpush.bf16.msra.mxu3 %v4386_v16 }
 0x375   :  { %v1877_v56 = vld [vmem:[#allocation1 + $0x2] ss:$9 sm:$0xff]  ;;  %2138 = vmatpush.bf16.msra.mxu0 %v4389_v22  ;;  %2151 = vmatpush.bf16.msra.mxu1 %v4393_v23 }
 0x376   :  { %v1879_v5 = vld [vmem:[#allocation1 + $0x3] ss:$9 sm:$0xff]  ;;  %1882 = vst [vmem:[#allocation11 + $0xc] sm:$0x1] %v1877_v56  ;;  %2164 = vmatpush.bf16.msra.mxu2 %v4395_v24  ;;  %2177 = vmatpush.bf16.msra.mxu3 %v4399_v28 }
 0x377   :  { %1883 = vst [vmem:[#allocation11 + $0x1c] sm:$0x1] %v1879_v5  ;;  %v5499_v56 = vld [vmem:[#allocation49_spill] sm:$0xff]  ;;  %v5500_v5 = vld [vmem:[#allocation50_spill] sm:$0xff] }
 0x379   :  { %2139 = vmatpush.bf16.msra.mxu0 %v4405_v34  ;;  %2152 = vmatpush.bf16.msra.mxu1 %v4409_v35 }
 0x37a   :  { %2165 = vmatpush.bf16.msra.mxu2 %v4411_v36  ;;  %2178 = vmatpush.bf16.msra.mxu3 %v4414_v40 }
 0x37d   :  { %2140 = vmatpush.bf16.msra.mxu0 %v4417_v45  ;;  %2153 = vmatpush.bf16.msra.mxu1 %v4421_v46 }
 0x37e   :  { %2166 = vmatpush.bf16.msra.mxu2 %v4423_v47  ;;  %2179 = vmatpush.bf16.msra.mxu3 %v4426_v51 }
 0x37f   :  { %3624 = vmatmul.msk.bf16.vlgmr.msrb.gmra.mxu0 %vm4667_vm2, %v3611_v18  ;;  %3627 = vmatmul.msk.bf16.vlgmr.msrb.gmra.mxu1 %vm4674_vm3, %v3611_v18 }
 0x380   :  { %3630 = vmatmul.msk.bf16.vlgmr.msrb.gmra.mxu2 %vm4667_vm2, %v3611_v18  ;;  %3633 = vmatmul.msk.bf16.vlgmr.msrb.gmra.mxu3 %vm4674_vm3, %v3611_v18  ;;  %v5498_v18 = vld [vmem:[#allocation48_spill] sm:$0xff] }
 0x381   :  { %2141 = vmatpush.bf16.msra.mxu0 %v4429_v58  ;;  %2154 = vmatpush.bf16.msra.mxu1 %v4433_v59 }
 0x382   :  { %2167 = vmatpush.bf16.msra.mxu2 %v4435_v60  ;;  %2180 = vmatpush.bf16.msra.mxu3 %v4438_v0 }
 0x385   :  { %2142 = vmatpush.bf16.msra.mxu0 %v4441_v6  ;;  %2155 = vmatpush.bf16.msra.mxu1 %v4445_v7 }
 0x386   :  { %2168 = vmatpush.bf16.msra.mxu2 %v4447_v8  ;;  %2181 = vmatpush.bf16.msra.mxu3 %v4450_v15 }
 0x389   :  { %2143 = vmatpush.bf16.msra.mxu0 %v4453_v25  ;;  %2156 = vmatpush.bf16.msra.mxu1 %v4457_v29 }
 0x38a   :  { %2169 = vmatpush.bf16.msra.mxu2 %v4459_v30  ;;  %2182 = vmatpush.bf16.msra.mxu3 %v4462_v37 }
 0x38d   :  { %2144 = vmatpush.bf16.msra.mxu0 %v4465_v44  ;;  %2157 = vmatpush.bf16.msra.mxu1 %v4469_v53 }
 0x38e   :  { %2170 = vmatpush.bf16.msra.mxu2 %v4471_v54  ;;  %2183 = vmatpush.bf16.msra.mxu3 %v4474_v57 }
 0x391   :  { %2189 = vmatpush.bf16.msrb.mxu0 %v4476_v61  ;;  %2202 = vmatpush.bf16.msrb.mxu1 %v5473_v21 }
 0x392   :  { %2215 = vmatpush.bf16.msrb.mxu2 %v5474_v14  ;;  %2228 = vmatpush.bf16.msrb.mxu3 %v5475_v20 }
 0x395   :  { %2190 = vmatpush.bf16.msrb.mxu0 %v5476_v42  ;;  %2203 = vmatpush.bf16.msrb.mxu1 %v5477_v48  ;;  %v1886_v48 = vld [vmem:[#allocation2 + $0x10] sm:$0x3] }
 0x396   :  { %2216 = vmatpush.bf16.msrb.mxu2 %v5478_v3  ;;  %2229 = vmatpush.bf16.msrb.mxu3 %v5479_v63 }
 0x399   :  { %2191 = vmatpush.bf16.msrb.mxu0 %v5480_v26  ;;  %2204 = vmatpush.bf16.msrb.mxu1 %v5481_v31 }
 0x39a   :  { %2217 = vmatpush.bf16.msrb.mxu2 %v5482_v41  ;;  %2230 = vmatpush.bf16.msrb.mxu3 %v5483_v27 }
 0x39d   :  { %2192 = vmatpush.bf16.msrb.mxu0 %v5484_v19  ;;  %2205 = vmatpush.bf16.msrb.mxu1 %v5485_v4  ;;  %v1885_v4 = vld [vmem:[#allocation2 + $0x20] sm:$0x3] }
 0x39e   :  { %2218 = vmatpush.bf16.msrb.mxu2 %v5486_v9  ;;  %2231 = vmatpush.bf16.msrb.mxu3 %v5487_v1  ;;  %v1889_v1 = vld [vmem:[#allocation2 + $0x68] sm:$0xc0] }
 0x3a1   :  { %2193 = vmatpush.bf16.msrb.mxu0 %v5488_v39  ;;  %2206 = vmatpush.bf16.msrb.mxu1 %v5489_v55  ;;  %v1884_v55 = vld [vmem:[#allocation2 + $0x40] sm:$0x3] }
 0x3a2   :  { %2219 = vmatpush.bf16.msrb.mxu2 %v5490_v43  ;;  %2232 = vmatpush.bf16.msrb.mxu3 %v5491_v13  ;;  %v5501_v43 = vld [vmem:[#allocation51_spill] sm:$0xff]  ;;  %v5502_v13 = vld [vmem:[#allocation52_spill] sm:$0xff] }
 0x3a5   :  { %2194 = vmatpush.bf16.msrb.mxu0 %v5492_v2  ;;  %2207 = vmatpush.bf16.msrb.mxu1 %v5493_v50  ;;  %v5503_v2 = vld [vmem:[#allocation53_spill] sm:$0xff]  ;;  %v1888_v50 = vld [vmem:[#allocation2 + $0x50] sm:$0xc0] }
 0x3a6   :  { %2220 = vmatpush.bf16.msrb.mxu2 %v5494_v33  ;;  %2233 = vmatpush.bf16.msrb.mxu3 %v5495_v62  ;;  %v1896_v33 = vrot.slane %v1888_v50, 4 }
 0x3a9   :  { %2195 = vmatpush.bf16.msrb.mxu0 %v5496_v38  ;;  %2208 = vmatpush.bf16.msrb.mxu1 %v5497_v17  ;;  %v1904_v17 = vsel %vm710_vm0, %v1884_v55, %v1896_v33 }
 0x3aa   :  { %2221 = vmatpush.bf16.msrb.mxu2 %v5498_v18  ;;  %2234 = vmatpush.bf16.msrb.mxu3 %v5499_v56  ;;  %v1897_v56 = vrot.slane %v1889_v1, 4  ;;  %v1891_v1 = vld [vmem:[#allocation2 + $0x48] sm:$0xc0] }
 0x3ad   :  { %2196 = vmatpush.bf16.msrb.mxu0 %v5500_v5  ;;  %2209 = vmatpush.bf16.msrb.mxu1 %v5501_v43 }
 0x3ae   :  { %2222 = vmatpush.bf16.msrb.mxu2 %v5502_v13  ;;  %2235 = vmatpush.bf16.msrb.mxu3 %v5503_v2  ;;  %v1905_v2 = vsel %vm710_vm0, %v1885_v4, %v1897_v56  ;;  %v1890_v4 = vld [vmem:[#allocation2 + $0x8] sm:$0xc0] }
 0x3ec   :  { %v1921_v62 = vpop.f32.mrf.mxu0  ;;  %v1934_v39 = vpop.f32.mrf.mxu1 }
 0x3ed   :  { %v1935_v38 = vadd.f32 %v1934_v39, %v1921_v62 }
 0x3ef   :  { %v2016_v18 = vadd.f32 %v1935_v38, %v1904_v17  ;;  %v1899_v17 = vrot.slane %v1891_v1, 4 }
 0x3f1   :  { %v3634_v9 = vmul.f32 -1.442695, %v2016_v18 }
 0x3f3   :  { %4011 = vpow2.f32 %v3634_v9  ;;  %v1947_v5 = vpop.f32.mrf.mxu2  ;;  %v1960_v43 = vpop.f32.mrf.mxu3 }
 0x3f4   :  { %v1961_v19 = vadd.f32 %v1960_v43, %v1947_v5  ;;  %v1923_v13 = vpop.f32.mrf.mxu0  ;;  %v1936_v27 = vpop.f32.mrf.mxu1 }
 0x3f6   :  { %v2017_v50 = vadd.f32 %v1961_v19, %v1905_v2  ;;  %v1887_v19 = vld [vmem:[#allocation2 + $0x38] sm:$0x3] }
 0x3f7   :  { %v1907_v5 = vsel %vm710_vm0, %v1887_v19, %v1899_v17 }
 0x3f8   :  { %v3635_v41 = vmul.f32 -1.442695, %v2017_v50 }
 0x3f9   :  { %v4012_v31 = vpop.eup %4011 }
 0x3fa   :  { %v2023_v26 = vadd.f32 1.0, %v4012_v31  ;;  %4013 = vpow2.f32 %v3635_v41 }
 0x3fb   :  { %v1949_v39 = vpop.f32.mrf.mxu2  ;;  %v1962_v55 = vpop.f32.mrf.mxu3 }
 0x3fc   :  { %4015 = vrcp.f32 %v2023_v26  ;;  %v1973_v33 = vpop.f32.mrf.mxu0  ;;  %v1986_v62 = vpop.f32.mrf.mxu1  ;;  %v1898_v39 = vrot.slane %v1890_v4, 4  ;;  %v2035_v17 = vand.u32 2147483648, %v2023_v26  ;;  %vm2029_vm1 = vweird.f32 %v2023_v26 }
 0x3fd   :  { %v1987_v55 = vadd.f32 %v1986_v62, %v1973_v33  ;;  %v2033_v33 = vand.u32 2147483647, %v2023_v26 }
 0x3fe   :  { %v1906_v42 = vsel %vm710_vm0, %v1886_v48, %v1898_v39 }
 0x3ff   :  { %vm2034_vm8 = vcmp.eq.f32.partialorder %v2033_v33, 8.507059e+37 }
 0x400   :  { %v4014_v38 = vpop.eup %4013 }
 0x401   :  { %v2042_v9 = vadd.f32 1.0, %v4014_v38 }
 0x402   :  { %v4016_v18 = vpop.eup %4015 }
 0x403   :  { %v2025_v43 = vmul.f32 %v4016_v18, %v2023_v26  ;;  %4017 = vrcp.f32 %v2042_v9  ;;  %v1999_v27 = vpop.f32.mrf.mxu2  ;;  %v2012_v13 = vpop.f32.mrf.mxu3  ;;  %vm2030_vm14 = vweird.f32 %v4016_v18  ;;  %v2052_v4 = vand.u32 2147483647, %v2042_v9 }
 0x404   :  { %v2013_v2 = vadd.f32 %v2012_v13, %v1999_v27  ;;  %v1975_v56 = vpop.f32.mrf.mxu0  ;;  %v1988_v31 = vpop.f32.mrf.mxu1  ;;  %v2018_v27 = vadd.f32 %v1987_v55, %v1906_v42  ;;  %v2054_v13 = vand.u32 2147483648, %v2042_v9  ;;  %vm2048_vm4 = vweird.f32 %v2042_v9  ;;  %vm2031_vm5 = vmor %vm2029_vm1, %vm2030_vm14 }
 0x405   :  { %v2026_v41 = vsub.f32 1.0, %v2025_v43  ;;  %vm2053_vm7 = vcmp.eq.f32.partialorder %v2052_v4, 8.507059e+37 }
 0x406   :  { %v2019_v50 = vadd.f32 %v2013_v2, %v1907_v5  ;;  %v2055_v48 = vor.u32 1.1754944e-38, %v2054_v13 }
 0x407   :  { %v2027_v38 = vmul.f32 %v4016_v18, %v2026_v41 }
 0x408   :  { %v3636_v63 = vmul.f32 -1.442695, %v2019_v50 }
 0x409   :  { %v4018_v3 = vpop.eup %4017  ;;  %v2028_v56 = vadd.f32 %v4016_v18, %v2027_v38 }
 0x40a   :  { %v2044_v1 = vmul.f32 %v4018_v3, %v2042_v9  ;;  %4019 = vpow2.f32 %v3636_v63  ;;  %vm2049_vm15 = vweird.f32 %v4018_v3  ;;  %v2036_v63 = vor.u32 1.1754944e-38, %v2035_v17 }
 0x40b   :  { %v2001_v20 = vpop.f32.mrf.mxu2  ;;  %v2014_v14 = vpop.f32.mrf.mxu3  ;;  %4021 = vtanh.f32 %v2018_v27  ;;  %vm2050_vm6 = vmor %vm2048_vm4, %vm2049_vm15 }
 0x40c   :  { %v2045_v21 = vsub.f32 1.0, %v2044_v1  ;;  %v2032_v20 = vsel %vm2031_vm5, %v4016_v18, %v2028_v56 }
 0x40e   :  { %v2046_v43 = vmul.f32 %v4018_v3, %v2045_v21  ;;  %v2037_v21 = vsel %vm2034_vm8, %v2036_v63, %v2032_v20  ;;  %v5507_v20 = vld [vmem:[#allocation26_spill] sm:$0xff]  ;;  %v5509_v63 = vld [vmem:[#allocation28_spill] sm:$0xff] }
 0x410   :  { %v4020_v62 = vpop.eup %4019  ;;  %v2047_v19 = vadd.f32 %v4018_v3, %v2046_v43 }
 0x411   :  { %v2062_v14 = vadd.f32 1.0, %v4020_v62  ;;  %v4022_v41 = vpop.eup %4021  ;;  %v5504_v62 = vld [vmem:[#allocation23_spill] sm:$0xff] }
 0x412   :  { %v2051_v42 = vsel %vm2050_vm6, %v4018_v3, %v2047_v19  ;;  %v2079_v26 = vmul.f32 %v4022_v41, %v2037_v21  ;;  %v5505_v19 = vld [vmem:[#allocation24_spill] sm:$0xff]  ;;  %v5512_v21 = vld [vmem:[#allocation31_spill] sm:$0xff]  ;;  %v5514_v41 = vld [vmem:[#allocation33_spill] sm:$0xff] }
 0x413   :  { %v2056_v2 = vsel %vm2053_vm7, %v2055_v48, %v2051_v42  ;;  %4023 = vrcp.f32 %v2062_v14  ;;  %v2074_v18 = vand.u32 2147483648, %v2062_v14  ;;  %v2072_v3 = vand.u32 2147483647, %v2062_v14  ;;  %v5506_v48 = vld [vmem:[#allocation25_spill] sm:$0xff] }
 0x414   :  { %v2078_v31 = vmul.f32 %v2056_v2, %v4939_v49  ;;  %vm2068_vm10 = vweird.f32 %v2062_v14  ;;  %v5510_v42 = vld [vmem:[#allocation29_spill] sm:$0xff]  ;;  %v5511_v2 = vld [vmem:[#allocation30_spill] sm:$0xff] }
 0x415   :  { %v2075_v1 = vor.u32 1.1754944e-38, %v2074_v18  ;;  %vm2073_vm12 = vcmp.eq.f32.partialorder %v2072_v3, 8.507059e+37  ;;  %v5519_v18 = vld [vmem:[#allocation38_spill] sm:$0xff]  ;;  %v5521_v3 = vld [vmem:[#allocation40_spill] sm:$0xff] }
 0x416   :  { %v5027_v9 = vadd.f32 %v2079_v26, %v2078_v31  ;;  %v5513_v31 = vld [vmem:[#allocation32_spill] sm:$0xff]  ;;  %v5515_v26 = vld [vmem:[#allocation34_spill] sm:$0xff] }
 0x418   :  { %4025 = vtanh.f32 %v5027_v9 }
 0x419   :  { %v4024_v5 = vpop.eup %4023 }
 0x41a   :  { %v2064_v50 = vmul.f32 %v4024_v5, %v2062_v14  ;;  %vm2069_vm9 = vweird.f32 %v4024_v5  ;;  %v5508_v14 = vld [vmem:[#allocation27_spill] sm:$0xff] }
 0x41b   :  { %vm2070_vm11 = vmor %vm2068_vm10, %vm2069_vm9 }
 0x41c   :  { %v2065_v39 = vsub.f32 1.0, %v2064_v50  ;;  %v5517_v50 = vld [vmem:[#allocation36_spill] sm:$0xff] }
 0x41e   :  { %v2066_v55 = vmul.f32 %v4024_v5, %v2065_v39  ;;  %v4026_v49 = vpop.eup %4025  ;;  %v5518_v39 = vld [vmem:[#allocation37_spill] sm:$0xff] }
 0x420   :  { %v2067_v38 = vadd.f32 %v4024_v5, %v2066_v55  ;;  %v5520_v55 = vld [vmem:[#allocation39_spill] sm:$0xff] }
 0x422   :  { %v2071_v27 = vsel %vm2070_vm11, %v4024_v5, %v2067_v38  ;;  %v5516_v5 = vld [vmem:[#allocation35_spill] sm:$0xff]  ;;  %v5522_v38 = vld [vmem:[#allocation41_spill] sm:$0xff] }
 0x423   :  { %v2076_v13 = vsel %vm2073_vm12, %v2075_v1, %v2071_v27  ;;  %v5523_v1 = vld [vmem:[#allocation42_spill] sm:$0xff]  ;;  %v5524_v27 = vld [vmem:[#allocation43_spill] sm:$0xff] }
 0x424   :  { %v2082_v56 = vmul.f32 %v4026_v49, %v2076_v13  ;;  %v5525_v49 = vld [vmem:[#allocation44_spill] sm:$0xff]  ;;  %v5526_v13 = vld [vmem:[#allocation45_spill] sm:$0xff] }
 0x426   :  { %v2084_v43 = vrot.slane %v2082_v56, 1  ;;  %2086 = vst [vmem:[#allocation11 + $0x4] sm:$0x1] %v2082_v56  ;;  %v3638_v17 = vpack.c.bf16 %v2082_v56, %v2082_v56 }
 0x427   :  { %2088 = vst [vmem:[#allocation1] sm:$0xff] %v2082_v56  ;;  %v5527_v56 = vld [vmem:[#allocation46_spill] sm:$0xff] }
 0x428   :  { %2087 = vst [vmem:[#allocation11 + $0x14] sm:$0x1] %v2084_v43  ;;  %3639 = vmatmul.msk.bf16.vlgmr.msra.gmra.mxu0 %vm4667_vm2, %v3638_v17  ;;  %3642 = vmatmul.msk.bf16.vlgmr.msra.gmra.mxu1 %vm4674_vm3, %v3638_v17  ;;  %v5528_v43 = vld [vmem:[#allocation47_spill] sm:$0xff] }
 0x429   :  { %3645 = vmatmul.msk.bf16.vlgmr.msra.gmra.mxu2 %vm4667_vm2, %v3638_v17  ;;  %3648 = vmatmul.msk.bf16.vlgmr.msra.gmra.mxu3 %vm4674_vm3, %v3638_v17 }
 0x42a   :  { %2350 = vmatpush.bf16.msra.mxu0 %v4380_v10  ;;  %2363 = vmatpush.bf16.msra.mxu1 %v4382_v11 }
 0x42b   :  { %2376 = vmatpush.bf16.msra.mxu2 %v4384_v12  ;;  %2389 = vmatpush.bf16.msra.mxu3 %v4386_v16 }
 0x42e   :  { %v2090_v4 = vld [vmem:[#allocation1 + $0x2] ss:$9 sm:$0xff]  ;;  %2351 = vmatpush.bf16.msra.mxu0 %v4389_v22  ;;  %2364 = vmatpush.bf16.msra.mxu1 %v4393_v23 }
 0x42f   :  { %v2092_v33 = vld [vmem:[#allocation1 + $0x3] ss:$9 sm:$0xff]  ;;  %2095 = vst [vmem:[#allocation11 + $0xb] sm:$0x1] %v2090_v4  ;;  %2377 = vmatpush.bf16.msra.mxu2 %v4395_v24  ;;  %2390 = vmatpush.bf16.msra.mxu3 %v4399_v28 }
 0x430   :  { %2096 = vst [vmem:[#allocation11 + $0x1b] sm:$0x1] %v2092_v33  ;;  %v5530_v4 = vld [vmem:[#allocation49_spill] sm:$0xff]  ;;  %v5531_v33 = vld [vmem:[#allocation50_spill] sm:$0xff] }
 0x432   :  { %2352 = vmatpush.bf16.msra.mxu0 %v4405_v34  ;;  %2365 = vmatpush.bf16.msra.mxu1 %v4409_v35 }
 0x433   :  { %2378 = vmatpush.bf16.msra.mxu2 %v4411_v36  ;;  %2391 = vmatpush.bf16.msra.mxu3 %v4414_v40 }
 0x436   :  { %2353 = vmatpush.bf16.msra.mxu0 %v4417_v45  ;;  %2366 = vmatpush.bf16.msra.mxu1 %v4421_v46 }
 0x437   :  { %2379 = vmatpush.bf16.msra.mxu2 %v4423_v47  ;;  %2392 = vmatpush.bf16.msra.mxu3 %v4426_v51 }
 0x438   :  { %3651 = vmatmul.msk.bf16.vlgmr.msrb.gmra.mxu0 %vm4667_vm2, %v3638_v17  ;;  %3654 = vmatmul.msk.bf16.vlgmr.msrb.gmra.mxu1 %vm4674_vm3, %v3638_v17 }
 0x439   :  { %3657 = vmatmul.msk.bf16.vlgmr.msrb.gmra.mxu2 %vm4667_vm2, %v3638_v17  ;;  %3660 = vmatmul.msk.bf16.vlgmr.msrb.gmra.mxu3 %vm4674_vm3, %v3638_v17  ;;  %v5529_v17 = vld [vmem:[#allocation48_spill] sm:$0xff] }
 0x43a   :  { %2354 = vmatpush.bf16.msra.mxu0 %v4429_v58  ;;  %2367 = vmatpush.bf16.msra.mxu1 %v4433_v59 }
 0x43b   :  { %2380 = vmatpush.bf16.msra.mxu2 %v4435_v60  ;;  %2393 = vmatpush.bf16.msra.mxu3 %v4438_v0 }
 0x43e   :  { %2355 = vmatpush.bf16.msra.mxu0 %v4441_v6  ;;  %2368 = vmatpush.bf16.msra.mxu1 %v4445_v7 }
 0x43f   :  { %2381 = vmatpush.bf16.msra.mxu2 %v4447_v8  ;;  %2394 = vmatpush.bf16.msra.mxu3 %v4450_v15 }
 0x442   :  { %2356 = vmatpush.bf16.msra.mxu0 %v4453_v25  ;;  %2369 = vmatpush.bf16.msra.mxu1 %v4457_v29 }
 0x443   :  { %2382 = vmatpush.bf16.msra.mxu2 %v4459_v30  ;;  %2395 = vmatpush.bf16.msra.mxu3 %v4462_v37 }
 0x446   :  { %2357 = vmatpush.bf16.msra.mxu0 %v4465_v44  ;;  %2370 = vmatpush.bf16.msra.mxu1 %v4469_v53 }
 0x447   :  { %2383 = vmatpush.bf16.msra.mxu2 %v4471_v54  ;;  %2396 = vmatpush.bf16.msra.mxu3 %v4474_v57 }
 0x44a   :  { %2402 = vmatpush.bf16.msrb.mxu0 %v4476_v61  ;;  %2415 = vmatpush.bf16.msrb.mxu1 %v5504_v62 }
 0x44b   :  { %2428 = vmatpush.bf16.msrb.mxu2 %v5505_v19  ;;  %2441 = vmatpush.bf16.msrb.mxu3 %v5506_v48 }
 0x44e   :  { %2403 = vmatpush.bf16.msrb.mxu0 %v5507_v20  ;;  %2416 = vmatpush.bf16.msrb.mxu1 %v5508_v14 }
 0x44f   :  { %2429 = vmatpush.bf16.msrb.mxu2 %v5509_v63  ;;  %2442 = vmatpush.bf16.msrb.mxu3 %v5510_v42 }
 0x452   :  { %2404 = vmatpush.bf16.msrb.mxu0 %v5511_v2  ;;  %2417 = vmatpush.bf16.msrb.mxu1 %v5512_v21 }
 0x453   :  { %2430 = vmatpush.bf16.msrb.mxu2 %v5513_v31  ;;  %2443 = vmatpush.bf16.msrb.mxu3 %v5514_v41 }
 0x456   :  { %2405 = vmatpush.bf16.msrb.mxu0 %v5515_v26  ;;  %2418 = vmatpush.bf16.msrb.mxu1 %v5516_v5 }
 0x457   :  { %2431 = vmatpush.bf16.msrb.mxu2 %v5517_v50  ;;  %2444 = vmatpush.bf16.msrb.mxu3 %v5518_v39  ;;  %v2102_v50 = vld [vmem:[#allocation2 + $0x68] sm:$0x30] }
 0x458   :  { %v2122_v26 = vrot.slane %v2102_v50, 2 }
 0x45a   :  { %2406 = vmatpush.bf16.msrb.mxu0 %v5519_v18  ;;  %2419 = vmatpush.bf16.msrb.mxu1 %v5520_v55 }
 0x45b   :  { %2432 = vmatpush.bf16.msrb.mxu2 %v5521_v3  ;;  %2445 = vmatpush.bf16.msrb.mxu3 %v5522_v38  ;;  %v5532_v3 = vld [vmem:[#allocation51_spill] sm:$0xff]  ;;  %v5533_v38 = vld [vmem:[#allocation52_spill] sm:$0xff] }
 0x45e   :  { %2407 = vmatpush.bf16.msrb.mxu0 %v5523_v1  ;;  %2420 = vmatpush.bf16.msrb.mxu1 %v5524_v27  ;;  %v5534_v1 = vld [vmem:[#allocation53_spill] sm:$0xff]  ;;  %v2097_v27 = vld [vmem:[#allocation2 + $0x40] sm:$0xc] }
 0x45f   :  { %2433 = vmatpush.bf16.msrb.mxu2 %v5525_v49  ;;  %2446 = vmatpush.bf16.msrb.mxu3 %v5526_v13  ;;  %v2101_v49 = vld [vmem:[#allocation2 + $0x50] sm:$0x30]  ;;  %v2109_v55 = vrot.slane %v2097_v27, 2 }
 0x460   :  { %v2121_v13 = vrot.slane %v2101_v49, 2 }
 0x462   :  { %2408 = vmatpush.bf16.msrb.mxu0 %v5527_v56  ;;  %2421 = vmatpush.bf16.msrb.mxu1 %v5528_v43  ;;  %v2129_v43 = vsel %vm710_vm0, %v2109_v55, %v2121_v13 }
 0x463   :  { %2434 = vmatpush.bf16.msrb.mxu2 %v5529_v17  ;;  %2447 = vmatpush.bf16.msrb.mxu3 %v5530_v4  ;;  %v2098_v17 = vld [vmem:[#allocation2 + $0x20] sm:$0xc] }
 0x466   :  { %2409 = vmatpush.bf16.msrb.mxu0 %v5531_v33  ;;  %2422 = vmatpush.bf16.msrb.mxu1 %v5532_v3  ;;  %v2110_v33 = vrot.slane %v2098_v17, 2 }
 0x467   :  { %2435 = vmatpush.bf16.msrb.mxu2 %v5533_v38  ;;  %2448 = vmatpush.bf16.msrb.mxu3 %v5534_v1 }
 0x468   :  { %v2130_v27 = vsel %vm710_vm0, %v2110_v33, %v2122_v26 }
 0x4a5   :  { %v2146_v18 = vpop.f32.mrf.mxu0  ;;  %v2159_v56 = vpop.f32.mrf.mxu1 }
 0x4a6   :  { %v2160_v39 = vadd.f32 %v2159_v56, %v2146_v18 }
 0x4a8   :  { %v2241_v4 = vadd.f32 %v2160_v39, %v2129_v43  ;;  %v2104_v43 = vld [vmem:[#allocation2 + $0x48] sm:$0x30] }
 0x4aa   :  { %v3661_v5 = vmul.f32 -1.442695, %v2241_v4  ;;  %v2124_v4 = vrot.slane %v2104_v43, 2 }
 0x4ac   :  { %4027 = vpow2.f32 %v3661_v5  ;;  %v2172_v3 = vpop.f32.mrf.mxu2  ;;  %v2185_v38 = vpop.f32.mrf.mxu3  ;;  %v2100_v5 = vld [vmem:[#allocation2 + $0x38] sm:$0xc] }
 0x4ad   :  { %v2186_v41 = vadd.f32 %v2185_v38, %v2172_v3  ;;  %v2148_v1 = vpop.f32.mrf.mxu0  ;;  %v2161_v31 = vpop.f32.mrf.mxu1  ;;  %v2112_v26 = vrot.slane %v2100_v5, 2 }
 0x4ae   :  { %v2103_v1 = vld [vmem:[#allocation2 + $0x8] sm:$0x30] }
 0x4af   :  { %v2242_v49 = vadd.f32 %v2186_v41, %v2130_v27  ;;  %v2123_v42 = vrot.slane %v2103_v1, 2 }
 0x4b1   :  { %v3662_v21 = vmul.f32 -1.442695, %v2242_v49  ;;  %v2132_v49 = vsel %vm710_vm0, %v2112_v26, %v2124_v4 }
 0x4b2   :  { %v4028_v2 = vpop.eup %4027 }
 0x4b3   :  { %v2248_v18 = vadd.f32 1.0, %v4028_v2  ;;  %4029 = vpow2.f32 %v3662_v21 }
 0x4b4   :  { %v2174_v55 = vpop.f32.mrf.mxu2  ;;  %v2187_v13 = vpop.f32.mrf.mxu3 }
 0x4b5   :  { %4031 = vrcp.f32 %v2248_v18  ;;  %v2198_v39 = vpop.f32.mrf.mxu0  ;;  %v2211_v56 = vpop.f32.mrf.mxu1  ;;  %v2099_v55 = vld [vmem:[#allocation2 + $0x10] sm:$0xc]  ;;  %v2260_v26 = vand.u32 2147483648, %v2248_v18  ;;  %vm2254_vm15 = vweird.f32 %v2248_v18 }
 0x4b6   :  { %v2212_v63 = vadd.f32 %v2211_v56, %v2198_v39  ;;  %v2111_v43 = vrot.slane %v2099_v55, 2  ;;  %v2258_v39 = vand.u32 2147483647, %v2248_v18 }
 0x4b8   :  { %v2131_v5 = vsel %vm710_vm0, %v2111_v43, %v2123_v42  ;;  %vm2259_vm7 = vcmp.eq.f32.partialorder %v2258_v39, 8.507059e+37 }
 0x4b9   :  { %v4030_v50 = vpop.eup %4029 }
 0x4ba   :  { %v2267_v17 = vadd.f32 1.0, %v4030_v50 }
 0x4bb   :  { %v4032_v3 = vpop.eup %4031 }
 0x4bc   :  { %v2250_v38 = vmul.f32 %v4032_v3, %v2248_v18  ;;  %4033 = vrcp.f32 %v2267_v17  ;;  %v2224_v31 = vpop.f32.mrf.mxu2  ;;  %v2237_v41 = vpop.f32.mrf.mxu3  ;;  %vm2255_vm13 = vweird.f32 %v4032_v3  ;;  %v2277_v1 = vand.u32 2147483647, %v2267_v17 }
 0x4bd   :  { %v2238_v33 = vadd.f32 %v2237_v41, %v2224_v31  ;;  %v2200_v2 = vpop.f32.mrf.mxu0  ;;  %v2213_v21 = vpop.f32.mrf.mxu1  ;;  %v2243_v41 = vadd.f32 %v2212_v63, %v2131_v5  ;;  %vm2273_vm1 = vweird.f32 %v2267_v17  ;;  %vm2256_vm4 = vmor %vm2254_vm15, %vm2255_vm13 }
 0x4be   :  { %v2251_v27 = vsub.f32 1.0, %v2250_v38  ;;  %v2279_v2 = vand.u32 2147483648, %v2267_v17  ;;  %vm2278_vm6 = vcmp.eq.f32.partialorder %v2277_v1, 8.507059e+37 }
 0x4bf   :  { %v2244_v13 = vadd.f32 %v2238_v33, %v2132_v49 }
 0x4c0   :  { %v2252_v20 = vmul.f32 %v4032_v3, %v2251_v27 }
 0x4c1   :  { %v3663_v14 = vmul.f32 -1.442695, %v2244_v13 }
 0x4c2   :  { %v4034_v50 = vpop.eup %4033  ;;  %v2253_v38 = vadd.f32 %v4032_v3, %v2252_v20 }
 0x4c3   :  { %v2269_v48 = vmul.f32 %v4034_v50, %v2267_v17  ;;  %4035 = vpow2.f32 %v3663_v14  ;;  %vm2274_vm14 = vweird.f32 %v4034_v50  ;;  %v2280_v14 = vor.u32 1.1754944e-38, %v2279_v2 }
 0x4c4   :  { %v2226_v19 = vpop.f32.mrf.mxu2  ;;  %v2239_v62 = vpop.f32.mrf.mxu3  ;;  %4037 = vtanh.f32 %v2243_v41  ;;  %vm2275_vm5 = vmor %vm2273_vm1, %vm2274_vm14 }
 0x4c5   :  { %v2270_v31 = vsub.f32 1.0, %v2269_v48  ;;  %v2257_v19 = vsel %vm2256_vm4, %v4032_v3, %v2253_v38  ;;  %v2261_v48 = vor.u32 1.1754944e-38, %v2260_v26 }
 0x4c7   :  { %v2271_v4 = vmul.f32 %v4034_v50, %v2270_v31  ;;  %v2262_v42 = vsel %vm2259_vm7, %v2261_v48, %v2257_v19  ;;  %v2323_v48 = vld [vmem:[#allocation2 + $0x20] sm:$0x30] }
 0x4c9   :  { %v4036_v56 = vpop.eup %4035  ;;  %v2272_v33 = vadd.f32 %v4034_v50, %v2271_v4 }
 0x4ca   :  { %v2287_v62 = vadd.f32 1.0, %v4036_v56  ;;  %v4038_v27 = vpop.eup %4037  ;;  %v2326_v56 = vld [vmem:[#allocation2 + $0x50] sm:$0xc] }
 0x4cb   :  { %v2276_v63 = vsel %vm2275_vm5, %v4034_v50, %v2272_v33  ;;  %v2304_v18 = vmul.f32 %v4038_v27, %v2262_v42  ;;  %v2335_v42 = vrot.slane %v2323_v48, 4 }
 0x4cc   :  { %v2281_v20 = vsel %vm2278_vm6, %v2280_v14, %v2276_v63  ;;  %4039 = vrcp.f32 %v2287_v62  ;;  %v2299_v3 = vand.u32 2147483648, %v2287_v62  ;;  %v2297_v50 = vand.u32 2147483647, %v2287_v62 }
 0x4cd   :  { %v2303_v21 = vmul.f32 %v2281_v20, %v5027_v9  ;;  %vm2293_vm9 = vweird.f32 %v2287_v62 }
 0x4ce   :  { %v2300_v31 = vor.u32 1.1754944e-38, %v2299_v3  ;;  %vm2298_vm11 = vcmp.eq.f32.partialorder %v2297_v50, 8.507059e+37 }
 0x4cf   :  { %v5115_v17 = vadd.f32 %v2304_v18, %v2303_v21  ;;  %v2327_v21 = vld [vmem:[#allocation2 + $0x68] sm:$0xc] }
 0x4d0   :  { %v2343_v3 = vsel %vm710_vm0, %v2335_v42, %v2327_v21 }
 0x4d1   :  { %4041 = vtanh.f32 %v5115_v17 }
 0x4d2   :  { %v4040_v49 = vpop.eup %4039 }
 0x4d3   :  { %v2289_v55 = vmul.f32 %v4040_v49, %v2287_v62  ;;  %vm2294_vm8 = vweird.f32 %v4040_v49 }
 0x4d4   :  { %vm2295_vm10 = vmor %vm2293_vm9, %vm2294_vm8 }
 0x4d5   :  { %v2290_v13 = vsub.f32 1.0, %v2289_v55 }
 0x4d7   :  { %v2291_v43 = vmul.f32 %v4040_v49, %v2290_v13  ;;  %v4042_v9 = vpop.eup %4041 }
 0x4d9   :  { %v2292_v5 = vadd.f32 %v4040_v49, %v2291_v43 }
 0x4db   :  { %v2296_v41 = vsel %vm2295_vm10, %v4040_v49, %v2292_v5 }
 0x4dc   :  { %v2301_v2 = vsel %vm2298_vm11, %v2300_v31, %v2296_v41 }
 0x4dd   :  { %v2307_v38 = vmul.f32 %v4042_v9, %v2301_v2 }
 0x4df   :  { %v2309_v4 = vrot.slane %v2307_v38, 1  ;;  %2311 = vst [vmem:[#allocation11 + $0x5] sm:$0x1] %v2307_v38  ;;  %v3665_v26 = vpack.c.bf16 %v2307_v38, %v2307_v38 }
 0x4e0   :  { %2313 = vst [vmem:[#allocation1] sm:$0xff] %v2307_v38 }
 0x4e1   :  { %2312 = vst [vmem:[#allocation11 + $0x15] sm:$0x1] %v2309_v4  ;;  %3666 = vmatmul.msk.bf16.vlgmr.msra.gmra.mxu0 %vm4667_vm2, %v3665_v26  ;;  %3669 = vmatmul.msk.bf16.vlgmr.msra.gmra.mxu1 %vm4674_vm3, %v3665_v26  ;;  %v2325_v4 = vld [vmem:[#allocation2 + $0x38] sm:$0x30] }
 0x4e2   :  { %3672 = vmatmul.msk.bf16.vlgmr.msra.gmra.mxu2 %vm4667_vm2, %v3665_v26  ;;  %3675 = vmatmul.msk.bf16.vlgmr.msra.gmra.mxu3 %vm4674_vm3, %v3665_v26 }
 0x4e3   :  { %2575 = vmatpush.bf16.msra.mxu0 %v4380_v10  ;;  %2588 = vmatpush.bf16.msra.mxu1 %v4382_v11  ;;  %v5535_v10 = vld [vmem:[#allocation23_spill] sm:$0xff]  ;;  %v5536_v11 = vld [vmem:[#allocation24_spill] sm:$0xff] }
 0x4e4   :  { %2601 = vmatpush.bf16.msra.mxu2 %v4384_v12  ;;  %2614 = vmatpush.bf16.msra.mxu3 %v4386_v16  ;;  %v5537_v12 = vld [vmem:[#allocation25_spill] sm:$0xff]  ;;  %v5538_v16 = vld [vmem:[#allocation26_spill] sm:$0xff] }
 0x4e7   :  { %v2315_v1 = vld [vmem:[#allocation1 + $0x2] ss:$9 sm:$0xff]  ;;  %2576 = vmatpush.bf16.msra.mxu0 %v4389_v22  ;;  %2589 = vmatpush.bf16.msra.mxu1 %v4393_v23 }
 0x4e8   :  { %v2317_v39 = vld [vmem:[#allocation1 + $0x3] ss:$9 sm:$0xff]  ;;  %2320 = vst [vmem:[#allocation11 + $0xa] sm:$0x1] %v2315_v1  ;;  %2602 = vmatpush.bf16.msra.mxu2 %v4395_v24  ;;  %2615 = vmatpush.bf16.msra.mxu3 %v4399_v28 }
 0x4e9   :  { %2321 = vst [vmem:[#allocation11 + $0x1a] sm:$0x1] %v2317_v39  ;;  %v5539_v22 = vld [vmem:[#allocation27_spill] sm:$0xff]  ;;  %v5540_v23 = vld [vmem:[#allocation28_spill] sm:$0xff]  ;;  %v5541_v24 = vld [vmem:[#allocation29_spill] sm:$0xff]  ;;  %v2337_v39 = vrot.slane %v2325_v4, 4 }
 0x4ea   :  { %v5542_v28 = vld [vmem:[#allocation30_spill] sm:$0xff]  ;;  %v3920_v4 = vld [vmem:[#allocation8 + $0x30] sm:$0xff] }
 0x4eb   :  { %2577 = vmatpush.bf16.msra.mxu0 %v4405_v34  ;;  %2590 = vmatpush.bf16.msra.mxu1 %v4409_v35  ;;  %v5543_v34 = vld [vmem:[#allocation31_spill] sm:$0xff]  ;;  %v5544_v35 = vld [vmem:[#allocation32_spill] sm:$0xff] }
 0x4ec   :  { %2603 = vmatpush.bf16.msra.mxu2 %v4411_v36  ;;  %2616 = vmatpush.bf16.msra.mxu3 %v4414_v40  ;;  %v5545_v36 = vld [vmem:[#allocation33_spill] sm:$0xff]  ;;  %v5546_v40 = vld [vmem:[#allocation34_spill] sm:$0xff] }
 0x4ef   :  { %2578 = vmatpush.bf16.msra.mxu0 %v4417_v45  ;;  %2591 = vmatpush.bf16.msra.mxu1 %v4421_v46  ;;  %v5547_v45 = vld [vmem:[#allocation35_spill] sm:$0xff]  ;;  %v5548_v46 = vld [vmem:[#allocation36_spill] sm:$0xff] }
 0x4f0   :  { %2604 = vmatpush.bf16.msra.mxu2 %v4423_v47  ;;  %2617 = vmatpush.bf16.msra.mxu3 %v4426_v51  ;;  %v5549_v47 = vld [vmem:[#allocation37_spill] sm:$0xff]  ;;  %v5550_v51 = vld [vmem:[#allocation38_spill] sm:$0xff] }
 0x4f1   :  { %3678 = vmatmul.msk.bf16.vlgmr.msrb.gmra.mxu0 %vm4667_vm2, %v3665_v26  ;;  %3681 = vmatmul.msk.bf16.vlgmr.msrb.gmra.mxu1 %vm4674_vm3, %v3665_v26 }
 0x4f2   :  { %3684 = vmatmul.msk.bf16.vlgmr.msrb.gmra.mxu2 %vm4667_vm2, %v3665_v26  ;;  %3687 = vmatmul.msk.bf16.vlgmr.msrb.gmra.mxu3 %vm4674_vm3, %v3665_v26 }
 0x4f3   :  { %2579 = vmatpush.bf16.msra.mxu0 %v4429_v58  ;;  %2592 = vmatpush.bf16.msra.mxu1 %v4433_v59  ;;  %v5551_v58 = vld [vmem:[#allocation39_spill] sm:$0xff]  ;;  %v5552_v59 = vld [vmem:[#allocation40_spill] sm:$0xff] }
 0x4f4   :  { %2605 = vmatpush.bf16.msra.mxu2 %v4435_v60  ;;  %2618 = vmatpush.bf16.msra.mxu3 %v4438_v0  ;;  %v5553_v60 = vld [vmem:[#allocation41_spill] sm:$0xff]  ;;  %v5554_v0 = vld [vmem:[#allocation42_spill] sm:$0xff] }
 0x4f7   :  { %2580 = vmatpush.bf16.msra.mxu0 %v4441_v6  ;;  %2593 = vmatpush.bf16.msra.mxu1 %v4445_v7  ;;  %v5555_v6 = vld [vmem:[#allocation43_spill] sm:$0xff]  ;;  %v5556_v7 = vld [vmem:[#allocation44_spill] sm:$0xff] }
 0x4f8   :  { %2606 = vmatpush.bf16.msra.mxu2 %v4447_v8  ;;  %2619 = vmatpush.bf16.msra.mxu3 %v4450_v15  ;;  %v5557_v8 = vld [vmem:[#allocation45_spill] sm:$0xff]  ;;  %v5558_v15 = vld [vmem:[#allocation46_spill] sm:$0xff] }
 0x4fb   :  { %2581 = vmatpush.bf16.msra.mxu0 %v4453_v25  ;;  %2594 = vmatpush.bf16.msra.mxu1 %v4457_v29  ;;  %v5559_v25 = vld [vmem:[#allocation47_spill] sm:$0xff]  ;;  %v5560_v29 = vld [vmem:[#allocation48_spill] sm:$0xff] }
 0x4fc   :  { %2607 = vmatpush.bf16.msra.mxu2 %v4459_v30  ;;  %2620 = vmatpush.bf16.msra.mxu3 %v4462_v37  ;;  %v5561_v30 = vld [vmem:[#allocation49_spill] sm:$0xff]  ;;  %v5562_v37 = vld [vmem:[#allocation50_spill] sm:$0xff] }
 0x4ff   :  { %2582 = vmatpush.bf16.msra.mxu0 %v4465_v44  ;;  %2595 = vmatpush.bf16.msra.mxu1 %v4469_v53  ;;  %v5563_v44 = vld [vmem:[#allocation51_spill] sm:$0xff]  ;;  %v5564_v53 = vld [vmem:[#allocation52_spill] sm:$0xff] }
 0x500   :  { %2608 = vmatpush.bf16.msra.mxu2 %v4471_v54  ;;  %2621 = vmatpush.bf16.msra.mxu3 %v4474_v57  ;;  %v5565_v54 = vld [vmem:[#allocation53_spill] sm:$0xff]  ;;  %v2322_v57 = vld [vmem:[#allocation2 + $0x40] sm:$0x30] }
 0x503   :  { %2627 = vmatpush.bf16.msrb.mxu0 %v4476_v61  ;;  %2640 = vmatpush.bf16.msrb.mxu1 %v5535_v10  ;;  %v2334_v61 = vrot.slane %v2322_v57, 4 }
 0x504   :  { %2653 = vmatpush.bf16.msrb.mxu2 %v5536_v11  ;;  %2666 = vmatpush.bf16.msrb.mxu3 %v5537_v12  ;;  %v2329_v11 = vld [vmem:[#allocation2 + $0x48] sm:$0xc] }
 0x505   :  { %v2342_v62 = vsel %vm710_vm0, %v2334_v61, %v2326_v56 }
 0x507   :  { %2628 = vmatpush.bf16.msrb.mxu0 %v5538_v16  ;;  %2641 = vmatpush.bf16.msrb.mxu1 %v5539_v22 }
 0x508   :  { %2654 = vmatpush.bf16.msrb.mxu2 %v5540_v23  ;;  %2667 = vmatpush.bf16.msrb.mxu3 %v5541_v24  ;;  %v2324_v23 = vld [vmem:[#allocation2 + $0x10] sm:$0x30] }
 0x50b   :  { %2629 = vmatpush.bf16.msrb.mxu0 %v5542_v28  ;;  %2642 = vmatpush.bf16.msrb.mxu1 %v5543_v34 }
 0x50c   :  { %2655 = vmatpush.bf16.msrb.mxu2 %v5544_v35  ;;  %2668 = vmatpush.bf16.msrb.mxu3 %v5545_v36  ;;  %v2345_v36 = vsel %vm710_vm0, %v2337_v39, %v2329_v11  ;;  %v3919_v39 = vld [vmem:[#allocation8 + $0x28] sm:$0xff]  ;;  %v3917_v11 = vld [vmem:[#allocation8 + $0x18] sm:$0xff] }
 0x50f   :  { %2630 = vmatpush.bf16.msrb.mxu0 %v5546_v40  ;;  %2643 = vmatpush.bf16.msrb.mxu1 %v5547_v45  ;;  %v2336_v45 = vrot.slane %v2324_v23, 4  ;;  %v2766_v23 = vld [vmem:[%s5257_s1] sm:$0x1] }
 0x510   :  { %2656 = vmatpush.bf16.msrb.mxu2 %v5548_v46  ;;  %2669 = vmatpush.bf16.msrb.mxu3 %v5549_v47  ;;  %v2328_v46 = vld [vmem:[#allocation2 + $0x8] sm:$0xc] }
 0x513   :  { %2631 = vmatpush.bf16.msrb.mxu0 %v5550_v51  ;;  %2644 = vmatpush.bf16.msrb.mxu1 %v5551_v58 }
 0x514   :  { %2657 = vmatpush.bf16.msrb.mxu2 %v5552_v59  ;;  %2670 = vmatpush.bf16.msrb.mxu3 %v5553_v60 }
 0x517   :  { %2632 = vmatpush.bf16.msrb.mxu0 %v5554_v0  ;;  %2645 = vmatpush.bf16.msrb.mxu1 %v5555_v6  ;;  %v2344_v0 = vsel %vm710_vm0, %v2336_v45, %v2328_v46  ;;  %v3926_v46 = vld [vmem:[#allocation9 + $0x20] sm:$0xff] }
 0x518   :  { %2658 = vmatpush.bf16.msrb.mxu2 %v5556_v7  ;;  %2671 = vmatpush.bf16.msrb.mxu3 %v5557_v8 }
 0x51b   :  { %2633 = vmatpush.bf16.msrb.mxu0 %v5558_v15  ;;  %2646 = vmatpush.bf16.msrb.mxu1 %v5559_v25 }
 0x51c   :  { %2659 = vmatpush.bf16.msrb.mxu2 %v5560_v29  ;;  %2672 = vmatpush.bf16.msrb.mxu3 %v5561_v30 }
 0x51f   :  { %2634 = vmatpush.bf16.msrb.mxu0 %v5562_v37  ;;  %2647 = vmatpush.bf16.msrb.mxu1 %v5563_v44 }
 0x520   :  { %2660 = vmatpush.bf16.msrb.mxu2 %v5564_v53  ;;  %2673 = vmatpush.bf16.msrb.mxu3 %v5565_v54 }
 0x55e   :  { %v2359_v33 = vpop.f32.mrf.mxu0  ;;  %v2372_v14 = vpop.f32.mrf.mxu1 }
 0x55f   :  { %v2373_v19 = vadd.f32 %v2372_v14, %v2359_v33 }
 0x561   :  { %v2454_v63 = vadd.f32 %v2373_v19, %v2342_v62 }
 0x563   :  { %v3688_v20 = vmul.f32 -1.442695, %v2454_v63 }
 0x565   :  { %4043 = vpow2.f32 %v3688_v20  ;;  %v2385_v27 = vpop.f32.mrf.mxu2  ;;  %v2398_v18 = vpop.f32.mrf.mxu3 }
 0x566   :  { %v2399_v49 = vadd.f32 %v2398_v18, %v2385_v27  ;;  %v2361_v55 = vpop.f32.mrf.mxu0  ;;  %v2374_v13 = vpop.f32.mrf.mxu1 }
 0x568   :  { %v2455_v43 = vadd.f32 %v2399_v49, %v2343_v3 }
 0x56a   :  { %v3689_v50 = vmul.f32 -1.442695, %v2455_v43 }
 0x56b   :  { %v4044_v5 = vpop.eup %4043 }
 0x56c   :  { %v2461_v31 = vadd.f32 1.0, %v4044_v5  ;;  %4045 = vpow2.f32 %v3689_v50 }
 0x56d   :  { %v2387_v41 = vpop.f32.mrf.mxu2  ;;  %v2400_v9 = vpop.f32.mrf.mxu3 }
 0x56e   :  { %4047 = vrcp.f32 %v2461_v31  ;;  %v2411_v2 = vpop.f32.mrf.mxu0  ;;  %v2424_v38 = vpop.f32.mrf.mxu1  ;;  %v2473_v37 = vand.u32 2147483648, %v2461_v31  ;;  %vm2467_vm14 = vweird.f32 %v2461_v31  ;;  %v2471_v53 = vand.u32 2147483647, %v2461_v31 }
 0x56f   :  { %v2425_v47 = vadd.f32 %v2424_v38, %v2411_v2  ;;  %v3921_v38 = vld [vmem:[#allocation8 + $0x38] sm:$0xff] }
 0x570   :  { %v2474_v14 = vor.u32 1.1754944e-38, %v2473_v37  ;;  %vm2472_vm6 = vcmp.eq.f32.partialorder %v2471_v53, 8.507059e+37 }
 0x571   :  { %v2456_v15 = vadd.f32 %v2425_v47, %v2344_v0  ;;  %v3925_v0 = vld [vmem:[#allocation9 + $0x18] sm:$0xff] }
 0x572   :  { %v4046_v26 = vpop.eup %4045 }
 0x573   :  { %v2480_v1 = vadd.f32 1.0, %v4046_v26 }
 0x574   :  { %v4048_v10 = vpop.eup %4047 }
 0x575   :  { %v2463_v12 = vmul.f32 %v4048_v10, %v2461_v31  ;;  %4049 = vrcp.f32 %v2480_v1  ;;  %v2437_v16 = vpop.f32.mrf.mxu2  ;;  %v2450_v22 = vpop.f32.mrf.mxu3  ;;  %v2492_v25 = vand.u32 2147483648, %v2480_v1  ;;  %vm2468_vm12 = vweird.f32 %v4048_v10 }
 0x576   :  { %v2451_v24 = vadd.f32 %v2450_v22, %v2437_v16  ;;  %v2413_v28 = vpop.f32.mrf.mxu0  ;;  %v2426_v34 = vpop.f32.mrf.mxu1  ;;  %v2490_v44 = vand.u32 2147483647, %v2480_v1  ;;  %vm2486_vm15 = vweird.f32 %v2480_v1  ;;  %vm2469_vm1 = vmor %vm2467_vm14, %vm2468_vm12  ;;  %v3915_v16 = vld [vmem:[#allocation8 + $0x8] sm:$0xff]  ;;  %v3914_v22 = vld [vmem:[#allocation8] sm:$0xff] }
 0x577   :  { %v2464_v35 = vsub.f32 1.0, %v2463_v12  ;;  %v2493_v61 = vor.u32 1.1754944e-38, %v2492_v25  ;;  %v3916_v12 = vld [vmem:[#allocation8 + $0x10] sm:$0xff] }
 0x578   :  { %v2457_v40 = vadd.f32 %v2451_v24, %v2345_v36  ;;  %vm2491_vm5 = vcmp.eq.f32.partialorder %v2490_v44, 8.507059e+37  ;;  %v3929_v24 = vld [vmem:[#allocation9 + $0x38] sm:$0xff]  ;;  %v3928_v28 = vld [vmem:[#allocation9 + $0x30] sm:$0xff] }
 0x579   :  { %v2465_v59 = vmul.f32 %v4048_v10, %v2464_v35  ;;  %v2539_v34 = vld [vmem:[#allocation2 + $0x50] sm:$0x3]  ;;  %v2547_v35 = vrot.slane %v2535_v32, 6 }
 0x57a   :  { %v3690_v51 = vmul.f32 -1.442695, %v2457_v40  ;;  %v2559_v36 = vrot.slane %v2539_v34, 6  ;;  %v3924_v44 = vld [vmem:[#allocation9 + $0x10] sm:$0xff] }
 0x57b   :  { %v4050_v58 = vpop.eup %4049  ;;  %v2466_v29 = vadd.f32 %v4048_v10, %v2465_v59  ;;  %v2540_v59 = vld [vmem:[#allocation2 + $0x68] sm:$0x3] }
 0x57c   :  { %v2482_v60 = vmul.f32 %v4050_v58, %v2480_v1  ;;  %4051 = vpow2.f32 %v3690_v51  ;;  %vm2487_vm13 = vweird.f32 %v4050_v58  ;;  %v2567_v51 = vsel %vm710_vm0, %v2547_v35, %v2559_v36 }
 0x57d   :  { %v2439_v6 = vpop.f32.mrf.mxu2  ;;  %v2452_v7 = vpop.f32.mrf.mxu3  ;;  %4053 = vtanh.f32 %v2456_v15  ;;  %vm2488_vm4 = vmor %vm2486_vm15, %vm2487_vm13  ;;  %v2470_v56 = vsel %vm2469_vm1, %v4048_v10, %v2466_v29  ;;  %v3918_v10 = vld [vmem:[#allocation8 + $0x20] sm:$0xff] }
 0x57e   :  { %v2483_v8 = vsub.f32 1.0, %v2482_v60  ;;  %v2475_v48 = vsel %vm2472_vm6, %v2474_v14, %v2470_v56 }
 0x580   :  { %v2484_v30 = vmul.f32 %v4050_v58, %v2483_v8  ;;  %v2560_v8 = vrot.slane %v2540_v59, 6 }
 0x582   :  { %v4052_v54 = vpop.eup %4051  ;;  %v2485_v57 = vadd.f32 %v4050_v58, %v2484_v30 }
 0x583   :  { %v2500_v33 = vadd.f32 1.0, %v4052_v54  ;;  %v4054_v20 = vpop.eup %4053 }
 0x584   :  { %v2489_v19 = vsel %vm2488_vm4, %v4050_v58, %v2485_v57  ;;  %v2517_v42 = vmul.f32 %v4054_v20, %v2475_v48  ;;  %v2536_v58 = vld [vmem:[#allocation2 + $0x20] sm:$0xc0]  ;;  %v2542_v20 = vld [vmem:[#allocation2 + $0x48] sm:$0x3] }
 0x585   :  { %v2494_v62 = vsel %vm2491_vm5, %v2493_v61, %v2489_v19  ;;  %4055 = vrcp.f32 %v2500_v33  ;;  %v2512_v55 = vand.u32 2147483648, %v2500_v33  ;;  %v2510_v3 = vand.u32 2147483647, %v2500_v33  ;;  %v3923_v61 = vld [vmem:[#allocation9 + $0x8] sm:$0xff] }
 0x586   :  { %v2516_v63 = vmul.f32 %v2494_v62, %v5115_v17  ;;  %vm2506_vm8 = vweird.f32 %v2500_v33  ;;  %v2548_v7 = vrot.slane %v2536_v58, 6 }
 0x587   :  { %v2513_v50 = vor.u32 1.1754944e-38, %v2512_v55  ;;  %vm2511_vm10 = vcmp.eq.f32.partialorder %v2510_v3, 8.507059e+37  ;;  %v2562_v55 = vrot.slane %v2542_v20, 6 }
 0x588   :  { %v5203_v27 = vadd.f32 %v2517_v42, %v2516_v63  ;;  %v2568_v53 = vsel %vm710_vm0, %v2548_v7, %v2560_v8  ;;  %v3922_v63 = vld [vmem:[#allocation9] sm:$0xff] }
 0x58a   :  { %4057 = vtanh.f32 %v5203_v27 }
 0x58b   :  { %v4056_v21 = vpop.eup %4055 }
 0x58c   :  { %v2502_v18 = vmul.f32 %v4056_v21, %v2500_v33  ;;  %vm2507_vm7 = vweird.f32 %v4056_v21 }
 0x58d   :  { %vm2508_vm9 = vmor %vm2506_vm8, %vm2507_vm7 }
 0x58e   :  { %v2503_v49 = vsub.f32 1.0, %v2502_v18 }
 0x590   :  { %v2504_v13 = vmul.f32 %v4056_v21, %v2503_v49  ;;  %v4058_v17 = vpop.eup %4057  ;;  %v2541_v49 = vld [vmem:[#allocation2 + $0x8] sm:$0x3] }
 0x592   :  { %v2505_v43 = vadd.f32 %v4056_v21, %v2504_v13 }
 0x594   :  { %v2509_v5 = vsel %vm2508_vm9, %v4056_v21, %v2505_v43  ;;  %v2538_v21 = vld [vmem:[#allocation2 + $0x38] sm:$0xc0]  ;;  %v2537_v43 = vld [vmem:[#allocation2 + $0x10] sm:$0xc0] }
 0x595   :  { %v2514_v31 = vsel %vm2511_vm10, %v2513_v50, %v2509_v5  ;;  %v2550_v5 = vrot.slane %v2538_v21, 6 }
 0x596   :  { %v2520_v41 = vmul.f32 %v4058_v17, %v2514_v31  ;;  %v2561_v31 = vrot.slane %v2541_v49, 6 }
 0x598   :  { %v2522_v9 = vrot.slane %v2520_v41, 1  ;;  %2524 = vst [vmem:[#allocation11 + $0x6] sm:$0x1] %v2520_v41  ;;  %v3692_v2 = vpack.c.bf16 %v2520_v41, %v2520_v41 }
 0x599   :  { %2526 = vst [vmem:[#allocation1] sm:$0xff] %v2520_v41 }
 0x59a   :  { %2525 = vst [vmem:[#allocation11 + $0x16] sm:$0x1] %v2522_v9  ;;  %3693 = vmatmul.msk.bf16.vlgmr.msra.gmra.mxu0 %vm4667_vm2, %v3692_v2  ;;  %3696 = vmatmul.msk.bf16.vlgmr.msra.gmra.mxu1 %vm4674_vm3, %v3692_v2 }
 0x59b   :  { %3699 = vmatmul.msk.bf16.vlgmr.msra.gmra.mxu2 %vm4667_vm2, %v3692_v2  ;;  %3702 = vmatmul.msk.bf16.vlgmr.msra.gmra.mxu3 %vm4674_vm3, %v3692_v2 }
 0x59c   :  { %2831 = vmatpush.bf16.msra.mxu0 %v3921_v38  ;;  %2916 = vmatpush.bf16.msra.mxu1 %v3929_v24 }
 0x5a0   :  { %v2528_v26 = vld [vmem:[#allocation1 + $0x2] ss:$9 sm:$0xff]  ;;  %2832 = vmatpush.bf16.msra.mxu0 %v3920_v4  ;;  %2917 = vmatpush.bf16.msra.mxu1 %v3928_v28 }
 0x5a1   :  { %v2530_v1 = vld [vmem:[#allocation1 + $0x3] ss:$9 sm:$0xff]  ;;  %2533 = vst [vmem:[#allocation11 + $0x9] sm:$0x1] %v2528_v26  ;;  %v2570_v26 = vsel %vm710_vm0, %v2550_v5, %v2562_v55 }
 0x5a2   :  { %2534 = vst [vmem:[#allocation11 + $0x19] sm:$0x1] %v2530_v1  ;;  %v2549_v1 = vrot.slane %v2537_v43, 6 }
 0x5a4   :  { %2833 = vmatpush.bf16.msra.mxu0 %v3919_v39  ;;  %2918 = vmatpush.bf16.msra.mxu1 %v3927_v52 }
 0x5a8   :  { %2834 = vmatpush.bf16.msra.mxu0 %v3918_v10  ;;  %2919 = vmatpush.bf16.msra.mxu1 %v3926_v46 }
 0x5aa   :  { %3705 = vmatmul.msk.bf16.vlgmr.msrb.gmra.mxu0 %vm4667_vm2, %v3692_v2  ;;  %3708 = vmatmul.msk.bf16.vlgmr.msrb.gmra.mxu1 %vm4674_vm3, %v3692_v2 }
 0x5ab   :  { %3711 = vmatmul.msk.bf16.vlgmr.msrb.gmra.mxu2 %vm4667_vm2, %v3692_v2  ;;  %3714 = vmatmul.msk.bf16.vlgmr.msrb.gmra.mxu3 %vm4674_vm3, %v3692_v2 }
 0x5ac   :  { %2835 = vmatpush.bf16.msra.mxu0 %v3917_v11  ;;  %2920 = vmatpush.bf16.msra.mxu1 %v3925_v0  ;;  %v2569_v11 = vsel %vm710_vm0, %v2549_v1, %v2561_v31 }
 0x5b0   :  { %2836 = vmatpush.bf16.msra.mxu0 %v3916_v12  ;;  %2921 = vmatpush.bf16.msra.mxu1 %v3924_v44 }
 0x5b4   :  { %2837 = vmatpush.bf16.msra.mxu0 %v3915_v16  ;;  %2922 = vmatpush.bf16.msra.mxu1 %v3923_v61 }
 0x5b8   :  { %2838 = vmatpush.bf16.msra.mxu0 %v3914_v22  ;;  %2923 = vmatpush.bf16.msra.mxu1 %v3922_v63 }
 0x5bb   :  { %2839 = vmatmul.bf16.vlgmr.msra.gmra.mxu0 %v2766_v23 }
 0x617   :  { %v2584_v40 = vpop.f32.mrf.mxu0  ;;  %v2597_v45 = vpop.f32.mrf.mxu1 }
 0x618   :  { %v2598_v47 = vadd.f32 %v2597_v45, %v2584_v40 }
 0x61a   :  { %v2679_v60 = vadd.f32 %v2598_v47, %v2567_v51 }
 0x61c   :  { %v3715_v6 = vmul.f32 -1.442695, %v2679_v60 }
 0x61e   :  { %4059 = vpow2.f32 %v3715_v6  ;;  %v2610_v15 = vpop.f32.mrf.mxu2  ;;  %v2623_v25 = vpop.f32.mrf.mxu3 }
 0x61f   :  { %v2624_v29 = vadd.f32 %v2623_v25, %v2610_v15  ;;  %v2586_v30 = vpop.f32.mrf.mxu0  ;;  %v2599_v37 = vpop.f32.mrf.mxu1 }
 0x621   :  { %v2680_v54 = vadd.f32 %v2624_v29, %v2568_v53 }
 0x623   :  { %v3716_v57 = vmul.f32 -1.442695, %v2680_v54 }
 0x624   :  { %v4060_v56 = vpop.eup %4059 }
 0x625   :  { %v2686_v33 = vadd.f32 1.0, %v4060_v56  ;;  %4061 = vpow2.f32 %v3716_v57 }
 0x626   :  { %v2612_v14 = vpop.f32.mrf.mxu2  ;;  %v2625_v19 = vpop.f32.mrf.mxu3 }
 0x627   :  { %4063 = vrcp.f32 %v2686_v33  ;;  %v2636_v62 = vpop.f32.mrf.mxu0  ;;  %v2649_v48 = vpop.f32.mrf.mxu1  ;;  %v2698_v28 = vand.u32 2147483648, %v2686_v33  ;;  %vm2692_vm3 = vweird.f32 %v2686_v33  ;;  %v2696_v35 = vand.u32 2147483647, %v2686_v33 }
 0x628   :  { %v2650_v4 = vadd.f32 %v2649_v48, %v2636_v62 }
 0x629   :  { %v2699_v59 = vor.u32 1.1754944e-38, %v2698_v28  ;;  %vm2697_vm13 = vcmp.eq.f32.partialorder %v2696_v35, 8.507059e+37 }
 0x62a   :  { %v2681_v22 = vadd.f32 %v2650_v4, %v2569_v11 }
 0x62b   :  { %v4062_v42 = vpop.eup %4061 }
 0x62c   :  { %v2705_v18 = vadd.f32 1.0, %v4062_v42 }
 0x62d   :  { %v4064_v13 = vpop.eup %4063 }
 0x62e   :  { %v2688_v3 = vmul.f32 %v4064_v13, %v2686_v33  ;;  %4065 = vrcp.f32 %v2705_v18  ;;  %v2662_v50 = vpop.f32.mrf.mxu2  ;;  %v2675_v17 = vpop.f32.mrf.mxu3  ;;  %vm2693_vm2 = vweird.f32 %v4064_v13  ;;  %v2717_v36 = vand.u32 2147483648, %v2705_v18 }
 0x62f   :  { %v2676_v41 = vadd.f32 %v2675_v17, %v2662_v50  ;;  %v2638_v9 = vpop.f32.mrf.mxu0  ;;  %v2651_v2 = vpop.f32.mrf.mxu1  ;;  %vm5229_vm11 = vmor %vm2692_vm3, %vm2693_vm2  ;;  %v2715_v45 = vand.u32 2147483647, %v2705_v18  ;;  %vm2711_vm12 = vweird.f32 %v2705_v18 }
 0x630   :  { %v2689_v38 = vsub.f32 1.0, %v2688_v3  ;;  %v2718_v7 = vor.u32 1.1754944e-38, %v2717_v36 }
 0x631   :  { %v2682_v39 = vadd.f32 %v2676_v41, %v2570_v26  ;;  %vm2716_vm15 = vcmp.eq.f32.partialorder %v2715_v45, 8.507059e+37 }
 0x632   :  { %v2690_v10 = vmul.f32 %v4064_v13, %v2689_v38 }
 0x633   :  { %v3717_v12 = vmul.f32 -1.442695, %v2682_v39 }
 0x634   :  { %v4066_v16 = vpop.eup %4065  ;;  %v2691_v24 = vadd.f32 %v4064_v13, %v2690_v10 }
 0x635   :  { %v2707_v23 = vmul.f32 %v4066_v16, %v2705_v18  ;;  %4067 = vpow2.f32 %v3717_v12  ;;  %vm2712_vm0 = vweird.f32 %v4066_v16 }
 0x636   :  { %v2664_v32 = vpop.f32.mrf.mxu2  ;;  %v2677_v34 = vpop.f32.mrf.mxu3  ;;  %4069 = vtanh.f32 %v2681_v22  ;;  %v2695_v51 = vsel %vm5229_vm11, %v4064_v13, %v2691_v24  ;;  %vm2713_vm14 = vmor %vm2711_vm12, %vm2712_vm0 }
 0x637   :  { %v2708_v52 = vsub.f32 1.0, %v2707_v23  ;;  %v2700_v8 = vsel %vm2697_vm13, %v2699_v59, %v2695_v51 }
 0x638   :  { %v2840_v46 = vpop.f32.mrf.mxu0 }
 0x639   :  { %v2709_v47 = vmul.f32 %v4066_v16, %v2708_v52  ;;  %v2845_v58 = vmin.f32 %v2840_v46, 0.0  ;;  %vm2844_vm1 = vcmp.gt.f32.partialorder %v2840_v46, 0.0 }
 0x63b   :  { %v4068_v60 = vpop.eup %4067  ;;  %v2710_v0 = vadd.f32 %v4066_v16, %v2709_v47  ;;  %v2846_v6 = vmul.f32 1.442695, %v2845_v58 }
 0x63c   :  { %v2725_v15 = vadd.f32 1.0, %v4068_v60  ;;  %v4070_v29 = vpop.eup %4069 }
 0x63d   :  { %v2714_v25 = vsel %vm2713_vm14, %v4066_v16, %v2710_v0  ;;  %4071 = vpow2.f32 %v2846_v6  ;;  %v2742_v44 = vmul.f32 %v4070_v29, %v2700_v8 }
 0x63e   :  { %v2719_v30 = vsel %vm2716_vm15, %v2718_v7, %v2714_v25  ;;  %4073 = vrcp.f32 %v2725_v15  ;;  %v2737_v48 = vand.u32 2147483648, %v2725_v15  ;;  %v2735_v20 = vand.u32 2147483647, %v2725_v15 }
 0x63f   :  { %v2741_v37 = vmul.f32 %v2719_v30, %v5203_v27  ;;  %vm2731_vm5 = vweird.f32 %v2725_v15 }
 0x640   :  { %v2842_v53 = vpop.f32.mrf.mxu0  ;;  %v2738_v42 = vor.u32 1.1754944e-38, %v2737_v48  ;;  %vm2736_vm7 = vcmp.eq.f32.partialorder %v2735_v20, 8.507059e+37 }
 0x641   :  { %v2743_v54 = vadd.f32 %v2742_v44, %v2741_v37 }
 0x643   :  { %v4072_v57 = vpop.eup %4071  ;;  %2763 = vst [vmem:[#allocation12] sm:$0xf] %v2743_v54   ;;  %4075 = vtanh.f32 %v2743_v54 }
 0x644   :  { %v4074_v61 = vpop.eup %4073  ;;  %v3751_v56 = vadd.f32 -1.0, %v4072_v57  ;;  %2963 = dma.vmem_to_hbm [thread:$0]  %s2956_s3, 64, %s2958_s23, [#allocation13], %s4288_s25, %s4288_s25, %s4296_s26  }
 0x645   :  { %v2727_v33 = vmul.f32 %v4074_v61, %v2725_v15  ;;  %vm2732_vm4 = vweird.f32 %v4074_v61 }
 0x646   :  { %v2849_v14 = vsel %vm2844_vm1, %v2840_v46, %v3751_v56  ;;  %vm2733_vm6 = vmor %vm2731_vm5, %vm2732_vm4 }
 0x647   :  { %v2728_v19 = vsub.f32 1.0, %v2727_v33  ;;  %2850 = vst [vmem:[#allocation14] sm:$0x3] %v2849_v14  ;;  %v2851_v62 = vpack.c.bf16 %v2849_v14, %v2849_v14 }
 0x648   :  { %2974 = dma.vmem_to_hbm [thread:$0]  %s2970_s30, 32, %s2972_s12, [#allocation13]  }
 0x649   :  { %v2729_v63 = vmul.f32 %v4074_v61, %v2728_v19  ;;  %2924 = vmatmul.bf16.vlgmr.msra.gmra.mxu1 %v2851_v62  ;;  %v4076_v18 = vpop.eup %4075 }
 0x64b   :  { %v2730_v27 = vadd.f32 %v4074_v61, %v2729_v63 }
 0x64d   :  { %v2734_v21 = vsel %vm2733_vm6, %v4074_v61, %v2730_v27 }
 0x64e   :  { %v2739_v49 = vsel %vm2736_vm7, %v2738_v42, %v2734_v21 }
 0x64f   :  { %v2745_v55 = vmul.f32 %v4076_v18, %v2739_v49 }
 0x651   :  { %v2747_v13 = vrot.slane %v2745_v55, 1  ;;  %2749 = vst [vmem:[#allocation11 + $0x7] sm:$0x1] %v2745_v55 }
 0x652   :  { %2751 = vst [vmem:[#allocation1] sm:$0xff] %v2745_v55 }
 0x653   :  { %2750 = vst [vmem:[#allocation11 + $0x17] sm:$0x1] %v2747_v13 }
 0x654   :  { %2760 = vst [vmem:[%s5263_s7] sm:$0xf] %v2745_v55   ;;  %s4297_s7 = smov [#allocation11]  }
 0x655   :  { %s2940_s29 = sshll.u32 %s4297_s7, 4  ;;  %s2941_s29 = int_to_ptr.vmem [resolvable:$true] %s2940_s29 }
 0x659   :  { %v2753_v3 = vld [vmem:[#allocation1 + $0x2] ss:$9 sm:$0xff] }
 0x65a   :  { %v2755_v43 = vld [vmem:[#allocation1 + $0x3] ss:$9 sm:$0xff]  ;;  %2758 = vst [vmem:[#allocation11 + $0x8] sm:$0x1] %v2753_v3 }
 0x65b   :  { %2759 = vst [vmem:[#allocation11 + $0x18] sm:$0x1] %v2755_v43 }
 0x65c   :  { %2948 = dma.vmem_to_hbm [thread:$0]  %s2941_s29, 512, %s2943_s2, [#allocation5], %s4284_s21, %s4284_s21, %s4285_s22  }
 0x65d   :  { %s2982_s21 = sshll.u32 %s5266_s10, 4  ;;  %s2983_s21 = int_to_ptr.hbm [resolvable:$true] %s2982_s21 }
 0x6c6   :  { %v2925_v50 = vpop.f32.mrf.mxu1 }
 0x6c7   :  { %v2930_v5 = vmin.f32 %v2925_v50, 0.0  ;;  %vm2929_vm8 = vcmp.gt.f32.partialorder %v2925_v50, 0.0 }
 0x6c9   :  { %v2931_v17 = vmul.f32 1.442695, %v2930_v5 }
 0x6cb   :  { %4077 = vpow2.f32 %v2931_v17 }
 0x6ce   :  { %v2927_v31 = vpop.f32.mrf.mxu1 }
 0x6d1   :  { %v4078_v41 = vpop.eup %4077 }
 0x6d2   :  { %v3784_v9 = vadd.f32 -1.0, %v4078_v41 }
 0x6d4   :  { %v2934_v2 = vsel %vm2929_vm8, %v2925_v50, %v3784_v9 }
 0x6d5   :  { %2935 = vst [vmem:[#allocation15] sm:$0x3] %v2934_v2 }
 0x6d6   :  { %2985 = dma.vmem_to_hbm [thread:$0]  %s2981_s13, 32, %s2983_s21, [#allocation16]  }
 0x6d7   :  { %4277 = dma.done.wait [#allocation5], 512  }
 0x6d8   :  { %4278 = vsyncadd [#allocation5], 4294966784 }
 0x6d9   :  { %4279 = dma.done.wait [#allocation13], 96  }
 0x6da   :  { %4280 = vsyncadd [#allocation13], 4294967200 }
 0x6db   :  { %4281 = dma.done.wait [#allocation16], 32  }
 0x6dc   :  { %4282 = vsyncadd [#allocation16], 4294967264 }
 0x6dd   :  { %3004 = vsyncpa [#allocation4], 1 }
 0x6de   :  { %3005 = vsyncpa [#allocation7], 1 }
 0x6df   :  { %3006 = vsyncpa [#allocation10], 1 }
 0x6e0   :  { %3007 = vsyncpa [#allocation5], 1 }
 0x6e1   :  { %3008 = vsyncpa [#allocation13], 1 }
 0x6e2   :  { %3009 = vsyncpa [#allocation16], 1 }

</bundles_post_ra>
